<compile_context>
chip_gen: v5e
topology: v5e:2x2
jax: 0.10.0
libtpu: 0.0.40
codegen_flags: <defaults>
</compile_context>

<pallas_src>
import jax
import jax.numpy as jnp
import numpy as np
from jax.experimental import pallas as pl
from jax.experimental.pallas import tpu as pltpu

HP = jax.lax.Precision.HIGHEST  # only used in the pure-JAX reference


def cbam_kernel(x_ref, wm1_ref, bm1_ref, wm2_ref, bm2_ref,
                band_ref, bnp_ref,
                out_ref,
                spad_ref):
    Bb, H, W, C = x_ref.shape
    f32 = jnp.float32
    bf16 = jnp.bfloat16

    x = x_ref[...].astype(f32)                          # (Bb, H, W, C)

    # ---- ChannelGate: avg/max pool over HxW -> shared MLP -> sigmoid ----
    xf = x.reshape(Bb, H * W, C)                        # lane dim stays C
    avg = jnp.mean(xf, axis=1)                          # (Bb, C)  sublane reduce
    mx = jnp.max(xf, axis=1)                            # (Bb, C)
    pooled = jnp.concatenate([avg, mx], axis=0)         # (2*Bb, C)
    # Tiny shared MLP: bf16 MXU operands, f32 accumulation / bias / activations.
    hid = jnp.maximum(
        jnp.dot(pooled.astype(bf16), wm1_ref[...],
                preferred_element_type=f32) + bm1_ref[...], 0.0)   # (2*Bb, CR)
    att2 = jnp.dot(hid.astype(bf16), wm2_ref[...],
                   preferred_element_type=f32) + bm2_ref[...]      # (2*Bb, C)
    att = att2[:Bb] + att2[Bb:]                         # mlp(avg) + mlp(max)
    cscale = jax.nn.sigmoid(att)                        # (Bb, C)
    yc = x * cscale[:, None, None, :]                   # (Bb, H, W, C)

    # ---- SpatialGate: ChannelPool -> 7x7 conv (SAME) -> BN(eval) -> sigmoid
    cmax = jnp.max(yc, axis=-1)                         # (Bb, H, W)
    cmean = jnp.mean(yc, axis=-1)                       # (Bb, H, W)

    # Zero-row-padded scratch; lanes [0:W) hold the max plane, [W:2W) the mean
    # plane so a single matmul per kernel row covers both planes.  Re-zeroing
    # each step is ~Bb*3 vregs and stays correct under megacore sharding.
    spad_ref[...] = jnp.zeros(spad_ref.shape, f32)
    spad_ref[:, 3:3 + H, 0:W] = cmax
    spad_ref[:, 3:3 + H, W:2 * W] = cmean

    # 7x7 SAME conv as 7 banded matmuls on the MXU.  band_ref[dy] is (2W, W)
    # with the horizontal zero-padding folded into the band structure, so the
    # only data movement per dy is a sublane-offset slab load.
    acc_a = jnp.zeros((Bb * H, W), f32)
    acc_b = jnp.zeros((Bb * H, W), f32)
    for dy in range(7):
        slab = spad_ref[:, dy:dy + H, :].reshape(Bb * H, 2 * W).astype(bf16)
        part = jnp.dot(slab, band_ref[dy], preferred_element_type=f32)
        if dy % 2 == 0:
            acc_a = acc_a + part
        else:
            acc_b = acc_b + part
    s_conv = (acc_a + acc_b).reshape(Bb, H, W)

    s_bn = s_conv * bnp_ref[0] + bnp_ref[1]             # eval-mode BatchNorm2d(1)
    sscale = jax.nn.sigmoid(s_bn)                       # (Bb, H, W)

    out_ref[...] = (yc * sscale[:, :, :, None]).astype(out_ref.dtype)


def _build_band(wsp, W):
    """Band matrices for the 7x7 conv: band[dy] is (2W, W) with
    band[dy][j,     x] = wsp[0, dy, j - x + 3]  (max  plane, |j-x| <= 3)
    band[dy][W + j, x] = wsp[1, dy, j - x + 3]  (mean plane, |j-x| <= 3)
    and zero elsewhere (this absorbs the horizontal SAME padding)."""
    j = jnp.arange(W)[:, None]
    x = jnp.arange(W)[None, :]
    d = j - x + 3                                        # (W, W)
    valid = (d >= 0) & (d < 7)
    dc = jnp.clip(d, 0, 6)
    bmax = jnp.where(valid[None], wsp[0][:, dc], 0.0)    # (7, W, W)
    bmean = jnp.where(valid[None], wsp[1][:, dc], 0.0)   # (7, W, W)
    return jnp.concatenate([bmax, bmean], axis=1)        # (7, 2W, W)


def _pick_block_b(B, H, W, C):
    """block_b = B on single-TC chips (v5e/v6e); keep grid >= 2 on dual-TC
    chips (v4/v5p/v7x).  Cap by a conservative VMEM working-set estimate."""
    kind = ""
    try:
        kind = jax.devices()[0].device_kind.lower()
    except Exception:
        pass
    dual_tc = any(t in kind for t in ("v4", "v5p", "v7"))
    target = B // 2 if (dual_tc and B >= 2) else B
    per_b = 8 * H * W * C * 4                # ~8 resident f32 copies per batch row
    cap = max(1, (24 * 1024 * 1024) // per_b)
    target = max(1, min(target, cap))
    while B % target != 0:                   # largest divisor of B <= target
        target -= 1
    return target


def cbam_pallas(x, p, block_b=None):
    B, H, W, C = x.shape
    CR = p["wm1"].shape[1]
    if block_b is None:
        block_b = _pick_block_b(B, H, W, C)
    assert B % block_b == 0
    nb = B // block_b

    # bf16 weights for the MXU dots (halves weight DMA; f32 accumulation kept).
    wm1 = p["wm1"].astype(jnp.bfloat16)
    wm2 = p["wm2"].astype(jnp.bfloat16)
    band = _build_band(p["wsp"], W).astype(jnp.bfloat16)        # (7, 2W, W)

    in_specs = [
        pl.BlockSpec((block_b, H, W, C), lambda b: (b, 0, 0, 0)),   # x
        pl.BlockSpec((C, CR), lambda b: (0, 0)),                    # wm1 (bf16)
        pl.BlockSpec((1, CR), lambda b: (0, 0)),                    # bm1
        pl.BlockSpec((CR, C), lambda b: (0, 0)),                    # wm2 (bf16)
        pl.BlockSpec((1, C), lambda b: (0, 0)),                     # bm2
        pl.BlockSpec((7, 2 * W, W), lambda b: (0, 0, 0)),           # band (bf16)
        pl.BlockSpec(memory_space=pltpu.MemorySpace.SMEM),          # bn params (2,)
    ]
    out_specs = pl.BlockSpec((block_b, H, W, C), lambda b: (b, 0, 0, 0))
    scratch_shapes = [
        pltpu.VMEM((block_b, H + 6, 2 * W), jnp.float32),  # padded ChannelPool planes
    ]

    return pl.pallas_call(
        cbam_kernel,
        out_shape=jax.ShapeDtypeStruct((B, H, W, C), x.dtype),
        grid_spec=pltpu.PrefetchScalarGridSpec(
            num_scalar_prefetch=0,
            grid=(nb,),
            in_specs=in_specs,
            out_specs=out_specs,
            scratch_shapes=scratch_shapes,
        ),
        compiler_params=pltpu.CompilerParams(
            dimension_semantics=("parallel",),
        ),
    )(x, wm1, p["bm1"], wm2, p["bm2"], band, p["bnp"])


def cbam_ref(x, p):
    """Pure-JAX reference (f32, HIGHEST precision)."""
    def mlp(v):
        h = jnp.maximum(jnp.dot(v, p["wm1"], precision=HP) + p["bm1"], 0.0)
        return jnp.dot(h, p["wm2"], precision=HP) + p["bm2"]

    avg = jnp.mean(x, axis=(1, 2))
    mx = jnp.max(x, axis=(1, 2))
    att = mlp(avg) + mlp(mx)
    yc = x * jax.nn.sigmoid(att)[:, None, None, :]

    cmax = jnp.max(yc, axis=-1)
    cmean = jnp.mean(yc, axis=-1)
    comp = jnp.stack([cmax, cmean], axis=-1)                   # (B,H,W,2)
    wsp_hwio = jnp.transpose(p["wsp"], (1, 2, 0))[..., None]   # (7,7,2,1)
    dn = ("NHWC", "HWIO", "NHWC")
    s = jax.lax.conv_general_dilated(comp, wsp_hwio, (1, 1), "SAME",
                                     dimension_numbers=dn, precision=HP)[..., 0]
    s = s * p["bnp"][0] + p["bnp"][1]
    return yc * jax.nn.sigmoid(s)[..., None]


def make_params(key, C=256, reduction=16):
    ks = jax.random.split(key, 8)
    CR = C // reduction
    f = jnp.float32
    p = {
        "wm1": jax.random.normal(ks[0], (C, CR), f) * (1.0 / np.sqrt(C)),
        "bm1": jax.random.normal(ks[1], (1, CR), f) * 0.1,
        "wm2": jax.random.normal(ks[2], (CR, C), f) * (1.0 / np.sqrt(CR)),
        "bm2": jax.random.normal(ks[3], (1, C), f) * 0.1,
        "wsp": jax.random.normal(ks[4], (2, 7, 7), f) * (1.0 / np.sqrt(2 * 49)),
    }
    # eval-mode BatchNorm2d(1): deterministic gamma/beta/running stats
    gamma, beta, rmean, rvar, eps = 0.9, 0.05, 0.1, 1.2, 1e-5
    bn_scale = gamma / np.sqrt(rvar + eps)
    bn_shift = beta - rmean * bn_scale
    p["bnp"] = jnp.array([bn_scale, bn_shift], f)
    return p


if __name__ == "__main__":
    # NHWC; corresponds to PyTorch NCHW input of shape (2, 256, 16, 16)
    B, H, W, C = 2, 16, 16, 256
    key = jax.random.PRNGKey(0)
    kx, kp = jax.random.split(key)
    x = jax.random.normal(kx, (B, H, W, C), jnp.float32)
    params = make_params(kp, C=C, reduction=16)

    out = jax.block_until_ready(cbam_pallas(x, params))
    ref = jax.block_until_ready(cbam_ref(x, params))
    err = float(jnp.max(jnp.abs(out - ref)))
    assert err < 5e-2, f"mismatch vs reference: max abs err {err}"

    print("KERNEL_OK")
</pallas_src>

<mosaic_0001>
module attributes {stable_mosaic.version = 11 : i64} {
  func.func @cbam_kernel(%arg0: i32, %arg1: memref<2x16x16x256xf32, #tpu.memory_space<vmem>>, %arg2: memref<256x16xbf16, #tpu.memory_space<vmem>>, %arg3: memref<1x16xf32, #tpu.memory_space<vmem>>, %arg4: memref<16x256xbf16, #tpu.memory_space<vmem>>, %arg5: memref<1x256xf32, #tpu.memory_space<vmem>>, %arg6: memref<7x32x16xbf16, #tpu.memory_space<vmem>>, %arg7: memref<2xf32, #tpu.memory_space<smem>>, %arg8: memref<2x16x16x256xf32, #tpu.memory_space<vmem>>, %arg9: memref<2x22x32xf32, #tpu.memory_space<vmem>>) attributes {dimension_semantics = [#tpu.dimension_semantics<parallel>], iteration_bounds = array<i64: 1>, scalar_prefetch = 0 : i64, scratch_operands = 1 : i64, tpu.core_type = #tpu.core_type<tc>, window_params = [{transform_indices = @transform_0, window_bounds = array<i64: 2, 16, 16, 256>}, {pipeline_mode = #tpu.pipeline_mode<synchronous>, transform_indices = @transform_1, window_bounds = array<i64: 256, 16>}, {pipeline_mode = #tpu.pipeline_mode<synchronous>, transform_indices = @transform_2, window_bounds = array<i64: 1, 16>}, {pipeline_mode = #tpu.pipeline_mode<synchronous>, transform_indices = @transform_3, window_bounds = array<i64: 16, 256>}, {pipeline_mode = #tpu.pipeline_mode<synchronous>, transform_indices = @transform_4, window_bounds = array<i64: 1, 256>}, {pipeline_mode = #tpu.pipeline_mode<synchronous>, transform_indices = @transform_5, window_bounds = array<i64: 7, 32, 16>}, {transform_indices = @transform_6, window_bounds = array<i64: 2>}, {transform_indices = @transform_7, window_bounds = array<i64: 2, 16, 16, 256>}]} {
    %c0 = arith.constant 0 : index
    %c0_0 = arith.constant 0 : index
    %c0_1 = arith.constant 0 : index
    %c0_2 = arith.constant 0 : index
    %0 = vector.load %arg1[%c0, %c0_0, %c0_1, %c0_2] : memref<2x16x16x256xf32, #tpu.memory_space<vmem>>, vector<2x16x16x256xf32>
    %1 = vector.shape_cast %0 : vector<2x16x16x256xf32> to vector<2x256x256xf32>
    %cst = arith.constant dense<0.000000e+00> : vector<2x256xf32>
    %2 = vector.multi_reduction <add>, %1, %cst [1] : vector<2x256x256xf32> to vector<2x256xf32>
    %cst_3 = arith.constant 2.560000e+02 : f32
    %3 = vector.broadcast %cst_3 : f32 to vector<2x256xf32>
    %4 = arith.divf %2, %3 : vector<2x256xf32>
    %cst_4 = arith.constant dense<0xFF800000> : vector<2x256xf32>
    %5 = vector.multi_reduction <maximumf>, %1, %cst_4 [1] : vector<2x256x256xf32> to vector<2x256xf32>
    %6 = tpu.concatenate %4, %5 in 0 : vector<2x256xf32>, vector<2x256xf32> -> vector<4x256xf32>
    %7 = arith.truncf %6 : vector<4x256xf32> to vector<4x256xbf16>
    %c0_5 = arith.constant 0 : index
    %c0_6 = arith.constant 0 : index
    %8 = vector.load %arg2[%c0_5, %c0_6] : memref<256x16xbf16, #tpu.memory_space<vmem>>, vector<256x16xbf16>
    %cst_7 = arith.constant dense<0.000000e+00> : vector<4x16xf32>
    %9 = tpu.matmul %7, %8, %cst_7 {dimension_numbers = #tpu.dot_dimension_numbers<[1], [0], [0], [1], [0, 0, 1, 1], [], []>} : vector<4x256xbf16>, vector<256x16xbf16>, vector<4x16xf32> -> vector<4x16xf32>
    %c0_8 = arith.constant 0 : index
    %c0_9 = arith.constant 0 : index
    %10 = vector.load %arg3[%c0_8, %c0_9] : memref<1x16xf32, #tpu.memory_space<vmem>>, vector<1x16xf32>
    %11 = vector.broadcast %10 : vector<1x16xf32> to vector<4x16xf32>
    %12 = arith.addf %9, %11 : vector<4x16xf32>
    %cst_10 = arith.constant 0.000000e+00 : f32
    %13 = vector.broadcast %cst_10 : f32 to vector<4x16xf32>
    %14 = arith.maximumf %12, %13 : vector<4x16xf32>
    %15 = arith.truncf %14 : vector<4x16xf32> to vector<4x16xbf16>
    %c0_11 = arith.constant 0 : index
    %c0_12 = arith.constant 0 : index
    %16 = vector.load %arg4[%c0_11, %c0_12] : memref<16x256xbf16, #tpu.memory_space<vmem>>, vector<16x256xbf16>
    %cst_13 = arith.constant dense<0.000000e+00> : vector<4x256xf32>
    %17 = tpu.matmul %15, %16, %cst_13 {dimension_numbers = #tpu.dot_dimension_numbers<[1], [0], [0], [1], [0, 0, 1, 1], [], []>} : vector<4x16xbf16>, vector<16x256xbf16>, vector<4x256xf32> -> vector<4x256xf32>
    %c0_14 = arith.constant 0 : index
    %c0_15 = arith.constant 0 : index
    %18 = vector.load %arg5[%c0_14, %c0_15] : memref<1x256xf32, #tpu.memory_space<vmem>>, vector<1x256xf32>
    %19 = vector.broadcast %18 : vector<1x256xf32> to vector<4x256xf32>
    %20 = arith.addf %17, %19 : vector<4x256xf32>
    %21 = vector.extract_strided_slice %20 {offsets = [0, 0], sizes = [2, 256], strides = [1, 1]} : vector<4x256xf32> to vector<2x256xf32>
    %22 = vector.extract_strided_slice %20 {offsets = [2, 0], sizes = [2, 256], strides = [1, 1]} : vector<4x256xf32> to vector<2x256xf32>
    %23 = arith.addf %21, %22 : vector<2x256xf32>
    %24 = arith.negf %23 : vector<2x256xf32>
    %25 = math.exp %24 : vector<2x256xf32>
    %cst_16 = arith.constant 1.000000e+00 : f32
    %26 = vector.broadcast %cst_16 : f32 to vector<2x256xf32>
    %27 = arith.addf %26, %25 : vector<2x256xf32>
    %28 = arith.divf %26, %27 : vector<2x256xf32>
    %29 = vector.shape_cast %28 : vector<2x256xf32> to vector<2x1x1x256xf32>
    %30 = vector.broadcast %29 : vector<2x1x1x256xf32> to vector<2x16x16x256xf32>
    %31 = arith.mulf %0, %30 : vector<2x16x16x256xf32>
    %cst_17 = arith.constant dense<0xFF800000> : vector<2x16x16xf32>
    %32 = vector.multi_reduction <maximumf>, %31, %cst_17 [3] : vector<2x16x16x256xf32> to vector<2x16x16xf32>
    %cst_18 = arith.constant dense<0.000000e+00> : vector<2x16x16xf32>
    %33 = vector.multi_reduction <add>, %31, %cst_18 [3] : vector<2x16x16x256xf32> to vector<2x16x16xf32>
    %cst_19 = arith.constant 2.560000e+02 : f32
    %34 = vector.broadcast %cst_19 : f32 to vector<2x16x16xf32>
    %35 = arith.divf %33, %34 : vector<2x16x16xf32>
    %cst_20 = arith.constant 0.000000e+00 : f32
    %36 = vector.broadcast %cst_20 : f32 to vector<2x22x32xf32>
    %c0_21 = arith.constant 0 : index
    %c0_22 = arith.constant 0 : index
    %c0_23 = arith.constant 0 : index
    %37 = vector.load %arg9[%c0_21, %c0_22, %c0_23] : memref<2x22x32xf32, #tpu.memory_space<vmem>>, vector<2x22x32xf32>
    tpu.vector_store %arg9[%c0_21, %c0_22, %c0_23], %36 {strides = array<i32>} : memref<2x22x32xf32, #tpu.memory_space<vmem>>, vector<2x22x32xf32>,
    %c0_24 = arith.constant 0 : index
    %c3 = arith.constant 3 : index
    %c0_25 = arith.constant 0 : index
    %38 = vector.load %arg9[%c0_24, %c3, %c0_25] : memref<2x22x32xf32, #tpu.memory_space<vmem>>, vector<2x16x16xf32>
    tpu.vector_store %arg9[%c0_24, %c3, %c0_25], %32 {strides = array<i32>} : memref<2x22x32xf32, #tpu.memory_space<vmem>>, vector<2x16x16xf32>,
    %c0_26 = arith.constant 0 : index
    %c3_27 = arith.constant 3 : index
    %c16 = arith.constant 16 : index
    %39 = vector.load %arg9[%c0_26, %c3_27, %c16] : memref<2x22x32xf32, #tpu.memory_space<vmem>>, vector<2x16x16xf32>
    tpu.vector_store %arg9[%c0_26, %c3_27, %c16], %35 {strides = array<i32>} : memref<2x22x32xf32, #tpu.memory_space<vmem>>, vector<2x16x16xf32>,
    %cst_28 = arith.constant 0.000000e+00 : f32
    %40 = vector.broadcast %cst_28 : f32 to vector<32x16xf32>
    %cst_29 = arith.constant 0.000000e+00 : f32
    %41 = vector.broadcast %cst_29 : f32 to vector<32x16xf32>
    %c0_30 = arith.constant 0 : index
    %c0_31 = arith.constant 0 : index
    %c0_32 = arith.constant 0 : index
    %42 = vector.load %arg9[%c0_30, %c0_31, %c0_32] : memref<2x22x32xf32, #tpu.memory_space<vmem>>, vector<2x16x32xf32>
    %43 = vector.shape_cast %42 : vector<2x16x32xf32> to vector<32x32xf32>
    %44 = arith.truncf %43 : vector<32x32xf32> to vector<32x32xbf16>
    %c0_33 = arith.constant 0 : index
    %c0_34 = arith.constant 0 : index
    %c0_35 = arith.constant 0 : index
    %45 = vector.load %arg6[%c0_33, %c0_34, %c0_35] : memref<7x32x16xbf16, #tpu.memory_space<vmem>>, vector<1x32x16xbf16>
    %46 = vector.shape_cast %45 : vector<1x32x16xbf16> to vector<32x16xbf16>
    %cst_36 = arith.constant dense<0.000000e+00> : vector<32x16xf32>
    %47 = tpu.matmul %44, %46, %cst_36 {dimension_numbers = #tpu.dot_dimension_numbers<[1], [0], [0], [1], [0, 0, 1, 1], [], []>} : vector<32x32xbf16>, vector<32x16xbf16>, vector<32x16xf32> -> vector<32x16xf32>
    %48 = arith.addf %40, %47 : vector<32x16xf32>
    %c0_37 = arith.constant 0 : index
    %c1 = arith.constant 1 : index
    %c0_38 = arith.constant 0 : index
    %49 = vector.load %arg9[%c0_37, %c1, %c0_38] : memref<2x22x32xf32, #tpu.memory_space<vmem>>, vector<2x16x32xf32>
    %50 = vector.shape_cast %49 : vector<2x16x32xf32> to vector<32x32xf32>
    %51 = arith.truncf %50 : vector<32x32xf32> to vector<32x32xbf16>
    %c1_39 = arith.constant 1 : index
    %c0_40 = arith.constant 0 : index
    %c0_41 = arith.constant 0 : index
    %52 = vector.load %arg6[%c1_39, %c0_40, %c0_41] : memref<7x32x16xbf16, #tpu.memory_space<vmem>>, vector<1x32x16xbf16>
    %53 = vector.shape_cast %52 : vector<1x32x16xbf16> to vector<32x16xbf16>
    %cst_42 = arith.constant dense<0.000000e+00> : vector<32x16xf32>
    %54 = tpu.matmul %51, %53, %cst_42 {dimension_numbers = #tpu.dot_dimension_numbers<[1], [0], [0], [1], [0, 0, 1, 1], [], []>} : vector<32x32xbf16>, vector<32x16xbf16>, vector<32x16xf32> -> vector<32x16xf32>
    %55 = arith.addf %41, %54 : vector<32x16xf32>
    %c0_43 = arith.constant 0 : index
    %c2 = arith.constant 2 : index
    %c0_44 = arith.constant 0 : index
    %56 = vector.load %arg9[%c0_43, %c2, %c0_44] : memref<2x22x32xf32, #tpu.memory_space<vmem>>, vector<2x16x32xf32>
    %57 = vector.shape_cast %56 : vector<2x16x32xf32> to vector<32x32xf32>
    %58 = arith.truncf %57 : vector<32x32xf32> to vector<32x32xbf16>
    %c2_45 = arith.constant 2 : index
    %c0_46 = arith.constant 0 : index
    %c0_47 = arith.constant 0 : index
    %59 = vector.load %arg6[%c2_45, %c0_46, %c0_47] : memref<7x32x16xbf16, #tpu.memory_space<vmem>>, vector<1x32x16xbf16>
    %60 = vector.shape_cast %59 : vector<1x32x16xbf16> to vector<32x16xbf16>
    %cst_48 = arith.constant dense<0.000000e+00> : vector<32x16xf32>
    %61 = tpu.matmul %58, %60, %cst_48 {dimension_numbers = #tpu.dot_dimension_numbers<[1], [0], [0], [1], [0, 0, 1, 1], [], []>} : vector<32x32xbf16>, vector<32x16xbf16>, vector<32x16xf32> -> vector<32x16xf32>
    %62 = arith.addf %48, %61 : vector<32x16xf32>
    %c0_49 = arith.constant 0 : index
    %c3_50 = arith.constant 3 : index
    %c0_51 = arith.constant 0 : index
    %63 = vector.load %arg9[%c0_49, %c3_50, %c0_51] : memref<2x22x32xf32, #tpu.memory_space<vmem>>, vector<2x16x32xf32>
    %64 = vector.shape_cast %63 : vector<2x16x32xf32> to vector<32x32xf32>
    %65 = arith.truncf %64 : vector<32x32xf32> to vector<32x32xbf16>
    %c3_52 = arith.constant 3 : index
    %c0_53 = arith.constant 0 : index
    %c0_54 = arith.constant 0 : index
    %66 = vector.load %arg6[%c3_52, %c0_53, %c0_54] : memref<7x32x16xbf16, #tpu.memory_space<vmem>>, vector<1x32x16xbf16>
    %67 = vector.shape_cast %66 : vector<1x32x16xbf16> to vector<32x16xbf16>
    %cst_55 = arith.constant dense<0.000000e+00> : vector<32x16xf32>
    %68 = tpu.matmul %65, %67, %cst_55 {dimension_numbers = #tpu.dot_dimension_numbers<[1], [0], [0], [1], [0, 0, 1, 1], [], []>} : vector<32x32xbf16>, vector<32x16xbf16>, vector<32x16xf32> -> vector<32x16xf32>
    %69 = arith.addf %55, %68 : vector<32x16xf32>
    %c0_56 = arith.constant 0 : index
    %c4 = arith.constant 4 : index
    %c0_57 = arith.constant 0 : index
    %70 = vector.load %arg9[%c0_56, %c4, %c0_57] : memref<2x22x32xf32, #tpu.memory_space<vmem>>, vector<2x16x32xf32>
    %71 = vector.shape_cast %70 : vector<2x16x32xf32> to vector<32x32xf32>
    %72 = arith.truncf %71 : vector<32x32xf32> to vector<32x32xbf16>
    %c4_58 = arith.constant 4 : index
    %c0_59 = arith.constant 0 : index
    %c0_60 = arith.constant 0 : index
    %73 = vector.load %arg6[%c4_58, %c0_59, %c0_60] : memref<7x32x16xbf16, #tpu.memory_space<vmem>>, vector<1x32x16xbf16>
    %74 = vector.shape_cast %73 : vector<1x32x16xbf16> to vector<32x16xbf16>
    %cst_61 = arith.constant dense<0.000000e+00> : vector<32x16xf32>
    %75 = tpu.matmul %72, %74, %cst_61 {dimension_numbers = #tpu.dot_dimension_numbers<[1], [0], [0], [1], [0, 0, 1, 1], [], []>} : vector<32x32xbf16>, vector<32x16xbf16>, vector<32x16xf32> -> vector<32x16xf32>
    %76 = arith.addf %62, %75 : vector<32x16xf32>
    %c0_62 = arith.constant 0 : index
    %c5 = arith.constant 5 : index
    %c0_63 = arith.constant 0 : index
    %77 = vector.load %arg9[%c0_62, %c5, %c0_63] : memref<2x22x32xf32, #tpu.memory_space<vmem>>, vector<2x16x32xf32>
    %78 = vector.shape_cast %77 : vector<2x16x32xf32> to vector<32x32xf32>
    %79 = arith.truncf %78 : vector<32x32xf32> to vector<32x32xbf16>
    %c5_64 = arith.constant 5 : index
    %c0_65 = arith.constant 0 : index
    %c0_66 = arith.constant 0 : index
    %80 = vector.load %arg6[%c5_64, %c0_65, %c0_66] : memref<7x32x16xbf16, #tpu.memory_space<vmem>>, vector<1x32x16xbf16>
    %81 = vector.shape_cast %80 : vector<1x32x16xbf16> to vector<32x16xbf16>
    %cst_67 = arith.constant dense<0.000000e+00> : vector<32x16xf32>
    %82 = tpu.matmul %79, %81, %cst_67 {dimension_numbers = #tpu.dot_dimension_numbers<[1], [0], [0], [1], [0, 0, 1, 1], [], []>} : vector<32x32xbf16>, vector<32x16xbf16>, vector<32x16xf32> -> vector<32x16xf32>
    %83 = arith.addf %69, %82 : vector<32x16xf32>
    %c0_68 = arith.constant 0 : index
    %c6 = arith.constant 6 : index
    %c0_69 = arith.constant 0 : index
    %84 = vector.load %arg9[%c0_68, %c6, %c0_69] : memref<2x22x32xf32, #tpu.memory_space<vmem>>, vector<2x16x32xf32>
    %85 = vector.shape_cast %84 : vector<2x16x32xf32> to vector<32x32xf32>
    %86 = arith.truncf %85 : vector<32x32xf32> to vector<32x32xbf16>
    %c6_70 = arith.constant 6 : index
    %c0_71 = arith.constant 0 : index
    %c0_72 = arith.constant 0 : index
    %87 = vector.load %arg6[%c6_70, %c0_71, %c0_72] : memref<7x32x16xbf16, #tpu.memory_space<vmem>>, vector<1x32x16xbf16>
    %88 = vector.shape_cast %87 : vector<1x32x16xbf16> to vector<32x16xbf16>
    %cst_73 = arith.constant dense<0.000000e+00> : vector<32x16xf32>
    %89 = tpu.matmul %86, %88, %cst_73 {dimension_numbers = #tpu.dot_dimension_numbers<[1], [0], [0], [1], [0, 0, 1, 1], [], []>} : vector<32x32xbf16>, vector<32x16xbf16>, vector<32x16xf32> -> vector<32x16xf32>
    %90 = arith.addf %76, %89 : vector<32x16xf32>
    %91 = arith.addf %90, %83 : vector<32x16xf32>
    %92 = vector.shape_cast %91 : vector<32x16xf32> to vector<2x16x16xf32>
    %c0_74 = arith.constant 0 : index
    %93 = memref.load %arg7[%c0_74] : memref<2xf32, #tpu.memory_space<smem>>
    %94 = vector.broadcast %93 : f32 to vector<2x16x16xf32>
    %95 = arith.mulf %92, %94 : vector<2x16x16xf32>
    %c1_75 = arith.constant 1 : index
    %96 = memref.load %arg7[%c1_75] : memref<2xf32, #tpu.memory_space<smem>>
    %97 = vector.broadcast %96 : f32 to vector<2x16x16xf32>
    %98 = arith.addf %95, %97 : vector<2x16x16xf32>
    %99 = arith.negf %98 : vector<2x16x16xf32>
    %100 = math.exp %99 : vector<2x16x16xf32>
    %cst_76 = arith.constant 1.000000e+00 : f32
    %101 = vector.broadcast %cst_76 : f32 to vector<2x16x16xf32>
    %102 = arith.addf %101, %100 : vector<2x16x16xf32>
    %103 = arith.divf %101, %102 : vector<2x16x16xf32>
    %104 = vector.shape_cast %103 : vector<2x16x16xf32> to vector<2x16x16x1xf32>
    %105 = vector.broadcast %104 : vector<2x16x16x1xf32> to vector<2x16x16x256xf32>
    %106 = arith.mulf %31, %105 : vector<2x16x16x256xf32>
    %c0_77 = arith.constant 0 : index
    %c0_78 = arith.constant 0 : index
    %c0_79 = arith.constant 0 : index
    %c0_80 = arith.constant 0 : index
    %107 = vector.load %arg8[%c0_77, %c0_78, %c0_79, %c0_80] : memref<2x16x16x256xf32, #tpu.memory_space<vmem>>, vector<2x16x16x256xf32>
    tpu.vector_store %arg8[%c0_77, %c0_78, %c0_79, %c0_80], %106 {strides = array<i32>} : memref<2x16x16x256xf32, #tpu.memory_space<vmem>>, vector<2x16x16x256xf32>,
    return
  }
  func.func @transform_0(%arg0: i32) -> (i32, i32, i32, i32) {
    %c0_i32 = arith.constant 0 : i32
    %c0_i32_0 = arith.constant 0 : i32
    %c0_i32_1 = arith.constant 0 : i32
    %c0_i32_2 = arith.constant 0 : i32
    return %arg0, %c0_i32, %c0_i32_0, %c0_i32_1 : i32, i32, i32, i32
  }
  func.func @transform_1(%arg0: i32) -> (i32, i32) {
    %c0_i32 = arith.constant 0 : i32
    %c0_i32_0 = arith.constant 0 : i32
    %c0_i32_1 = arith.constant 0 : i32
    return %c0_i32, %c0_i32_0 : i32, i32
  }
  func.func @transform_2(%arg0: i32) -> (i32, i32) {
    %c0_i32 = arith.constant 0 : i32
    %c0_i32_0 = arith.constant 0 : i32
    %c0_i32_1 = arith.constant 0 : i32
    return %c0_i32, %c0_i32_0 : i32, i32
  }
  func.func @transform_3(%arg0: i32) -> (i32, i32) {
    %c0_i32 = arith.constant 0 : i32
    %c0_i32_0 = arith.constant 0 : i32
    %c0_i32_1 = arith.constant 0 : i32
    return %c0_i32, %c0_i32_0 : i32, i32
  }
  func.func @transform_4(%arg0: i32) -> (i32, i32) {
    %c0_i32 = arith.constant 0 : i32
    %c0_i32_0 = arith.constant 0 : i32
    %c0_i32_1 = arith.constant 0 : i32
    return %c0_i32, %c0_i32_0 : i32, i32
  }
  func.func @transform_5(%arg0: i32) -> (i32, i32, i32) {
    %c0_i32 = arith.constant 0 : i32
    %c0_i32_0 = arith.constant 0 : i32
    %c0_i32_1 = arith.constant 0 : i32
    %c0_i32_2 = arith.constant 0 : i32
    return %c0_i32, %c0_i32_0, %c0_i32_1 : i32, i32, i32
  }
  func.func @transform_6(%arg0: i32) -> i32 {
    %c0_i32 = arith.constant 0 : i32
    %c0_i32_0 = arith.constant 0 : i32
    return %c0_i32 : i32
  }
  func.func @transform_7(%arg0: i32) -> (i32, i32, i32, i32) {
    %c0_i32 = arith.constant 0 : i32
    %c0_i32_0 = arith.constant 0 : i32
    %c0_i32_1 = arith.constant 0 : i32
    %c0_i32_2 = arith.constant 0 : i32
    return %arg0, %c0_i32, %c0_i32_0, %c0_i32_1 : i32, i32, i32, i32
  }
}

</mosaic_0001>

<bundles_post_ra>
// kernel: tpu_custom_call.1
= control target key start
LH: loop header
LB: loop body
LE: loop exit
PB: predicated region body
PF: predicated region fallthrough
CT: control target
= control target key end

     0   :  { %12 = vsyncpa [#allocation4], 0  ;;  %s5222_s0 = inlined_call_operand.hbm [shape: f32[2,16,16,256], index: 0, kind: input, shape index: {}]   ;;  %s5223_s1 = inlined_call_operand.vmem [shape: bf16[256,16], index: 1, kind: input, shape index: {}]   ;;  %s5224_s2 = inlined_call_operand.vmem [shape: f32[1,16], index: 2, kind: input, shape index: {}]   ;;  %s5225_s3 = inlined_call_operand.vmem [shape: bf16[16,256], index: 3, kind: input, shape index: {}]   ;;  %s5226_s4 = inlined_call_operand.vmem [shape: f32[1,256], index: 4, kind: input, shape index: {}]   ;;  %s5227_s5 = inlined_call_operand.vmem [shape: bf16[7,32,16], index: 5, kind: input, shape index: {}]   ;;  %s5228_s6 = inlined_call_operand.vmem [shape: f32[2], index: 6, kind: input, shape index: {}]   ;;  %s5229_s7 = inlined_call_operand.hbm [shape: f32[2,16,16,256], index: 7, kind: output, shape index: {}]  }
   0x1   :  { %13 = vsyncpa [#allocation6], 0 }
   0x2   :  { %14 = vsyncpa [#allocation5], 0  ;;  %s19_s26 = sshll.u32 %s5222_s0, 4  ;;  %s3333_s27 = smov [#allocation3]   ;;  %s20_s26 = int_to_ptr.hbm [resolvable:$true] %s19_s26 }
   0x3   :  { %s21_s28 = sshll.u32 %s3333_s27, 4  ;;  %s43_s8 = sshll.u32 %s5228_s6, 4  ;;  %s22_s28 = int_to_ptr.vmem [resolvable:$true] %s21_s28  ;;  %s44_s8 = int_to_ptr.vmem [resolvable:$true] %s43_s8 }
   0x4   :  { %s3334_s9 = smov 256   ;;  %s3335_s10 = smov 16  }
   0x5   :  { %27 = dma.hbm_to_vmem [thread:$0]  %s20_s26, 16384, %s22_s28, [#allocation4], %s3334_s9, %s3334_s9, %s3335_s10  }
   0x6   :  { %s3336_s11 = smov [#allocation7]  }
   0x7   :  { %46 = dma.vmem_to_smem %s44_s8, 16, %s3336_s11, [#allocation6]  }
   0x8   :  { %3327 = dma.done.wait [#allocation4], 16384  }
   0x9   :  { %3328 = vsyncadd [#allocation4], 4294950912 }
   0xa   :  { %3329 = dma.done.wait [#allocation6], 16  }
   0xb   :  { %3330 = vsyncadd [#allocation6], 4294967280 }
   0xc   :  { %55 = sfence }
   0xd   :  { %v3086_v0 = vld [vmem:[%s5223_s1 + $0x38] sm:$0xff]  ;;  %v3085_v2 = vld [vmem:[%s5223_s1 + $0x30] sm:$0xff]  ;;  %v3084_v4 = vld [vmem:[%s5223_s1 + $0x28] sm:$0xff]  ;;  %vm505_vm1 = vcmask 1043459   ;;  %vm496_vm2 = vcmask 1041409   ;;  %vm510_vm3 = vcmask 1041408  }
   0xe   :  { %v3094_v1 = vld [vmem:[%s5223_s1 + $0x78] sm:$0xff]  ;;  %647 = vmatpush.bf16.msra.mxu0 %v3086_v0  ;;  %v3093_v3 = vld [vmem:[%s5223_s1 + $0x70] sm:$0xff]  ;;  %v3092_v5 = vld [vmem:[%s5223_s1 + $0x68] sm:$0xff]  ;;  %vm693_vm4 = vcmask 130048   ;;  %vm772_vm12 = vcmask 1040384   ;;  %vm1360_vm14 = vcmask 261120  }
   0xf   :  { %660 = vmatpush.bf16.msra.mxu1 %v3094_v1  ;;  %v3407_v6 = vld [vmem:[#allocation3] sm:$0xff]  ;;  %v3409_v7 = vld [vmem:[#allocation3 + $0x10] sm:$0xff]  ;;  %v3082_v21 = vld [vmem:[%s5223_s1 + $0x18] sm:$0xff]  ;;  %vm1437_vm15 = vcmask 130112   ;;  %s3339_s29 = smov [#allocation8]   ;;  %s2890_s0 = sshll.u32 %s5229_s7, 4  ;;  %s2891_s0 = int_to_ptr.hbm [resolvable:$true] %s2890_s0 }
  0x10   :  { %v61_v8 = vld [vmem:[#allocation3 + $0x20] sm:$0xff]  ;;  %v63_v9 = vld [vmem:[#allocation3 + $0x30] sm:$0xff]  ;;  %v185_v11 = vadd.f32 %v3409_v7, %v3407_v6  ;;  %v3090_v22 = vld [vmem:[%s5223_s1 + $0x58] sm:$0xff]  ;;  %s2888_s30 = sshll.u32 %s3339_s29, 4  ;;  %s2889_s30 = int_to_ptr.vmem [resolvable:$true] %s2888_s30 }
  0x11   :  { %v65_v10 = vld [vmem:[#allocation3 + $0x40] sm:$0xff]  ;;  %v345_v12 = vmax.f32 %v63_v9, %v61_v8  ;;  %v67_v13 = vld [vmem:[#allocation3 + $0x50] sm:$0xff]  ;;  %v3080_v50 = vld [vmem:[%s5223_s1 + $0x8] sm:$0xff] }
  0x12   :  { %648 = vmatpush.bf16.msra.mxu0 %v3085_v2  ;;  %v186_v14 = vadd.f32 %v185_v11, %v61_v8  ;;  %v3083_v16 = vld [vmem:[%s5223_s1 + $0x20] sm:$0xff]  ;;  %v69_v18 = vld [vmem:[#allocation3 + $0x60] sm:$0xff]  ;;  %v3088_v55 = vld [vmem:[%s5223_s1 + $0x48] sm:$0xff] }
  0x13   :  { %661 = vmatpush.bf16.msra.mxu1 %v3093_v3  ;;  %v346_v15 = vmax.f32 %v345_v12, %v65_v10  ;;  %v3091_v17 = vld [vmem:[%s5223_s1 + $0x60] sm:$0xff]  ;;  %v73_v26 = vld [vmem:[#allocation3 + $0x80] sm:$0xff]  ;;  %v3443_v62 = vld [vmem:[#allocation3 + $0x8] sm:$0xff] }
  0x14   :  { %v187_v19 = vadd.f32 %v186_v14, %v63_v9  ;;  %v71_v23 = vld [vmem:[#allocation3 + $0x70] sm:$0xff]  ;;  %v3425_v27 = vld [vmem:[#allocation3 + $0x200] sm:$0xff]  ;;  %v3445_v63 = vld [vmem:[#allocation3 + $0x18] sm:$0xff] }
  0x15   :  { %v347_v20 = vmax.f32 %v346_v15, %v67_v13  ;;  %v3427_v28 = vld [vmem:[#allocation3 + $0x210] sm:$0xff]  ;;  %v125_v29 = vld [vmem:[#allocation3 + $0x220] sm:$0xff]  ;;  %v3447_v0 = vld [vmem:[#allocation3 + $0x28] sm:$0xff] }
  0x16   :  { %649 = vmatpush.bf16.msra.mxu0 %v3084_v4  ;;  %v188_v24 = vadd.f32 %v187_v19, %v65_v10  ;;  %v127_v30 = vld [vmem:[#allocation3 + $0x230] sm:$0xff]  ;;  %v129_v31 = vld [vmem:[#allocation3 + $0x240] sm:$0xff]  ;;  %v259_v33 = vadd.f32 %v3427_v28, %v3425_v27  ;;  %v3449_v3 = vld [vmem:[#allocation3 + $0x38] sm:$0xff]  ;;  %v222_v4 = vadd.f32 %v3445_v63, %v3443_v62 }
  0x17   :  { %662 = vmatpush.bf16.msra.mxu1 %v3092_v5  ;;  %v348_v25 = vmax.f32 %v347_v20, %v69_v18  ;;  %v419_v35 = vmax.f32 %v127_v30, %v125_v29  ;;  %v75_v36 = vld [vmem:[#allocation3 + $0x90] sm:$0xff]  ;;  %v3081_v40 = vld [vmem:[%s5223_s1 + $0x10] sm:$0xff]  ;;  %v382_v11 = vmax.f32 %v3449_v3, %v3447_v0  ;;  %v3455_v12 = vld [vmem:[#allocation3 + $0x48] sm:$0xff] }
  0x18   :  { %v189_v32 = vadd.f32 %v188_v24, %v67_v13  ;;  %v131_v37 = vld [vmem:[#allocation3 + $0x250] sm:$0xff]  ;;  %v260_v39 = vadd.f32 %v259_v33, %v125_v29  ;;  %v3089_v43 = vld [vmem:[%s5223_s1 + $0x50] sm:$0xff] }
  0x19   :  { %v349_v34 = vmax.f32 %v348_v25, %v71_v23  ;;  %v420_v42 = vmax.f32 %v419_v35, %v129_v31  ;;  %v77_v44 = vld [vmem:[#allocation3 + $0xa0] sm:$0xff]  ;;  %v79_v51 = vld [vmem:[#allocation3 + $0xb0] sm:$0xff] }
  0x1a   :  { %650 = vmatpush.bf16.msra.mxu0 %v3083_v16  ;;  %v190_v38 = vadd.f32 %v189_v32, %v69_v18  ;;  %v133_v45 = vld [vmem:[#allocation3 + $0x260] sm:$0xff]  ;;  %v261_v47 = vadd.f32 %v260_v39, %v127_v30  ;;  %v135_v52 = vld [vmem:[#allocation3 + $0x270] sm:$0xff]  ;;  %v3460_v16 = vld [vmem:[#allocation3 + $0x58] sm:$0xff] }
  0x1b   :  { %663 = vmatpush.bf16.msra.mxu1 %v3091_v17  ;;  %v350_v41 = vmax.f32 %v349_v34, %v73_v26  ;;  %v421_v49 = vmax.f32 %v420_v42, %v131_v37  ;;  %v81_v57 = vld [vmem:[#allocation3 + $0xc0] sm:$0xff]  ;;  %v83_v5 = vld [vmem:[#allocation3 + $0xd0] sm:$0xff]  ;;  %v223_v17 = vadd.f32 %v222_v4, %v3447_v0 }
  0x1c   :  { %v191_v46 = vadd.f32 %v190_v38, %v71_v23  ;;  %v262_v54 = vadd.f32 %v261_v47, %v129_v31  ;;  %v137_v59 = vld [vmem:[#allocation3 + $0x280] sm:$0xff]  ;;  %v139_v8 = vld [vmem:[#allocation3 + $0x290] sm:$0xff]  ;;  %v383_v23 = vmax.f32 %v382_v11, %v3455_v12 }
  0x1d   :  { %v351_v48 = vmax.f32 %v350_v41, %v75_v36  ;;  %v422_v58 = vmax.f32 %v421_v49, %v133_v45  ;;  %v3079_v13 = vld [vmem:[%s5223_s1] sm:$0xff]  ;;  %v85_v19 = vld [vmem:[#allocation3 + $0xe0] sm:$0xff]  ;;  %v224_v29 = vadd.f32 %v223_v17, %v3449_v3 }
  0x1e   :  { %651 = vmatpush.bf16.msra.mxu0 %v3082_v21  ;;  %v192_v53 = vadd.f32 %v191_v46, %v73_v26  ;;  %v263_v61 = vadd.f32 %v262_v54, %v131_v37  ;;  %v3087_v18 = vld [vmem:[%s5223_s1 + $0x40] sm:$0xff]  ;;  %v141_v20 = vld [vmem:[#allocation3 + $0x2a0] sm:$0xff]  ;;  %v3467_v26 = vld [vmem:[#allocation3 + $0x68] sm:$0xff]  ;;  %v384_v34 = vmax.f32 %v383_v23, %v3460_v16 }
  0x1f   :  { %664 = vmatpush.bf16.msra.mxu1 %v3090_v22  ;;  %v352_v56 = vmax.f32 %v351_v48, %v77_v44  ;;  %v423_v2 = vmax.f32 %v422_v58, %v135_v52  ;;  %v87_v30 = vld [vmem:[#allocation3 + $0xf0] sm:$0xff]  ;;  %v3471_v37 = vld [vmem:[#allocation3 + $0x78] sm:$0xff]  ;;  %v225_v38 = vadd.f32 %v224_v29, %v3455_v12  ;;  %v3474_v39 = vld [vmem:[#allocation3 + $0x100] sm:$0xff] }
  0x20   :  { %v193_v60 = vadd.f32 %v192_v53, %v75_v36  ;;  %v264_v10 = vadd.f32 %v263_v61, %v133_v45  ;;  %v143_v31 = vld [vmem:[#allocation3 + $0x2b0] sm:$0xff]  ;;  %5401 = vst [vmem:[#allocation12_spill] sm:$0xff] %v3474_v39  ;;  %v3477_v46 = vld [vmem:[#allocation3 + $0x88] sm:$0xff]  ;;  %v149_v58 = vld [vmem:[#allocation3 + $0x2e0] sm:$0xff] }
  0x21   :  { %v353_v1 = vmax.f32 %v352_v56, %v79_v51  ;;  %v424_v15 = vmax.f32 %v423_v2, %v137_v59  ;;  %v226_v47 = vadd.f32 %v225_v38, %v3460_v16  ;;  %v3480_v48 = vld [vmem:[#allocation3 + $0x110] sm:$0xff]  ;;  %v3510_v23 = vld [vmem:[#allocation3 + $0x140] sm:$0xff]  ;;  %v3522_v38 = vld [vmem:[#allocation3 + $0x218] sm:$0xff] }
  0x22   :  { %652 = vmatpush.bf16.msra.mxu0 %v3081_v40  ;;  %v194_v9 = vadd.f32 %v193_v60, %v77_v44  ;;  %v265_v22 = vadd.f32 %v264_v10, %v135_v52  ;;  %v145_v40 = vld [vmem:[#allocation3 + $0x2c0] sm:$0xff]  ;;  %5402 = vst [vmem:[#allocation13_spill] sm:$0xff] %v3480_v48  ;;  %v147_v49 = vld [vmem:[#allocation3 + $0x2d0] sm:$0xff] }
  0x23   :  { %665 = vmatpush.bf16.msra.mxu1 %v3089_v43  ;;  %v354_v14 = vmax.f32 %v353_v1, %v81_v57  ;;  %v425_v25 = vmax.f32 %v424_v15, %v139_v8  ;;  %v385_v43 = vmax.f32 %v384_v34, %v3467_v26  ;;  %v227_v56 = vadd.f32 %v226_v47, %v3467_v26  ;;  %v3490_v1 = vld [vmem:[#allocation3 + $0xa8] sm:$0xff]  ;;  %v3500_v11 = vld [vmem:[#allocation3 + $0x130] sm:$0xff] }
  0x24   :  { %v195_v21 = vadd.f32 %v194_v9, %v79_v51  ;;  %v266_v33 = vadd.f32 %v265_v22, %v137_v59  ;;  %v3497_v9 = vld [vmem:[#allocation3 + $0x248] sm:$0xff]  ;;  %5404 = vst [vmem:[#allocation15_spill] sm:$0xff] %v3500_v11  ;;  %v3518_v34 = vld [vmem:[#allocation3 + $0x150] sm:$0xff] }
  0x25   :  { %v355_v24 = vmax.f32 %v354_v14, %v83_v5  ;;  %v426_v36 = vmax.f32 %v425_v25, %v141_v20  ;;  %v386_v52 = vmax.f32 %v385_v43, %v3471_v37  ;;  %v228_v10 = vadd.f32 %v227_v56, %v3471_v37  ;;  %5405 = vst [vmem:[#allocation16_spill] sm:$0xff] %v3510_v23  ;;  %v3529_v47 = vld [vmem:[#allocation3 + $0x268] sm:$0xff] }
  0x26   :  { %653 = vmatpush.bf16.msra.mxu0 %v3080_v50  ;;  %v196_v32 = vadd.f32 %v195_v21, %v81_v57  ;;  %v267_v42 = vadd.f32 %v266_v33, %v139_v8  ;;  %v3487_v57 = vld [vmem:[#allocation3 + $0x120] sm:$0xff]  ;;  %v3495_v8 = vld [vmem:[#allocation3 + $0x238] sm:$0xff]  ;;  %5406 = vst [vmem:[#allocation17_spill] sm:$0xff] %v3518_v34 }
  0x27   :  { %666 = vmatpush.bf16.msra.mxu1 %v3088_v55  ;;  %v356_v35 = vmax.f32 %v355_v24, %v85_v19  ;;  %v427_v45 = vmax.f32 %v426_v36, %v143_v31  ;;  %v3484_v55 = vld [vmem:[#allocation3 + $0x98] sm:$0xff]  ;;  %5403 = vst [vmem:[#allocation14_spill] sm:$0xff] %v3487_v57  ;;  %v387_v61 = vmax.f32 %v386_v52, %v3477_v46  ;;  %v153_v24 = vld [vmem:[#allocation3 + $0x300] sm:$0xff]  ;;  %v3520_v36 = vld [vmem:[#allocation3 + $0x208] sm:$0xff] }
  0x28   :  { %v197_v41 = vadd.f32 %v196_v32, %v83_v5  ;;  %v268_v51 = vadd.f32 %v267_v42, %v141_v20  ;;  %v3493_v5 = vld [vmem:[#allocation3 + $0x228] sm:$0xff]  ;;  %v3507_v21 = vld [vmem:[#allocation3 + $0xb8] sm:$0xff]  ;;  %v229_v22 = vadd.f32 %v228_v10, %v3477_v46 }
  0x29   :  { %v357_v44 = vmax.f32 %v356_v35, %v87_v30  ;;  %v428_v54 = vmax.f32 %v427_v45, %v145_v40  ;;  %v388_v17 = vmax.f32 %v387_v61, %v3484_v55  ;;  %v3515_v32 = vld [vmem:[#allocation3 + $0x258] sm:$0xff]  ;;  %v3527_v45 = vld [vmem:[#allocation3 + $0xc8] sm:$0xff]  ;;  %v296_v61 = vadd.f32 %v3522_v38, %v3520_v36 }
  0x2a   :  { %654 = vmatpush.bf16.msra.mxu0 %v3079_v13  ;;  %v198_v50 = vadd.f32 %v197_v41, %v85_v19  ;;  %v269_v60 = vadd.f32 %v268_v51, %v143_v31  ;;  %v151_v13 = vld [vmem:[#allocation3 + $0x2f0] sm:$0xff]  ;;  %5407 = vst [vmem:[#allocation18_spill] sm:$0xff] %v3527_v45 }
  0x2b   :  { %667 = vmatpush.bf16.msra.mxu1 %v3087_v18  ;;  %v358_v53 = vmax.f32 %v357_v44, %v3474_v39  ;;  %v429_v4 = vmax.f32 %v428_v54, %v147_v49  ;;  %v456_v18 = vmax.f32 %v3495_v8, %v3493_v5  ;;  %v155_v41 = vld [vmem:[#allocation3 + $0x310] sm:$0xff]  ;;  %v157_v54 = vld [vmem:[#allocation3 + $0x320] sm:$0xff] }
  0x2c   :  { %v199_v59 = vadd.f32 %v198_v50, %v87_v30  ;;  %v270_v15 = vadd.f32 %v269_v60, %v145_v40  ;;  %v389_v30 = vmax.f32 %v388_v17, %v3490_v1  ;;  %v230_v40 = vadd.f32 %v229_v22, %v3484_v55  ;;  %v3532_v50 = vld [vmem:[#allocation3 + $0x160] sm:$0xff]  ;;  %v3539_v60 = vld [vmem:[#allocation3 + $0x278] sm:$0xff]  ;;  %v159_v17 = vld [vmem:[#allocation3 + $0x330] sm:$0xff] }
  0x2d   :  { %v359_v2 = vmax.f32 %v358_v53, %v3480_v48  ;;  %v430_v20 = vmax.f32 %v429_v4, %v149_v58  ;;  %v457_v31 = vmax.f32 %v456_v18, %v3497_v9  ;;  %5408 = vst [vmem:[#allocation19_spill] sm:$0xff] %v3532_v50 }
  0x2e   :  { %v200_v14 = vadd.f32 %v199_v59, %v3474_v39  ;;  %v271_v29 = vadd.f32 %v270_v15, %v147_v49  ;;  %v390_v44 = vmax.f32 %v389_v30, %v3507_v21  ;;  %v231_v53 = vadd.f32 %v230_v40, %v3490_v1  ;;  %v3546_v15 = vld [vmem:[#allocation3 + $0x170] sm:$0xff]  ;;  %v3629_v39 = vld [vmem:[#allocation3 + $0x1e0] sm:$0xff] }
  0x2f   :  { %v360_v19 = vmax.f32 %v359_v2, %v3487_v57  ;;  %v431_v35 = vmax.f32 %v430_v20, %v151_v13  ;;  %v458_v52 = vmax.f32 %v457_v31, %v3515_v32  ;;  %5410 = vst [vmem:[#allocation21_spill] sm:$0xff] %v3546_v15  ;;  %v3555_v31 = vld [vmem:[#allocation3 + $0x288] sm:$0xff] }
  0x30   :  { %v201_v25 = vadd.f32 %v200_v14, %v3480_v48  ;;  %v272_v43 = vadd.f32 %v271_v29, %v149_v58  ;;  %v3537_v58 = vld [vmem:[#allocation3 + $0xd8] sm:$0xff]  ;;  %v391_v10 = vmax.f32 %v390_v44, %v3527_v45  ;;  %v232_v20 = vadd.f32 %v231_v53, %v3507_v21  ;;  %5420 = vst [vmem:[#allocation31_spill] sm:$0xff] %v3629_v39  ;;  %v3643_v48 = vld [vmem:[#allocation3 + $0x1f0] sm:$0xff] }
  0x31   :  { %v361_v33 = vmax.f32 %v360_v19, %v3500_v11  ;;  %v432_v51 = vmax.f32 %v431_v35, %v153_v24  ;;  %5409 = vst [vmem:[#allocation20_spill] sm:$0xff] %v3537_v58  ;;  %v459_v14 = vmax.f32 %v458_v52, %v3529_v47  ;;  %v3549_v19 = vld [vmem:[#allocation3 + $0xe8] sm:$0xff]  ;;  %v161_v35 = vld [vmem:[#allocation3 + $0x340] sm:$0xff]  ;;  %v3565_v52 = vld [vmem:[#allocation3 + $0x298] sm:$0xff]  ;;  %v297_v53 = vadd.f32 %v296_v61, %v3493_v5 }
  0x32   :  { %v202_v42 = vadd.f32 %v201_v25, %v3487_v57  ;;  %v273_v59 = vadd.f32 %v272_v43, %v151_v13  ;;  %5411 = vst [vmem:[#allocation22_spill] sm:$0xff] %v3549_v19  ;;  %v392_v29 = vmax.f32 %v391_v10, %v3537_v58  ;;  %v233_v43 = vadd.f32 %v232_v20, %v3527_v45  ;;  %v3577_v5 = vld [vmem:[#allocation3 + $0x2a8] sm:$0xff]  ;;  %v3579_v61 = vld [vmem:[#allocation3 + $0x1a0] sm:$0xff] }
  0x33   :  { %v362_v49 = vmax.f32 %v361_v33, %v3510_v23  ;;  %v433_v4 = vmax.f32 %v432_v51, %v155_v41  ;;  %v460_v30 = vmax.f32 %v459_v14, %v3539_v60  ;;  %v3557_v33 = vld [vmem:[#allocation3 + $0x180] sm:$0xff]  ;;  %v3337_v20 = vmov 256.0   ;;  %5416 = vst [vmem:[#allocation27_spill] sm:$0xff] %v3579_v61 }
  0x34   :  { %v203_v56 = vadd.f32 %v202_v42, %v3500_v11  ;;  %v274_v13 = vadd.f32 %v273_v59, %v153_v24  ;;  %5412 = vst [vmem:[#allocation23_spill] sm:$0xff] %v3557_v33  ;;  %v3560_v24 = vld [vmem:[#allocation3 + $0xf8] sm:$0xff]  ;;  %v393_v51 = vmax.f32 %v392_v29, %v3549_v19  ;;  %v163_v59 = vld [vmem:[#allocation3 + $0x350] sm:$0xff]  ;;  %v234_v14 = vadd.f32 %v233_v43, %v3537_v58  ;;  %v169_v57 = vld [vmem:[#allocation3 + $0x380] sm:$0xff] }
  0x35   :  { %v363_v2 = vmax.f32 %v362_v49, %v3518_v34  ;;  %v434_v25 = vmax.f32 %v433_v4, %v157_v54  ;;  %5413 = vst [vmem:[#allocation24_spill] sm:$0xff] %v3560_v24  ;;  %v461_v10 = vmax.f32 %v460_v30, %v3555_v31  ;;  %3161 = vrcp.f32 %v3337_v20  ;;  %v3590_v20 = vld [vmem:[#allocation3 + $0x1b0] sm:$0xff]  ;;  %v3652_v58 = vld [vmem:[#allocation3 + $0x308] sm:$0xff] }
  0x36   :  { %v204_v18 = vadd.f32 %v203_v56, %v3510_v23  ;;  %v275_v42 = vadd.f32 %v274_v13, %v155_v41  ;;  %v3568_v56 = vld [vmem:[#allocation3 + $0x190] sm:$0xff]  ;;  %v3571_v41 = vld [vmem:[#allocation3 + $0x108] sm:$0xff]  ;;  %5417 = vst [vmem:[#allocation28_spill] sm:$0xff] %v3590_v20 }
  0x37   :  { %v364_v22 = vmax.f32 %v363_v2, %v3532_v50  ;;  %v435_v49 = vmax.f32 %v434_v25, %v159_v17  ;;  %5414 = vst [vmem:[#allocation25_spill] sm:$0xff] %v3568_v56  ;;  %v165_v25 = vld [vmem:[#allocation3 + $0x360] sm:$0xff]  ;;  %v462_v30 = vmax.f32 %v461_v10, %v3565_v52  ;;  %v298_v10 = vadd.f32 %v297_v53, %v3495_v8 }
  0x38   :  { %v205_v40 = vadd.f32 %v204_v18, %v3518_v34  ;;  %v276_v4 = vadd.f32 %v275_v42, %v157_v54  ;;  %5415 = vst [vmem:[#allocation26_spill] sm:$0xff] %v3571_v41  ;;  %v167_v34 = vld [vmem:[#allocation3 + $0x370] sm:$0xff] }
  0x39   :  { %v365_v44 = vmax.f32 %v364_v22, %v3546_v15  ;;  %v436_v13 = vmax.f32 %v435_v49, %v161_v35  ;;  %v394_v22 = vmax.f32 %v393_v51, %v3560_v24  ;;  %v3587_v49 = vld [vmem:[#allocation3 + $0x2b8] sm:$0xff]  ;;  %v235_v51 = vadd.f32 %v234_v14, %v3549_v19  ;;  %v3601_v14 = vld [vmem:[#allocation3 + $0x1c0] sm:$0xff]  ;;  %5421 = vst [vmem:[#allocation32_spill] sm:$0xff] %v3643_v48 }
  0x3a   :  { %v206_v2 = vadd.f32 %v205_v40, %v3532_v50  ;;  %v277_v29 = vadd.f32 %v276_v4, %v159_v17  ;;  %v3582_v40 = vld [vmem:[#allocation3 + $0x118] sm:$0xff]  ;;  %v3593_v17 = vld [vmem:[#allocation3 + $0x128] sm:$0xff]  ;;  %v463_v4 = vmax.f32 %v462_v30, %v3577_v5  ;;  %5418 = vst [vmem:[#allocation29_spill] sm:$0xff] %v3601_v14  ;;  %v299_v23 = vadd.f32 %v298_v10, %v3497_v9 }
  0x3b   :  { %v366_v18 = vmax.f32 %v365_v44, %v3557_v33  ;;  %v437_v43 = vmax.f32 %v436_v13, %v163_v59  ;;  %v395_v44 = vmax.f32 %v394_v22, %v3571_v41  ;;  %v3609_v53 = vpop.eup %3161  ;;  %v3635_v9 = vld [vmem:[#allocation3 + $0x158] sm:$0xff] }
  0x3c   :  { %v207_v54 = vadd.f32 %v206_v2, %v3546_v15  ;;  %v278_v2 = vadd.f32 %v277_v29, %v161_v35  ;;  %v3599_v15 = vld [vmem:[#allocation3 + $0x2c8] sm:$0xff]  ;;  %v3606_v29 = vld [vmem:[#allocation3 + $0x138] sm:$0xff]  ;;  %v464_v8 = vmax.f32 %v463_v4, %v3587_v49  ;;  %vm338_vm0 = vweird.f32 %v3609_v53 }
  0x3d   :  { %v367_v42 = vmax.f32 %v366_v18, %v3568_v56  ;;  %v438_v13 = vmax.f32 %v437_v43, %v165_v25  ;;  %v396_v22 = vmax.f32 %v395_v44, %v3582_v40  ;;  %v3613_v44 = vld [vmem:[#allocation3 + $0x2d8] sm:$0xff] }
  0x3e   :  { %v208_v50 = vadd.f32 %v207_v54, %v3557_v33  ;;  %v279_v54 = vadd.f32 %v278_v2, %v163_v59  ;;  %v236_v33 = vadd.f32 %v235_v51, %v3560_v24  ;;  %v171_v59 = vld [vmem:[#allocation3 + $0x390] sm:$0xff]  ;;  %v465_v4 = vmax.f32 %v464_v8, %v3599_v15  ;;  %v3627_v24 = vld [vmem:[#allocation3 + $0x2e8] sm:$0xff] }
  0x3f   :  { %v368_v18 = vmax.f32 %v367_v42, %v3579_v61  ;;  %v439_v42 = vmax.f32 %v438_v13, %v167_v34  ;;  %v397_v43 = vmax.f32 %v396_v22, %v3593_v17  ;;  %v3633_v8 = vmul.f32 256.0, %v3609_v53  ;;  %v3640_v22 = vld [vmem:[#allocation3 + $0x2f8] sm:$0xff] }
  0x40   :  { %v209_v11 = vadd.f32 %v208_v50, %v3568_v56  ;;  %v3616_v50 = vld [vmem:[#allocation3 + $0x1d0] sm:$0xff]  ;;  %v280_v35 = vadd.f32 %v279_v54, %v165_v25  ;;  %v3619_v56 = vld [vmem:[#allocation3 + $0x148] sm:$0xff]  ;;  %v466_v10 = vmax.f32 %v465_v4, %v3613_v44  ;;  %v300_v4 = vadd.f32 %v299_v23, %v3515_v32 }
  0x41   :  { %v369_v30 = vmax.f32 %v368_v18, %v3590_v20  ;;  %5419 = vst [vmem:[#allocation30_spill] sm:$0xff] %v3616_v50  ;;  %v440_v13 = vmax.f32 %v439_v42, %v169_v57  ;;  %v398_v51 = vmax.f32 %v397_v43, %v3606_v29 }
  0x42   :  { %v210_v2 = vadd.f32 %v209_v11, %v3579_v61  ;;  %v173_v11 = vld [vmem:[#allocation3 + $0x3a0] sm:$0xff]  ;;  %v281_v54 = vadd.f32 %v280_v35, %v167_v34  ;;  %v237_v61 = vadd.f32 %v236_v33, %v3571_v41  ;;  %v467_v45 = vmax.f32 %v466_v10, %v3627_v24 }
  0x43   :  { %v370_v18 = vmax.f32 %v369_v30, %v3601_v14  ;;  %v441_v42 = vmax.f32 %v440_v13, %v171_v59  ;;  %v399_v43 = vmax.f32 %v398_v51, %v3619_v56  ;;  %v177_v41 = vld [vmem:[#allocation3 + $0x3c0] sm:$0xff]  ;;  %v301_v10 = vadd.f32 %v300_v4, %v3529_v47 }
  0x44   :  { %v211_v25 = vadd.f32 %v210_v2, %v3590_v20  ;;  %v175_v2 = vld [vmem:[#allocation3 + $0x3b0] sm:$0xff]  ;;  %v282_v35 = vadd.f32 %v281_v54, %v169_v57  ;;  %v3646_v20 = vld [vmem:[#allocation3 + $0x168] sm:$0xff]  ;;  %v238_v33 = vadd.f32 %v237_v61, %v3582_v40  ;;  %v3656_v57 = vld [vmem:[#allocation3 + $0x178] sm:$0xff]  ;;  %v468_v54 = vmax.f32 %v467_v45, %v3640_v22 }
  0x45   :  { %v371_v30 = vmax.f32 %v370_v18, %v3616_v50  ;;  %v442_v13 = vmax.f32 %v441_v42, %v173_v11  ;;  %v400_v51 = vmax.f32 %v399_v43, %v3635_v9  ;;  %v3662_v42 = vld [vmem:[#allocation3 + $0x318] sm:$0xff]  ;;  %v179_v61 = vld [vmem:[#allocation3 + $0x3d0] sm:$0xff]  ;;  %v302_v45 = vadd.f32 %v301_v10, %v3539_v60 }
  0x46   :  { %v212_v34 = vadd.f32 %v211_v25, %v3601_v14  ;;  %v283_v25 = vadd.f32 %v282_v35, %v171_v59  ;;  %v239_v43 = vadd.f32 %v238_v33, %v3593_v17  ;;  %v3666_v59 = vld [vmem:[#allocation3 + $0x188] sm:$0xff]  ;;  %v469_v35 = vmax.f32 %v468_v54, %v3652_v58 }
  0x47   :  { %v372_v18 = vmax.f32 %v371_v30, %v3629_v39  ;;  %v443_v32 = vmax.f32 %v442_v13, %v175_v2  ;;  %v401_v30 = vmax.f32 %v400_v51, %v3646_v20  ;;  %v5422_v4 = vmax.f32 %v3407_v6, %v3409_v7  ;;  %v3674_v51 = vld [vmem:[#allocation3 + $0x328] sm:$0xff]  ;;  %v3683_v7 = vld [vmem:[#allocation3 + $0x338] sm:$0xff] }
  0x48   :  { %v213_v19 = vadd.f32 %v212_v34, %v3616_v50  ;;  %v284_v34 = vadd.f32 %v283_v25, %v173_v11  ;;  %v240_v33 = vadd.f32 %v239_v43, %v3606_v29  ;;  %v181_v50 = vld [vmem:[#allocation3 + $0x3e0] sm:$0xff]  ;;  %v3678_v25 = vld [vmem:[#allocation3 + $0x198] sm:$0xff]  ;;  %v470_v54 = vmax.f32 %v469_v35, %v3662_v42 }
  0x49   :  { %v373_v23 = vmax.f32 %v372_v18, %v3643_v48  ;;  %v444_v47 = vmax.f32 %v443_v32, %v177_v41  ;;  %v402_v13 = vmax.f32 %v401_v30, %v3656_v57  ;;  %v303_v60 = vadd.f32 %v302_v45, %v3555_v31  ;;  %v183_v30 = vld [vmem:[#allocation3 + $0x3f0] sm:$0xff]  ;;  %v3689_v31 = vld [vmem:[#allocation3 + $0x348] sm:$0xff] }
  0x4a   :  { %v214_v14 = vadd.f32 %v213_v19, %v3629_v39  ;;  %v285_v11 = vadd.f32 %v284_v34, %v175_v2 }
  0x4b   :  { %v374_v18 = vmax.f32 %v373_v23, %v5422_v4  ;;  %v445_v10 = vmax.f32 %v444_v47, %v179_v61  ;;  %v403_v6 = vmax.f32 %v402_v13, %v3666_v59  ;;  %v241_v23 = vadd.f32 %v240_v33, %v3619_v56 }
  0x4c   :  { %v215_v19 = vadd.f32 %v214_v14, %v3643_v48  ;;  %v286_v4 = vadd.f32 %v285_v11, %v177_v41  ;;  %v471_v14 = vmax.f32 %v470_v54, %v3674_v51  ;;  %v304_v2 = vadd.f32 %v303_v60, %v3565_v52  ;;  %v3692_v48 = vld [vmem:[#allocation3 + $0x1a8] sm:$0xff]  ;;  %v3697_v60 = vld [vmem:[#allocation3 + $0x358] sm:$0xff] }
  0x4d   :  { %v375_v32 = vrot.slane %v374_v18, 4  ;;  %v446_v34 = vmax.f32 %v445_v10, %v181_v50  ;;  %v404_v35 = vmax.f32 %v403_v6, %v3678_v25  ;;  %v242_v45 = vadd.f32 %v241_v23, %v3635_v9 }
  0x4e   :  { %v216_v43 = vrot.slane %v215_v19, 4  ;;  %v287_v13 = vadd.f32 %v286_v4, %v179_v61  ;;  %v472_v33 = vmax.f32 %v471_v14, %v3683_v7  ;;  %v305_v41 = vadd.f32 %v304_v2, %v3577_v5  ;;  %v3709_v2 = vld [vmem:[#allocation3 + $0x1b8] sm:$0xff] }
  0x4f   :  { %v376_v39 = vmax.f32 %v374_v18, %v375_v32  ;;  %v447_v11 = vmax.f32 %v446_v34, %v183_v30  ;;  %v335_v54 = vsub.f32 1.0, %v3633_v8  ;;  %v243_v18 = vadd.f32 %v242_v45, %v3646_v20 }
  0x50   :  { %v217_v47 = vadd.f32 %v216_v43, %v215_v19  ;;  %v288_v32 = vadd.f32 %v287_v13, %v181_v50  ;;  %v473_v6 = vmax.f32 %v472_v33, %v3689_v31  ;;  %v306_v61 = vadd.f32 %v305_v41, %v3587_v49  ;;  %v3706_v43 = vld [vmem:[#allocation3 + $0x368] sm:$0xff]  ;;  %v3714_v13 = vld [vmem:[#allocation3 + $0x378] sm:$0xff] }
  0x51   :  { %v377_v52 = vrot.slane %v376_v39, 2  ;;  %v5423_v19 = vmax.f32 %v3425_v27, %v3427_v28  ;;  %v405_v5 = vmax.f32 %v404_v35, %v3692_v48  ;;  %v244_v8 = vadd.f32 %v243_v18, %v3656_v57 }
  0x52   :  { %v218_v10 = vrot.slane %v217_v47, 2  ;;  %v289_v14 = vadd.f32 %v288_v32, %v183_v30  ;;  %v474_v50 = vmax.f32 %v473_v6, %v3697_v60  ;;  %v307_v34 = vadd.f32 %v306_v61, %v3599_v15 }
  0x53   :  { %v448_v23 = vmax.f32 %v447_v11, %v5423_v19  ;;  %v336_v49 = vmul.f32 %v3609_v53, %v335_v54  ;;  %v245_v27 = vadd.f32 %v244_v8, %v3666_v59  ;;  %v378_v35 = vmax.f32 %v376_v39, %v377_v52  ;;  %v3720_v11 = vld [vmem:[#allocation3 + $0x388] sm:$0xff]  ;;  %v3729_v52 = vld [vmem:[#allocation3 + $0x398] sm:$0xff] }
  0x54   :  { %v219_v4 = vadd.f32 %v218_v10, %v217_v47  ;;  %v290_v28 = vrot.slane %v289_v14, 4  ;;  %v475_v33 = vmax.f32 %v474_v50, %v3706_v43  ;;  %v308_v47 = vadd.f32 %v307_v34, %v3613_v44  ;;  %v3723_v10 = vld [vmem:[#allocation3 + $0x1c8] sm:$0xff] }
  0x55   :  { %v449_v45 = vrot.slane %v448_v23, 4  ;;  %v406_v41 = vmax.f32 %v405_v5, %v3709_v2  ;;  %v246_v15 = vadd.f32 %v245_v27, %v3678_v25  ;;  %v337_v39 = vadd.f32 %v3609_v53, %v336_v49  ;;  %v174_v34 = vld [vmem:[#allocation3 + $0x3a8] sm:$0xff]  ;;  %v3736_v27 = vld [vmem:[#allocation3 + $0x1d8] sm:$0xff] }
  0x56   :  { %v220_v18 = vrot.slane %v219_v4, 1  ;;  %v291_v54 = vadd.f32 %v290_v28, %v289_v14  ;;  %v476_v32 = vmax.f32 %v475_v33, %v3714_v13  ;;  %v309_v6 = vadd.f32 %v308_v47, %v3627_v24 }
  0x57   :  { %v450_v30 = vmax.f32 %v448_v23, %v449_v45  ;;  %v247_v61 = vadd.f32 %v246_v15, %v3692_v48  ;;  %v379_v23 = vrot.slane %v378_v35, 1  ;;  %v407_v50 = vmax.f32 %v406_v41, %v3723_v10 }
  0x58   :  { %v292_v19 = vrot.slane %v291_v54, 2  ;;  %v477_v5 = vmax.f32 %v476_v32, %v3720_v11  ;;  %v310_v8 = vadd.f32 %v309_v6, %v3640_v22  ;;  %v221_v49 = vadd.f32 %v220_v18, %v219_v4 }
  0x59   :  { %v451_v44 = vrot.slane %v450_v30, 2  ;;  %v248_v24 = vadd.f32 %v247_v61, %v3709_v2  ;;  %v3743_v47 = vsel %vm338_vm0, %v3609_v53, %v337_v39  ;;  %v380_v32 = vmax.f32 %v378_v35, %v379_v23 }
  0x5a   :  { %v293_v45 = vadd.f32 %v292_v19, %v291_v54  ;;  %v478_v28 = vmax.f32 %v477_v5, %v3729_v52  ;;  %v311_v33 = vadd.f32 %v310_v8, %v3652_v58  ;;  %5424 = vst [vmem:[#allocation33_spill] sm:$0xff] %v3743_v47  ;;  %v408_v54 = vmax.f32 %v407_v50, %v3736_v27  ;;  %v3749_v19 = vld [vmem:[#allocation3 + $0x1e8] sm:$0xff]  ;;  %v180_v5 = vld [vmem:[#allocation3 + $0x3d8] sm:$0xff] }
  0x5b   :  { %v452_v14 = vmax.f32 %v450_v30, %v451_v44  ;;  %v176_v30 = vld [vmem:[#allocation3 + $0x3b8] sm:$0xff]  ;;  %v249_v41 = vadd.f32 %v248_v24, %v3723_v10  ;;  %v178_v44 = vld [vmem:[#allocation3 + $0x3c8] sm:$0xff]  ;;  %v340_v61 = vmul.f32 %v3743_v47, %v221_v49  ;;  %vm1533_vm0 = vcmask 1042434  }
  0x5c   :  { %v294_v15 = vrot.slane %v293_v45, 1  ;;  %v479_v6 = vmax.f32 %v478_v28, %v174_v34  ;;  %v312_v4 = vadd.f32 %v311_v33, %v3662_v42  ;;  %v409_v50 = vmax.f32 %v408_v54, %v3749_v19  ;;  %v182_v24 = vld [vmem:[#allocation3 + $0x3e8] sm:$0xff] }
  0x5d   :  { %v453_v22 = vrot.slane %v452_v14, 1  ;;  %v250_v35 = vadd.f32 %v249_v41, %v3736_v27  ;;  %v381_v54 = vmax.f32 %v3443_v62, %v3445_v63 }
  0x5e   :  { %v295_v58 = vadd.f32 %v294_v15, %v293_v45  ;;  %v480_v53 = vmax.f32 %v479_v6, %v176_v30  ;;  %v313_v39 = vadd.f32 %v312_v4, %v3674_v51  ;;  %v3758_v45 = vld [vmem:[#allocation3 + $0x1f8] sm:$0xff] }
  0x5f   :  { %v454_v18 = vmax.f32 %v452_v14, %v453_v22  ;;  %v184_v22 = vld [vmem:[#allocation3 + $0x3f8] sm:$0xff] }
  0x60   :  { %v342_v42 = vmul.f32 %v3743_v47, %v295_v58  ;;  %v481_v8 = vmax.f32 %v480_v53, %v178_v44  ;;  %v314_v14 = vadd.f32 %v313_v39, %v3683_v7  ;;  %v410_v7 = vmax.f32 %v409_v50, %v3758_v45 }
  0x61   :  { %v506_v23 = vsel %vm505_vm1, %v454_v18, %v380_v32  ;;  %v251_v32 = vadd.f32 %v250_v35, %v3749_v19 }
  0x62   :  { %v497_v49 = vsel %vm496_vm2, %v342_v42, %v340_v61  ;;  %v482_v51 = vmax.f32 %v481_v8, %v180_v5  ;;  %v315_v28 = vadd.f32 %v314_v14, %v3689_v31  ;;  %v455_v31 = vmax.f32 %v3520_v36, %v3522_v38 }
  0x63   :  { %v511_v33 = vsel %vm510_vm3, %v497_v49, %v506_v23  ;;  %v252_v58 = vadd.f32 %v251_v32, %v3758_v45  ;;  %v411_v39 = vmax.f32 %v410_v7, %v381_v54 }
  0x64   :  { %v513_v41 = vpack.c.bf16 %v511_v33, %v511_v33  ;;  %v483_v15 = vmax.f32 %v482_v51, %v182_v24  ;;  %v316_v6 = vadd.f32 %v315_v28, %v3697_v60 }
  0x65   :  { %v253_v35 = vrot.slane %v252_v58, 4  ;;  %v412_v8 = vrot.slane %v411_v39, 4 }
  0x66   :  { %655 = vmatmul.bf16.vlgmr.msra.gmra.mxu0 %v513_v41  ;;  %v484_v4 = vmax.f32 %v483_v15, %v184_v22  ;;  %v317_v18 = vadd.f32 %v316_v6, %v3706_v43 }
  0x67   :  { %v254_v14 = vadd.f32 %v253_v35, %v252_v58  ;;  %v413_v51 = vmax.f32 %v411_v39, %v412_v8  ;;  %v2970_v8 = vld [vmem:[%s5225_s3] sm:$0xf] }
  0x68   :  { %v318_v61 = vadd.f32 %v317_v18, %v3714_v13  ;;  %v485_v60 = vmax.f32 %v484_v4, %v455_v31 }
  0x69   :  { %v255_v36 = vrot.slane %v254_v14, 2  ;;  %v414_v41 = vrot.slane %v413_v51, 2 }
  0x6a   :  { %v319_v53 = vadd.f32 %v318_v61, %v3720_v11  ;;  %v486_v43 = vrot.slane %v485_v60, 4 }
  0x6b   :  { %v256_v15 = vadd.f32 %v255_v36, %v254_v14  ;;  %v415_v6 = vmax.f32 %v413_v51, %v414_v41  ;;  %v3095_v14 = vld [vmem:[%s5225_s3 + $0x4] sm:$0xf] }
  0x6c   :  { %v320_v42 = vadd.f32 %v319_v53, %v3729_v52  ;;  %v487_v28 = vmax.f32 %v485_v60, %v486_v43  ;;  %v3096_v43 = vld [vmem:[%s5225_s3 + $0x4] sm:$0xf0] }
  0x6d   :  { %v257_v4 = vrot.slane %v256_v15, 1  ;;  %v416_v18 = vrot.slane %v415_v6, 1 }
  0x6e   :  { %v321_v23 = vadd.f32 %v320_v42, %v174_v34  ;;  %v488_v13 = vrot.slane %v487_v28, 2 }
  0x6f   :  { %v258_v31 = vadd.f32 %v257_v4, %v256_v15  ;;  %v417_v58 = vmax.f32 %v415_v6, %v416_v18 }
  0x70   :  { %v322_v50 = vadd.f32 %v321_v23, %v176_v30  ;;  %v489_v7 = vmax.f32 %v487_v28, %v488_v13  ;;  %v3160_v28 = vld [vmem:[%s5224_s2] ss:$0 sm:$0xff] }
  0x72   :  { %v323_v49 = vadd.f32 %v322_v50, %v178_v44  ;;  %v490_v54 = vrot.slane %v489_v7, 1  ;;  %v2971_v50 = vor.u32 %v3096_v43, %v2970_v8 }
  0x74   :  { %v324_v38 = vadd.f32 %v323_v49, %v180_v5  ;;  %v491_v61 = vmax.f32 %v489_v7, %v490_v54  ;;  %v341_v5 = vmul.f32 %v3743_v47, %v258_v31  ;;  %v2972_v49 = vld [vmem:[%s5225_s3 + $0x8] sm:$0xf0]  ;;  %704 = vmatpush.bf16.msra.mxu2 %v2971_v50 }
  0x75   :  { %v2975_v51 = vor.u32 %v3095_v14, %v2972_v49 }
  0x76   :  { %v325_v33 = vadd.f32 %v324_v38, %v182_v24 }
  0x77   :  { %717 = vmatpush.bf16.msra.mxu3 %v2975_v51 }
  0x78   :  { %v326_v11 = vadd.f32 %v325_v33, %v184_v22  ;;  %v507_v22 = vsel %vm505_vm1, %v491_v61, %v417_v58 }
  0x7a   :  { %v327_v32 = vrot.slane %v326_v11, 4 }
  0x7c   :  { %v328_v52 = vadd.f32 %v327_v32, %v326_v11  ;;  %v677_v11 = vld [vmem:[%s5226_s4] sm:$0x3]  ;;  %s3074_s4 = sld [smem:[#allocation7 + $0x1]] }
  0x7d   :  { %v679_v32 = vperm.slane %v677_v11, 0  ;;  %v680_v6 = vperm.slane %v677_v11, 1 }
  0x7e   :  { %v329_v34 = vrot.slane %v328_v52, 2 }
  0x80   :  { %v330_v30 = vadd.f32 %v329_v34, %v328_v52 }
  0x82   :  { %v331_v44 = vrot.slane %v330_v30, 1 }
  0x84   :  { %v332_v53 = vadd.f32 %v331_v44, %v330_v30 }
  0x86   :  { %v343_v24 = vmul.f32 %v3743_v47, %v332_v53 }
  0x88   :  { %v498_v39 = vsel %vm496_vm2, %v343_v24, %v341_v5 }
  0x89   :  { %v512_v60 = vsel %vm510_vm3, %v498_v39, %v507_v22  ;;  %vm1536_vm3 = vcmask 1044484  }
  0x8a   :  { %v514_v35 = vpack.c.bf16 %v512_v60, %v512_v60 }
  0x8c   :  { %668 = vmatmul.bf16.vlgmr.msra.gmra.mxu1 %v514_v35 }
  0xe3   :  { %v656_v42 = vpop.f32.mrf.mxu0 }
  0xe4   :  { %v657_v36 = vadd.f32 %v3160_v28, %v656_v42 }
  0xeb   :  { %v658_v23 = vpop.f32.mrf.mxu0 }
 0x109   :  { %v669_v38 = vpop.f32.mrf.mxu1 }
 0x10a   :  { %v670_v33 = vadd.f32 %v669_v38, %v657_v36 }
 0x10c   :  { %v673_v41 = vmax.f32 %v670_v33, 0.0 }
 0x10e   :  { %v674_v13 = vpack.c.bf16 %v673_v41, %v673_v41 }
 0x110   :  { %2976 = vmatmul.msk.bf16.vlgmr.msra.gmra.mxu2 %vm693_vm4, %v674_v13  ;;  %2977 = vmatmul.msk.bf16.vlgmr.msra.gmra.mxu3 %vm693_vm4, %v674_v13 }
 0x111   :  { %v671_v15 = vpop.f32.mrf.mxu1 }
 0x193   :  { %v706_v7 = vpop.f32.mrf.mxu2  ;;  %v719_v4 = vpop.f32.mrf.mxu3 }
 0x194   :  { %v707_v52 = vadd.f32 %v706_v7, %v679_v32  ;;  %v720_v34 = vadd.f32 %v719_v4, %v680_v6 }
 0x196   :  { %v725_v18 = vrot.slane %v707_v52, 2  ;;  %v726_v54 = vrot.slane %v720_v34, 2 }
 0x198   :  { %v729_v31 = vadd.f32 %v725_v18, %v707_v52  ;;  %v730_v30 = vadd.f32 %v726_v54, %v720_v34  ;;  %v3187_v54 = vld [vmem:[#allocation3 + $0x40] sm:$0xff] }
 0x19a   :  { %v2978_v44 = vmul.f32 -1.442695, %v729_v31  ;;  %v2979_v58 = vmul.f32 -1.442695, %v730_v30 }
 0x19b   :  { %v708_v61 = vpop.f32.mrf.mxu2  ;;  %v721_v53 = vpop.f32.mrf.mxu3 }
 0x19c   :  { %3163 = vpow2.f32 %v2978_v44  ;;  %v3188_v44 = vld [vmem:[#allocation3 + $0x20] sm:$0xff] }
 0x19d   :  { %3165 = vpow2.f32 %v2979_v58  ;;  %v3189_v53 = vld [vmem:[#allocation3] sm:$0xff] }
 0x1a2   :  { %v3164_v5 = vpop.eup %3163 }
 0x1a3   :  { %v3166_v24 = vpop.eup %3165  ;;  %v737_v22 = vadd.f32 1.0, %v3164_v5 }
 0x1a4   :  { %v738_v39 = vadd.f32 1.0, %v3166_v24 }
 0x1a5   :  { %3167 = vrcp.f32 %v737_v22  ;;  %vm744_vm7 = vweird.f32 %v737_v22  ;;  %v750_v36 = vand.u32 2147483648, %v737_v22  ;;  %v748_v38 = vand.u32 2147483647, %v737_v22 }
 0x1a6   :  { %3169 = vrcp.f32 %v738_v39  ;;  %v765_v50 = vand.u32 2147483648, %v738_v39  ;;  %v763_v51 = vand.u32 2147483647, %v738_v39  ;;  %vm759_vm9 = vweird.f32 %v738_v39 }
 0x1a7   :  { %v751_v11 = vor.u32 1.1754944e-38, %v750_v36  ;;  %vm749_vm13 = vcmp.eq.f32.partialorder %v748_v38, 8.507059e+37 }
 0x1a8   :  { %v766_v41 = vor.u32 1.1754944e-38, %v765_v50  ;;  %vm764_vm11 = vcmp.eq.f32.partialorder %v763_v51, 8.507059e+37 }
 0x1ab   :  { %v3168_v60 = vpop.eup %3167 }
 0x1ac   :  { %v3170_v35 = vpop.eup %3169  ;;  %v740_v42 = vmul.f32 %v3168_v60, %v737_v22  ;;  %vm745_vm5 = vweird.f32 %v3168_v60 }
 0x1ad   :  { %v755_v23 = vmul.f32 %v3170_v35, %v738_v39  ;;  %vm760_vm6 = vweird.f32 %v3170_v35  ;;  %vm746_vm8 = vmor %vm744_vm7, %vm745_vm5  ;;  %vm1538_vm5 = vcmask 1045509   ;;  %vm1542_vm7 = vcmask 1047559  }
 0x1ae   :  { %v741_v8 = vsub.f32 1.0, %v740_v42  ;;  %vm761_vm10 = vmor %vm759_vm9, %vm760_vm6  ;;  %vm1540_vm6 = vcmask 1046534   ;;  %vm1641_vm9 = vcmask 261312  }
 0x1af   :  { %v756_v43 = vsub.f32 1.0, %v755_v23 }
 0x1b0   :  { %v742_v14 = vmul.f32 %v3168_v60, %v741_v8  ;;  %v3192_v8 = vld [vmem:[#allocation3 + $0x10] sm:$0xff] }
 0x1b1   :  { %v757_v49 = vmul.f32 %v3170_v35, %v756_v43 }
 0x1b2   :  { %v743_v28 = vadd.f32 %v3168_v60, %v742_v14 }
 0x1b3   :  { %v758_v33 = vadd.f32 %v3170_v35, %v757_v49 }
 0x1b4   :  { %v747_v13 = vsel %vm746_vm8, %v3168_v60, %v743_v28  ;;  %v3194_v28 = vld [vmem:[#allocation3 + $0x70] sm:$0xff]  ;;  %vm1363_vm8 = vcmask 259072  }
 0x1b5   :  { %v762_v15 = vsel %vm761_vm10, %v3170_v35, %v758_v33  ;;  %v752_v7 = vsel %vm749_vm13, %v751_v11, %v747_v13  ;;  %v3191_v35 = vld [vmem:[#allocation3 + $0x30] sm:$0xff]  ;;  %v3195_v33 = vld [vmem:[#allocation3 + $0x60] sm:$0xff]  ;;  %vm1768_vm10 = vcmask 261248  }
 0x1b6   :  { %v767_v32 = vsel %vm764_vm11, %v766_v41, %v762_v15 }
 0x1b7   :  { %v771_v6 = vrot.slane %v767_v32, 7 }
 0x1b9   :  { %v773_v4 = vsel %vm772_vm12, %v752_v7, %v771_v6  ;;  %v3800_v52 = vsel %vm496_vm2, %v752_v7, %v771_v6  ;;  %v3197_v6 = vld [vmem:[#allocation3 + $0xa0] sm:$0xff] }
 0x1ba   :  { %5425 = vst [vmem:[#allocation34_spill] sm:$0xff] %v3800_v52  ;;  %v3802_v34 = vperm.slane %v773_v4, 0  ;;  %v3804_v18 = vperm.slane %v773_v4, 1 }
 0x1bc   :  { %v3807_v31 = vmul.f32 %v3187_v54, %v3802_v34  ;;  %v3811_v30 = vmul.f32 %v3804_v18, %v3455_v12  ;;  %v3814_v58 = vmul.f32 %v3188_v44, %v3802_v34  ;;  %v3818_v61 = vmul.f32 %v3804_v18, %v3447_v0  ;;  %v3190_v0 = vld [vmem:[#allocation3 + $0x50] sm:$0xff] }
 0x1bd   :  { %v3821_v5 = vmul.f32 %v3189_v53, %v3802_v34  ;;  %v3825_v24 = vmul.f32 %v3804_v18, %v3443_v62  ;;  %v3834_v60 = vmul.f32 %v3190_v0, %v3802_v34  ;;  %v3838_v62 = vmul.f32 %v3804_v18, %v3460_v16  ;;  %v3198_v54 = vld [vmem:[#allocation3 + $0x90] sm:$0xff] }
 0x1be   :  { %5426 = vst [vmem:[#allocation35_spill] sm:$0xff] %v3807_v31  ;;  %v924_v12 = vmax.f32 %v3807_v31, %v3811_v30  ;;  %v918_v22 = vmax.f32 %v3814_v58, %v3818_v61  ;;  %v3841_v42 = vmul.f32 %v3191_v35, %v3802_v34  ;;  %v3845_v23 = vmul.f32 %v3804_v18, %v3449_v3  ;;  %v3193_v3 = vld [vmem:[#allocation3 + $0x80] sm:$0xff]  ;;  %v5451_v0 = vld [vmem:[#allocation22_spill] sm:$0xff] }
 0x1bf   :  { %5427 = vst [vmem:[#allocation36_spill] sm:$0xff] %v3811_v30  ;;  %v912_v39 = vmax.f32 %v3821_v5, %v3825_v24  ;;  %v3848_v43 = vmul.f32 %v3192_v8, %v3802_v34  ;;  %v3852_v14 = vmul.f32 %v3804_v18, %v3445_v63  ;;  %v927_v16 = vmax.f32 %v3834_v60, %v3838_v62  ;;  %v3200_v35 = vld [vmem:[#allocation3 + $0xd0] sm:$0xff] }
 0x1c0   :  { %5428 = vst [vmem:[#allocation37_spill] sm:$0xff] %v3814_v58  ;;  %925 = vmax.xlane.f32.xlu2 %v924_v12  ;;  %919 = vmax.xlane.f32.xlu1 %v918_v22  ;;  %v921_v50 = vmax.f32 %v3841_v42, %v3845_v23  ;;  %v3861_v51 = vmul.f32 %v3193_v3, %v3802_v34 }
 0x1c1   :  { %5429 = vst [vmem:[#allocation38_spill] sm:$0xff] %v3818_v61  ;;  %913 = vmax.xlane.f32.xlu0 %v912_v39  ;;  %v915_v49 = vmax.f32 %v3848_v43, %v3852_v14  ;;  %v3865_v63 = vmul.f32 %v3804_v18, %v3477_v46  ;;  %v3868_v36 = vmul.f32 %v3194_v28, %v3802_v34  ;;  %v5457_v28 = vld [vmem:[#allocation18_spill] sm:$0xff] }
 0x1c2   :  { %5430 = vst [vmem:[#allocation39_spill] sm:$0xff] %v3821_v5  ;;  %v3872_v38 = vmul.f32 %v3804_v18, %v3471_v37  ;;  %v3875_v41 = vmul.f32 %v3195_v33, %v3802_v34  ;;  %v3879_v13 = vmul.f32 %v3804_v18, %v3467_v26  ;;  %v3196_v37 = vld [vmem:[#allocation3 + $0xb0] sm:$0xff]  ;;  %v3892_v26 = vmul.f32 %v3804_v18, %v3507_v21 }
 0x1c3   :  { %5431 = vst [vmem:[#allocation40_spill] sm:$0xff] %v3825_v24  ;;  %v936_v46 = vmax.f32 %v3861_v51, %v3865_v63  ;;  %v3888_v32 = vmul.f32 %v3196_v37, %v3802_v34  ;;  %v3895_v7 = vmul.f32 %v3197_v6, %v3802_v34  ;;  %v3899_v4 = vmul.f32 %v3804_v18, %v3490_v1  ;;  %v3199_v1 = vld [vmem:[#allocation3 + $0xe0] sm:$0xff]  ;;  %v5459_v37 = vld [vmem:[#allocation13_spill] sm:$0xff] }
 0x1c4   :  { %5432 = vst [vmem:[#allocation41_spill] sm:$0xff] %v3834_v60  ;;  %v933_v15 = vmax.f32 %v3868_v36, %v3872_v38  ;;  %v930_v11 = vmax.f32 %v3875_v41, %v3879_v13  ;;  %v3902_v44 = vmul.f32 %v3198_v54, %v3802_v34  ;;  %v3906_v53 = vmul.f32 %v3804_v18, %v3484_v55 }
 0x1c5   :  { %5433 = vst [vmem:[#allocation42_spill] sm:$0xff] %v3838_v62  ;;  %v945_v21 = vmax.f32 %v3888_v32, %v3892_v26  ;;  %v942_v12 = vmax.f32 %v3895_v7, %v3899_v4  ;;  %v3915_v39 = vmul.f32 %v3199_v1, %v3802_v34  ;;  %v3919_v55 = vmul.f32 %v3804_v18, %v5451_v0  ;;  %v3202_v0 = vld [vmem:[#allocation3 + $0xf0] sm:$0xff] }
 0x1c6   :  { %5434 = vst [vmem:[#allocation43_spill] sm:$0xff] %v3841_v42  ;;  %v939_v22 = vmax.f32 %v3902_v44, %v3906_v53  ;;  %v3922_v8 = vmul.f32 %v3200_v35, %v3802_v34  ;;  %v3933_v33 = vmul.f32 %v3804_v18, %v5457_v28  ;;  %v3943_v6 = vmul.f32 %v3802_v34, %v5459_v37 }
 0x1c7   :  { %5435 = vst [vmem:[#allocation44_spill] sm:$0xff] %v3845_v23  ;;  %v3947_v54 = vmul.f32 %v3804_v18, %v3582_v40  ;;  %v3958_v35 = vmul.f32 %v3202_v0, %v3802_v34  ;;  %v3976_v37 = vmul.f32 %v3804_v18, %v3619_v56  ;;  %v3984_v0 = vmul.f32 %v3804_v18, %v3606_v29  ;;  %v5478_v29 = vld [vmem:[#allocation21_spill] sm:$0xff] }
 0x1c8   :  { %5436 = vst [vmem:[#allocation45_spill] sm:$0xff] %v3848_v43  ;;  %928 = vmax.xlane.f32.xlu2 %v927_v16  ;;  %922 = vmax.xlane.f32.xlu1 %v921_v50  ;;  %v5454_v16 = vld [vmem:[#allocation20_spill] sm:$0xff]  ;;  %v4014_v52 = vmul.f32 %v3804_v18, %v3646_v20  ;;  %v5487_v20 = vld [vmem:[#allocation27_spill] sm:$0xff] }
 0x1c9   :  { %5437 = vst [vmem:[#allocation46_spill] sm:$0xff] %v3852_v14  ;;  %916 = vmax.xlane.f32.xlu0 %v915_v49  ;;  %v3926_v50 = vmul.f32 %v3804_v18, %v5454_v16  ;;  %v3201_v49 = vld [vmem:[#allocation3 + $0xc0] sm:$0xff]  ;;  %v963_v40 = vmax.f32 %v3943_v6, %v3947_v54 }
 0x1ca   :  { %5438 = vst [vmem:[#allocation47_spill] sm:$0xff] %v3861_v51  ;;  %v3929_v3 = vmul.f32 %v3201_v49, %v3802_v34  ;;  %v5467_v16 = vld [vmem:[#allocation24_spill] sm:$0xff] }
 0x1cb   :  { %5439 = vst [vmem:[#allocation48_spill] sm:$0xff] %v3865_v63  ;;  %v3962_v49 = vmul.f32 %v3804_v18, %v5467_v16  ;;  %v5475_v16 = vld [vmem:[#allocation14_spill] sm:$0xff] }
 0x1cc   :  { %5440 = vst [vmem:[#allocation49_spill] sm:$0xff] %v3868_v36 }
 0x1cd   :  { %5441 = vst [vmem:[#allocation50_spill] sm:$0xff] %v3872_v38 }
 0x1ce   :  { %5442 = vst [vmem:[#allocation51_spill] sm:$0xff] %v3875_v41 }
 0x1cf   :  { %5443 = vst [vmem:[#allocation52_spill] sm:$0xff] %v3879_v13 }
 0x1d0   :  { %937 = vmax.xlane.f32.xlu2 %v936_v46  ;;  %934 = vmax.xlane.f32.xlu1 %v933_v15  ;;  %5444 = vst [vmem:[#allocation53_spill] sm:$0xff] %v3888_v32  ;;  %v954_v46 = vmax.f32 %v3915_v39, %v3919_v55  ;;  %v951_v15 = vmax.f32 %v3922_v8, %v3926_v50 }
 0x1d1   :  { %931 = vmax.xlane.f32.xlu0 %v930_v11  ;;  %5445 = vst [vmem:[#allocation54_spill] sm:$0xff] %v3892_v26  ;;  %v948_v11 = vmax.f32 %v3929_v3, %v3933_v33 }
 0x1d2   :  { %5446 = vst [vmem:[#allocation55_spill] sm:$0xff] %v3895_v7 }
 0x1d3   :  { %5447 = vst [vmem:[#allocation56_spill] sm:$0xff] %v3899_v4 }
 0x1d4   :  { %5448 = vst [vmem:[#allocation57_spill] sm:$0xff] %v3902_v44 }
 0x1d5   :  { %5449 = vst [vmem:[#allocation58_spill] sm:$0xff] %v3906_v53 }
 0x1d6   :  { %5450 = vst [vmem:[#allocation59_spill] sm:$0xff] %v3915_v39 }
 0x1d7   :  { %5452 = vst [vmem:[#allocation22_spill] sm:$0xff] %v3919_v55 }
 0x1d8   :  { %946 = vmax.xlane.f32.xlu2 %v945_v21  ;;  %943 = vmax.xlane.f32.xlu1 %v942_v12  ;;  %5453 = vst [vmem:[#allocation60_spill] sm:$0xff] %v3922_v8  ;;  %v5462_v21 = vld [vmem:[#allocation12_spill] sm:$0xff] }
 0x1d9   :  { %940 = vmax.xlane.f32.xlu0 %v939_v22  ;;  %5455 = vst [vmem:[#allocation20_spill] sm:$0xff] %v3926_v50  ;;  %v3951_v12 = vmul.f32 %v3802_v34, %v5462_v21  ;;  %v5464_v22 = vld [vmem:[#allocation26_spill] sm:$0xff]  ;;  %v5472_v21 = vld [vmem:[#allocation15_spill] sm:$0xff] }
 0x1da   :  { %5456 = vst [vmem:[#allocation61_spill] sm:$0xff] %v3929_v3  ;;  %v3955_v1 = vmul.f32 %v3804_v18, %v5464_v22  ;;  %v3980_v22 = vmul.f32 %v3802_v34, %v5472_v21  ;;  %v4002_v21 = vmul.f32 %v3802_v34, %v5478_v29 }
 0x1db   :  { %5458 = vst [vmem:[#allocation18_spill] sm:$0xff] %v3933_v33 }
 0x1dc   :  { %5460 = vst [vmem:[#allocation13_spill] sm:$0xff] %v3943_v6  ;;  %v960_v28 = vmax.f32 %v3951_v12, %v3955_v1 }
 0x1dd   :  { %5461 = vst [vmem:[#allocation62_spill] sm:$0xff] %v3947_v54 }
 0x1de   :  { %5463 = vst [vmem:[#allocation12_spill] sm:$0xff] %v3951_v12 }
 0x1df   :  { %5465 = vst [vmem:[#allocation26_spill] sm:$0xff] %v3955_v1 }
 0x1e0   :  { %955 = vmax.xlane.f32.xlu2 %v954_v46  ;;  %952 = vmax.xlane.f32.xlu1 %v951_v15  ;;  %5466 = vst [vmem:[#allocation63_spill] sm:$0xff] %v3958_v35  ;;  %v957_v46 = vmax.f32 %v3958_v35, %v3962_v49  ;;  %v5469_v15 = vld [vmem:[#allocation16_spill] sm:$0xff] }
 0x1e1   :  { %949 = vmax.xlane.f32.xlu0 %v948_v11  ;;  %5468 = vst [vmem:[#allocation24_spill] sm:$0xff] %v3962_v49  ;;  %v3972_v11 = vmul.f32 %v3802_v34, %v5469_v15 }
 0x1e2   :  { %5471 = vst [vmem:[#allocation64_spill] sm:$0xff] %v3976_v37 }
 0x1e3   :  { %5470 = vst [vmem:[#allocation16_spill] sm:$0xff] %v3972_v11  ;;  %v972_v56 = vmax.f32 %v3972_v11, %v3976_v37  ;;  %v5484_v37 = vld [vmem:[#allocation17_spill] sm:$0xff] }
 0x1e4   :  { %5473 = vst [vmem:[#allocation15_spill] sm:$0xff] %v3980_v22 }
 0x1e5   :  { %5474 = vst [vmem:[#allocation65_spill] sm:$0xff] %v3984_v0 }
 0x1e6   :  { %5479 = vst [vmem:[#allocation21_spill] sm:$0xff] %v4002_v21 }
 0x1e7   :  { %5483 = vst [vmem:[#allocation68_spill] sm:$0xff] %v4014_v52 }
 0x1e8   :  { %964 = vmax.xlane.f32.xlu2 %v963_v40  ;;  %961 = vmax.xlane.f32.xlu1 %v960_v28  ;;  %v3988_v40 = vmul.f32 %v3802_v34, %v5475_v16  ;;  %v3992_v28 = vmul.f32 %v3804_v18, %v3593_v17  ;;  %v4006_v17 = vmul.f32 %v3804_v18, %v3656_v57  ;;  %v5481_v16 = vld [vmem:[#allocation19_spill] sm:$0xff] }
 0x1e9   :  { %958 = vmax.xlane.f32.xlu0 %v957_v46  ;;  %v969_v46 = vmax.f32 %v3980_v22, %v3984_v0  ;;  %v4010_v47 = vmul.f32 %v3802_v34, %v5481_v16  ;;  %v5490_v16 = vld [vmem:[#allocation25_spill] sm:$0xff] }
 0x1ea   :  { %5476 = vst [vmem:[#allocation14_spill] sm:$0xff] %v3988_v40  ;;  %v966_v15 = vmax.f32 %v3988_v40, %v3992_v28  ;;  %v981_v57 = vmax.f32 %v4002_v21, %v4006_v17  ;;  %v4044_v21 = vmul.f32 %v3804_v18, %v3678_v25  ;;  %v5496_v25 = vld [vmem:[#allocation30_spill] sm:$0xff] }
 0x1eb   :  { %5477 = vst [vmem:[#allocation66_spill] sm:$0xff] %v3992_v28 }
 0x1ec   :  { %5480 = vst [vmem:[#allocation67_spill] sm:$0xff] %v4006_v17  ;;  %v4040_v17 = vmul.f32 %v3802_v34, %v5490_v16  ;;  %v5499_v16 = vld [vmem:[#allocation29_spill] sm:$0xff] }
 0x1ed   :  { %5482 = vst [vmem:[#allocation19_spill] sm:$0xff] %v4010_v47 }
 0x1ee   :  { %5491 = vst [vmem:[#allocation25_spill] sm:$0xff] %v4040_v17 }
 0x1ef   :  { %5492 = vst [vmem:[#allocation71_spill] sm:$0xff] %v4044_v21 }
 0x1f0   :  { %973 = vmax.xlane.f32.xlu2 %v972_v56  ;;  %970 = vmax.xlane.f32.xlu1 %v969_v46  ;;  %v4018_v56 = vmul.f32 %v3802_v34, %v5484_v37  ;;  %v4022_v46 = vmul.f32 %v3804_v18, %v3635_v9  ;;  %v4032_v37 = vmul.f32 %v3802_v34, %v5487_v20 }
 0x1f1   :  { %967 = vmax.xlane.f32.xlu0 %v966_v15  ;;  %v978_v15 = vmax.f32 %v4010_v47, %v4014_v52  ;;  %v4036_v9 = vmul.f32 %v3804_v18, %v3692_v48 }
 0x1f2   :  { %5485 = vst [vmem:[#allocation17_spill] sm:$0xff] %v4018_v56  ;;  %v975_v29 = vmax.f32 %v4018_v56, %v4022_v46 }
 0x1f3   :  { %5486 = vst [vmem:[#allocation69_spill] sm:$0xff] %v4022_v46  ;;  %v5493_v46 = vld [vmem:[#allocation23_spill] sm:$0xff]  ;;  %v990_v48 = vmax.f32 %v4032_v37, %v4036_v9 }
 0x1f4   :  { %5488 = vst [vmem:[#allocation27_spill] sm:$0xff] %v4032_v37  ;;  %v4074_v37 = vmul.f32 %v3804_v18, %v3723_v10  ;;  %v5505_v10 = vld [vmem:[#allocation32_spill] sm:$0xff] }
 0x1f5   :  { %5489 = vst [vmem:[#allocation70_spill] sm:$0xff] %v4036_v9  ;;  %v4070_v9 = vmul.f32 %v3802_v34, %v5499_v16  ;;  %v5508_v16 = vld [vmem:[#allocation31_spill] sm:$0xff] }
 0x1f6   :  { %5501 = vst [vmem:[#allocation74_spill] sm:$0xff] %v4074_v37 }
 0x1f7   :  { %5500 = vst [vmem:[#allocation29_spill] sm:$0xff] %v4070_v9 }
 0x1f8   :  { %982 = vmax.xlane.f32.xlu2 %v981_v57  ;;  %979 = vmax.xlane.f32.xlu1 %v978_v15  ;;  %v4048_v57 = vmul.f32 %v3802_v34, %v5493_v46  ;;  %v4052_v15 = vmul.f32 %v3804_v18, %v3666_v59  ;;  %v4062_v46 = vmul.f32 %v3802_v34, %v5496_v25 }
 0x1f9   :  { %976 = vmax.xlane.f32.xlu0 %v975_v29  ;;  %v987_v29 = vmax.f32 %v4040_v17, %v4044_v21  ;;  %v4066_v59 = vmul.f32 %v3804_v18, %v3736_v27 }
 0x1fa   :  { %5494 = vst [vmem:[#allocation23_spill] sm:$0xff] %v4048_v57  ;;  %v984_v20 = vmax.f32 %v4048_v57, %v4052_v15 }
 0x1fb   :  { %5495 = vst [vmem:[#allocation72_spill] sm:$0xff] %v4052_v15  ;;  %v5502_v15 = vld [vmem:[#allocation28_spill] sm:$0xff]  ;;  %v999_v27 = vmax.f32 %v4062_v46, %v4066_v59 }
 0x1fc   :  { %5497 = vst [vmem:[#allocation30_spill] sm:$0xff] %v4062_v46  ;;  %v4104_v46 = vmul.f32 %v3804_v18, %v3749_v19  ;;  %v1110_v19 = vadd.f32 %v3818_v61, %v3814_v58  ;;  %v3245_v58 = vld [vmem:[#allocation3 + $0x340] sm:$0xff] }
 0x1fd   :  { %5498 = vst [vmem:[#allocation73_spill] sm:$0xff] %v4066_v59  ;;  %v4100_v59 = vmul.f32 %v3802_v34, %v5508_v16  ;;  %v1119_v16 = vadd.f32 %v3838_v62, %v3834_v60  ;;  %v3240_v62 = vld [vmem:[#allocation3 + $0x318] sm:$0xff] }
 0x1fe   :  { %5510 = vst [vmem:[#allocation77_spill] sm:$0xff] %v4104_v46 }
 0x1ff   :  { %5509 = vst [vmem:[#allocation31_spill] sm:$0xff] %v4100_v59 }
 0x200   :  { %991 = vmax.xlane.f32.xlu2 %v990_v48  ;;  %988 = vmax.xlane.f32.xlu1 %v987_v29  ;;  %v4078_v48 = vmul.f32 %v3802_v34, %v5502_v15  ;;  %v4082_v29 = vmul.f32 %v3804_v18, %v3709_v2  ;;  %v4092_v15 = vmul.f32 %v3802_v34, %v5505_v10 }
 0x201   :  { %985 = vmax.xlane.f32.xlu0 %v984_v20  ;;  %v996_v20 = vmax.f32 %v4070_v9, %v4074_v37  ;;  %v4096_v2 = vmul.f32 %v3804_v18, %v3758_v45  ;;  %v1116_v45 = vadd.f32 %v3811_v30, %v3807_v31  ;;  %v1104_v34 = vadd.f32 %v3825_v24, %v3821_v5 }
 0x202   :  { %5503 = vst [vmem:[#allocation28_spill] sm:$0xff] %v4078_v48  ;;  %v993_v25 = vmax.f32 %v4078_v48, %v4082_v29  ;;  %v1125_v18 = vadd.f32 %v3872_v38, %v3868_v36  ;;  %v1113_v10 = vadd.f32 %v3845_v23, %v3841_v42  ;;  %v3238_v36 = vld [vmem:[#allocation3 + $0x328] sm:$0xff] }
 0x203   :  { %5504 = vst [vmem:[#allocation75_spill] sm:$0xff] %v4082_v29  ;;  %v3246_v42 = vld [vmem:[#allocation3 + $0x348] sm:$0xff] }
 0x204   :  { %5506 = vst [vmem:[#allocation32_spill] sm:$0xff] %v4092_v15 }
 0x205   :  { %5507 = vst [vmem:[#allocation76_spill] sm:$0xff] %v4096_v2 }
 0x208   :  { %1000 = vmax.xlane.f32.xlu2 %v999_v27  ;;  %997 = vmax.xlane.f32.xlu1 %v996_v20  ;;  %v1107_v27 = vadd.f32 %v3852_v14, %v3848_v43  ;;  %v1005_v20 = vmax.f32 %v4092_v15, %v4096_v2 }
 0x209   :  { %994 = vmax.xlane.f32.xlu0 %v993_v25  ;;  %v1002_v25 = vmax.f32 %v4100_v59, %v4104_v46 }
 0x210   :  { %1108 = vadd.xlane.f32.xlu2 %v1107_v27  ;;  %1006 = vmax.xlane.f32.xlu1 %v1005_v20  ;;  %v1134_v27 = vadd.f32 %v3899_v4, %v3895_v7  ;;  %v1122_v20 = vadd.f32 %v3879_v13, %v3875_v41 }
 0x211   :  { %1003 = vmax.xlane.f32.xlu0 %v1002_v25  ;;  %v1128_v25 = vadd.f32 %v3865_v63, %v3861_v51  ;;  %v3239_v63 = vld [vmem:[#allocation3 + $0x310] sm:$0xff] }
 0x218   :  { %1117 = vadd.xlane.f32.xlu2 %v1116_v45  ;;  %1105 = vadd.xlane.f32.xlu1 %v1104_v34  ;;  %v1143_v45 = vadd.f32 %v3926_v50, %v3922_v8  ;;  %v1131_v34 = vadd.f32 %v3906_v53, %v3902_v44  ;;  %v3224_v50 = vld [vmem:[#allocation3 + $0x2a8] sm:$0xff] }
 0x219   :  { %1111 = vadd.xlane.f32.xlu0 %v1110_v19  ;;  %v1137_v19 = vadd.f32 %v3892_v26, %v3888_v32  ;;  %v1149_v32 = vadd.f32 %v3962_v49, %v3958_v35 }
 0x220   :  { %1126 = vadd.xlane.f32.xlu2 %v1125_v18  ;;  %1114 = vadd.xlane.f32.xlu1 %v1113_v10 }
 0x221   :  { %1120 = vadd.xlane.f32.xlu0 %v1119_v16 }
 0x228   :  { %1135 = vadd.xlane.f32.xlu2 %v1134_v27  ;;  %1123 = vadd.xlane.f32.xlu1 %v1122_v20  ;;  %v1152_v27 = vadd.f32 %v3955_v1, %v3951_v12  ;;  %v1140_v20 = vadd.f32 %v3933_v33, %v3929_v3  ;;  %v1155_v1 = vadd.f32 %v3947_v54, %v3943_v6  ;;  %v5278_v12 = vmov 0.0  }
 0x229   :  { %1129 = vadd.xlane.f32.xlu0 %v1128_v25  ;;  %v1146_v25 = vadd.f32 %v3919_v55, %v3915_v39  ;;  %1361 = vst.msk [vmem:[#allocation2] sm:$0xff] %vm1360_vm14, %v5278_v12 }
 0x22a   :  { %1362 = vst.msk [vmem:[#allocation2 + $0x8] sm:$0xff] %vm1360_vm14, %v5278_v12 }
 0x22b   :  { %1365 = vst.msk [vmem:[#allocation2 + $0x18] sm:$0xff] %vm1360_vm14, %v5278_v12 }
 0x22c   :  { %1366 = vst.msk [vmem:[#allocation2 + $0x20] sm:$0xff] %vm1360_vm14, %v5278_v12 }
 0x230   :  { %1144 = vadd.xlane.f32.xlu2 %v1143_v45  ;;  %1132 = vadd.xlane.f32.xlu1 %v1131_v34 }
 0x231   :  { %1138 = vadd.xlane.f32.xlu0 %v1137_v19  ;;  %v1161_v19 = vadd.f32 %v3984_v0, %v3980_v22  ;;  %v5286_v0 = vlaneseq }
 0x233   :  { %v4136_v18 = vpop.xlane.xlu2 %925  ;;  %v920_v10 = vpop.xlane.xlu1 %919  ;;  %v4165_v54 = vand.u32 127, %v5286_v0  ;;  %v5515_v0 = vld [vmem:[#allocation21_spill] sm:$0xff] }
 0x234   :  { %v914_v16 = vpop.xlane.xlu0 %913 }
 0x235   :  { %5512 = vst [vmem:[#allocation78_spill] sm:$0xff] %v4165_v54  ;;  %v4168_v12 = vadd.s32 4294967288, %v4165_v54  ;;  %v1434_v39 = vperm.slane %v914_v16, %v4165_v54 }
 0x237   :  { %5513 = vst [vmem:[#allocation79_spill] sm:$0xff] %v4168_v12 }
 0x238   :  { %1153 = vadd.xlane.f32.xlu2 %v1152_v27  ;;  %1141 = vadd.xlane.f32.xlu1 %v1140_v20 }
 0x239   :  { %1147 = vadd.xlane.f32.xlu0 %v1146_v25 }
 0x23b   :  { %v929_v26 = vpop.xlane.xlu2 %928  ;;  %v923_v45 = vpop.xlane.xlu1 %922 }
 0x23c   :  { %v917_v34 = vpop.xlane.xlu0 %916 }
 0x23d   :  { %v1436_v55 = vperm.slane %v917_v34, %v4168_v12 }
 0x23f   :  { %v1438_v34 = vsel %vm1437_vm15, %v1436_v55, %v1434_v39 }
 0x240   :  { %1162 = vadd.xlane.f32.xlu2 %v1161_v19  ;;  %1150 = vadd.xlane.f32.xlu1 %v1149_v32  ;;  %v1170_v19 = vadd.f32 %v4014_v52, %v4010_v47  ;;  %v1158_v32 = vadd.f32 %v3992_v28, %v3988_v40  ;;  %v1179_v52 = vadd.f32 %v4044_v21, %v4040_v17  ;;  %v3219_v40 = vld [vmem:[#allocation3 + $0x290] sm:$0xff] }
 0x241   :  { %1156 = vadd.xlane.f32.xlu0 %v1155_v1  ;;  %v5511_v1 = vld [vmem:[#allocation64_spill] sm:$0xff]  ;;  %v1440_v47 = vperm.slane %v923_v45, %v4168_v12  ;;  %v1443_v21 = vperm.slane %v929_v26, %v4168_v12 }
 0x242   :  { %v1164_v22 = vadd.f32 %v5511_v1, %v3972_v11  ;;  %v5516_v11 = vld [vmem:[#allocation67_spill] sm:$0xff]  ;;  %v5517_v26 = vld [vmem:[#allocation72_spill] sm:$0xff] }
 0x243   :  { %v938_v27 = vpop.xlane.xlu2 %937  ;;  %v935_v20 = vpop.xlane.xlu1 %934 }
 0x244   :  { %v932_v25 = vpop.xlane.xlu0 %931  ;;  %v1446_v17 = vperm.slane %v935_v20, %v4168_v12  ;;  %v1448_v20 = vperm.slane %v938_v27, %v4165_v54 }
 0x248   :  { %1171 = vadd.xlane.f32.xlu2 %v1170_v19  ;;  %1159 = vadd.xlane.f32.xlu1 %v1158_v32  ;;  %v5514_v19 = vld [vmem:[#allocation69_spill] sm:$0xff]  ;;  %v1173_v32 = vadd.f32 %v5516_v11, %v5515_v0 }
 0x249   :  { %1165 = vadd.xlane.f32.xlu0 %v1164_v22  ;;  %v1167_v1 = vadd.f32 %v5514_v19, %v4018_v56  ;;  %v1439_v22 = vperm.slane %v920_v10, %v4165_v54  ;;  %v1445_v19 = vperm.slane %v932_v25, %v4165_v54 }
 0x24b   :  { %v947_v6 = vpop.xlane.xlu2 %946  ;;  %v944_v49 = vpop.xlane.xlu1 %943  ;;  %v1441_v45 = vsel %vm1437_vm15, %v1440_v47, %v1439_v22  ;;  %v1176_v47 = vadd.f32 %v5517_v26, %v4048_v57  ;;  %v1447_v25 = vsel %vm1437_vm15, %v1446_v17, %v1445_v19  ;;  %v5519_v22 = vld [vmem:[#allocation70_spill] sm:$0xff] }
 0x24c   :  { %v941_v35 = vpop.xlane.xlu0 %940  ;;  %v1532_v55 = vsel %vm496_vm2, %v1441_v45, %v1438_v34  ;;  %v5520_v17 = vld [vmem:[#allocation34_spill] sm:$0xff] }
 0x24d   :  { %v1449_v10 = vperm.slane %v941_v35, %v4168_v12  ;;  %v1451_v35 = vperm.slane %v944_v49, %v4165_v54  ;;  %v775_v19 = vrot.slane %v5520_v17, 1  ;;  %v3204_v17 = vld [vmem:[#allocation3 + $0x208] sm:$0xff] }
 0x250   :  { %1180 = vadd.xlane.f32.xlu2 %v1179_v52  ;;  %1168 = vadd.xlane.f32.xlu1 %v1167_v1  ;;  %v1442_v52 = vperm.slane %v4136_v18, %v4165_v54  ;;  %v1188_v1 = vadd.f32 %v4074_v37, %v4070_v9  ;;  %v1452_v18 = vperm.slane %v947_v6, %v4168_v12 }
 0x251   :  { %1174 = vadd.xlane.f32.xlu0 %v1173_v32  ;;  %v5518_v32 = vld [vmem:[#allocation27_spill] sm:$0xff]  ;;  %v1450_v37 = vsel %vm1437_vm15, %v1449_v10, %v1448_v20  ;;  %v1185_v20 = vadd.f32 %v4082_v29, %v4078_v48  ;;  %v3215_v29 = vld [vmem:[#allocation3 + $0x250] sm:$0xff] }
 0x252   :  { %v1444_v39 = vsel %vm1437_vm15, %v1443_v21, %v1442_v52  ;;  %v1182_v0 = vadd.f32 %v5519_v22, %v5518_v32  ;;  %v1453_v49 = vsel %vm1437_vm15, %v1452_v18, %v1451_v35  ;;  %v3216_v22 = vld [vmem:[#allocation3 + $0x258] sm:$0xff] }
 0x253   :  { %v956_v56 = vpop.xlane.xlu2 %955  ;;  %v953_v11 = vpop.xlane.xlu1 %952  ;;  %v1534_v27 = vsel %vm1533_vm0, %v1444_v39, %v1532_v55  ;;  %v1197_v39 = vadd.f32 %v4096_v2, %v4092_v15  ;;  %v3210_v2 = vld [vmem:[#allocation3 + $0x228] sm:$0xff] }
 0x254   :  { %v950_v16 = vpop.xlane.xlu0 %949  ;;  %v1455_v26 = vperm.slane %v953_v11, %v4168_v12  ;;  %v1535_v6 = vsel %vm505_vm1, %v1447_v25, %v1534_v27  ;;  %v5522_v25 = vld [vmem:[#allocation73_spill] sm:$0xff] }
 0x255   :  { %v1454_v21 = vperm.slane %v950_v16, %v4165_v54  ;;  %v1537_v45 = vsel %vm1536_vm3, %v1450_v37, %v1535_v6  ;;  %v1457_v16 = vperm.slane %v956_v56, %v4165_v54  ;;  %v5521_v56 = vld [vmem:[#allocation30_spill] sm:$0xff] }
 0x256   :  { %v1539_v37 = vsel %vm1538_vm5, %v1453_v49, %v1537_v45  ;;  %v1191_v18 = vadd.f32 %v5522_v25, %v5521_v56  ;;  %v3205_v49 = vld [vmem:[#allocation3 + $0x210] sm:$0xff] }
 0x257   :  { %v1456_v11 = vsel %vm1437_vm15, %v1455_v26, %v1454_v21  ;;  %v3203_v21 = vld [vmem:[#allocation3 + $0x200] sm:$0xff] }
 0x258   :  { %1189 = vadd.xlane.f32.xlu2 %v1188_v1  ;;  %1177 = vadd.xlane.f32.xlu1 %v1176_v47  ;;  %v4215_v1 = vperm.slane %v775_v19, 0  ;;  %v4217_v47 = vperm.slane %v775_v19, 1  ;;  %v1541_v55 = vsel %vm1540_vm6, %v1456_v11, %v1539_v37  ;;  %v3206_v11 = vld [vmem:[#allocation3 + $0x218] sm:$0xff] }
 0x259   :  { %1183 = vadd.xlane.f32.xlu0 %v1182_v0 }
 0x25a   :  { %v4231_v27 = vmul.f32 %v3203_v21, %v4215_v1  ;;  %v4234_v19 = vmul.f32 %v3204_v17, %v4217_v47  ;;  %v4239_v45 = vmul.f32 %v3205_v49, %v4215_v1  ;;  %v3209_v49 = vld [vmem:[#allocation3 + $0x220] sm:$0xff]  ;;  %v4291_v48 = vmul.f32 %v3215_v29, %v4215_v1 }
 0x25b   :  { %v4208_v34 = vpop.xlane.xlu2 %964  ;;  %v4211_v52 = vpop.xlane.xlu1 %961  ;;  %v4294_v32 = vmul.f32 %v3216_v22, %v4217_v47  ;;  %v4314_v33 = vmul.f32 %v3219_v40, %v4215_v1  ;;  %v3222_v40 = vld [vmem:[#allocation3 + $0x288] sm:$0xff]  ;;  %v4431_v13 = vmul.f32 %v3238_v36, %v4217_v47  ;;  %v4436_v51 = vmul.f32 %v3239_v63, %v4215_v1 }
 0x25c   :  { %v959_v10 = vpop.xlane.xlu0 %958  ;;  %v1008_v37 = vmax.f32 %v4231_v27, %v4234_v19  ;;  %v1461_v3 = vperm.slane %v4208_v34, %v4168_v12  ;;  %v4329_v53 = vmul.f32 %v3222_v40, %v4217_v47  ;;  %v3223_v34 = vld [vmem:[#allocation3 + $0x2a0] sm:$0xff]  ;;  %v4439_v60 = vmul.f32 %v3240_v62, %v4217_v47 }
 0x25d   :  { %v1458_v0 = vperm.slane %v959_v10, %v4168_v12  ;;  %v4242_v10 = vmul.f32 %v3206_v11, %v4217_v47  ;;  %v4265_v11 = vmul.f32 %v3209_v49, %v4215_v1  ;;  %v1023_v28 = vmax.f32 %v4291_v48, %v4294_v32  ;;  %5539 = vst [vmem:[#allocation94_spill] sm:$0xff] %v4431_v13 }
 0x25e   :  { %5525 = vst [vmem:[#allocation80_spill] sm:$0xff] %v4329_v53  ;;  %v1059_v63 = vmax.f32 %v4436_v51, %v4439_v60  ;;  %v4462_v23 = vmul.f32 %v3245_v58, %v4215_v1  ;;  %v4465_v24 = vmul.f32 %v3246_v42, %v4217_v47 }
 0x25f   :  { %v1459_v26 = vsel %vm1437_vm15, %v1458_v0, %v1457_v16  ;;  %5540 = vst [vmem:[#allocation95_spill] sm:$0xff] %v4436_v51  ;;  %v3262_v51 = vld [vmem:[#allocation3 + $0x3e8] sm:$0xff] }
 0x260   :  { %v1543_v35 = vsel %vm1542_vm7, %v1459_v26, %v1541_v55  ;;  %1198 = vadd.xlane.f32.xlu2 %v1197_v39  ;;  %1186 = vadd.xlane.f32.xlu1 %v1185_v20  ;;  %v1194_v39 = vadd.f32 %v4104_v46, %v4100_v59  ;;  %v1011_v55 = vmax.f32 %v4239_v45, %v4242_v10  ;;  %v5523_v26 = vmov 0.0   ;;  %v3207_v20 = vld [vmem:[#allocation3 + $0x230] sm:$0xff] }
 0x261   :  { %1569 = vst.msk [vmem:[#allocation2 + $0x3] sm:$0xff] %vm693_vm4, %v1543_v35  ;;  %1192 = vadd.xlane.f32.xlu0 %v1191_v18  ;;  %v4257_v18 = vmul.f32 %v3207_v20, %v4215_v1  ;;  %v3208_v35 = vld [vmem:[#allocation3 + $0x238] sm:$0xff]  ;;  %v1068_v58 = vmax.f32 %v4462_v23, %v4465_v24 }
 0x262   :  { %1364 = vst.msk [vmem:[#allocation2 + $0x10] sm:$0x3f] %vm1363_vm8, %v5523_v26  ;;  %v4260_v21 = vmul.f32 %v3208_v35, %v4217_v47 }
 0x263   :  { %v4236_v6 = vpop.xlane.xlu2 %973  ;;  %v4244_v16 = vpop.xlane.xlu1 %970  ;;  %1367 = vst.msk [vmem:[#allocation2 + $0x28] sm:$0x3f] %vm1363_vm8, %v5523_v26  ;;  %v3212_v26 = vld [vmem:[#allocation3 + $0x248] sm:$0xff] }
 0x264   :  { %v4246_v0 = vpop.xlane.xlu0 %967  ;;  %v4274_v20 = vmul.f32 %v3212_v26, %v4217_v47  ;;  %v1017_v46 = vmax.f32 %v4257_v18, %v4260_v21  ;;  %v3214_v26 = vld [vmem:[#allocation3 + $0x268] sm:$0xff]  ;;  %v1464_v29 = vperm.slane %v4244_v16, %v4168_v12  ;;  %v1460_v16 = vperm.slane %v4211_v52, %v4165_v54  ;;  %5541 = vst [vmem:[#allocation96_spill] sm:$0xff] %v4439_v60 }
 0x265   :  { %v4288_v25 = vmul.f32 %v3214_v26, %v4217_v47  ;;  %v1463_v22 = vperm.slane %v4246_v0, %v4165_v54  ;;  %v3220_v0 = vld [vmem:[#allocation3 + $0x298] sm:$0xff]  ;;  %v4332_v52 = vmul.f32 %v3223_v34, %v4215_v1  ;;  %5546 = vst [vmem:[#allocation101_spill] sm:$0xff] %v4462_v23  ;;  %v3260_v60 = vld [vmem:[#allocation3 + $0x3c8] sm:$0xff] }
 0x266   :  { %v4321_v4 = vmul.f32 %v3220_v0, %v4217_v47  ;;  %5547 = vst [vmem:[#allocation102_spill] sm:$0xff] %v4465_v24  ;;  %v5556_v24 = vld [vmem:[#allocation33_spill] sm:$0xff] }
 0x267   :  { %5526 = vst [vmem:[#allocation81_spill] sm:$0xff] %v4332_v52 }
 0x268   :  { %1009 = vmax.xlane.f32.xlu2 %v1008_v37  ;;  %1195 = vadd.xlane.f32.xlu1 %v1194_v39  ;;  %v4268_v37 = vmul.f32 %v3210_v2, %v4217_v47  ;;  %v3211_v39 = vld [vmem:[#allocation3 + $0x240] sm:$0xff] }
 0x269   :  { %1012 = vmax.xlane.f32.xlu0 %v1011_v55  ;;  %v4271_v55 = vmul.f32 %v3211_v39, %v4215_v1  ;;  %v3213_v39 = vld [vmem:[#allocation3 + $0x260] sm:$0xff] }
 0x26a   :  { %v1014_v49 = vmax.f32 %v4265_v11, %v4268_v37  ;;  %v4285_v59 = vmul.f32 %v3213_v39, %v4215_v1 }
 0x26b   :  { %v4262_v17 = vpop.xlane.xlu2 %982  ;;  %v4276_v35 = vpop.xlane.xlu1 %979  ;;  %v1020_v2 = vmax.f32 %v4271_v55, %v4274_v20 }
 0x26c   :  { %v977_v15 = vpop.xlane.xlu0 %976  ;;  %v1026_v9 = vmax.f32 %v4285_v59, %v4288_v25 }
 0x270   :  { %1018 = vmax.xlane.f32.xlu2 %v1017_v46  ;;  %1015 = vmax.xlane.f32.xlu1 %v1014_v49  ;;  %v3217_v46 = vld [vmem:[#allocation3 + $0x270] sm:$0xff] }
 0x271   :  { %1021 = vmax.xlane.f32.xlu0 %v1020_v2  ;;  %v4297_v49 = vmul.f32 %v3217_v46, %v4215_v1  ;;  %v3218_v2 = vld [vmem:[#allocation3 + $0x278] sm:$0xff] }
 0x272   :  { %v4300_v39 = vmul.f32 %v3218_v2, %v4217_v47  ;;  %v1467_v2 = vperm.slane %v977_v15, %v4168_v12  ;;  %v1466_v15 = vperm.slane %v4236_v6, %v4165_v54  ;;  %v1469_v6 = vperm.slane %v4276_v35, %v4165_v54 }
 0x273   :  { %v992_v56 = vpop.xlane.xlu2 %991  ;;  %v989_v57 = vpop.xlane.xlu1 %988  ;;  %v1035_v35 = vmax.f32 %v4314_v33, %v4321_v4 }
 0x274   :  { %v986_v26 = vpop.xlane.xlu0 %985  ;;  %v1029_v46 = vmax.f32 %v4297_v49, %v4300_v39  ;;  %v1468_v40 = vsel %vm1437_vm15, %v1467_v2, %v1466_v15  ;;  %v1473_v8 = vperm.slane %v989_v57, %v4168_v12 }
 0x275   :  { %v1472_v34 = vperm.slane %v986_v26, %v4165_v54  ;;  %v1475_v26 = vperm.slane %v992_v56, %v4165_v54  ;;  %v3226_v56 = vld [vmem:[#allocation3 + $0x2c8] sm:$0xff] }
 0x278   :  { %1027 = vmax.xlane.f32.xlu2 %v1026_v9  ;;  %1024 = vmax.xlane.f32.xlu1 %v1023_v28  ;;  %v3221_v9 = vld [vmem:[#allocation3 + $0x280] sm:$0xff]  ;;  %v1465_v28 = vsel %vm1437_vm15, %v1464_v29, %v1463_v22  ;;  %v1462_v29 = vsel %vm1437_vm15, %v1461_v3, %v1460_v16  ;;  %v1474_v3 = vsel %vm1437_vm15, %v1473_v8, %v1472_v34  ;;  %v3227_v8 = vld [vmem:[#allocation3 + $0x2b0] sm:$0xff] }
 0x279   :  { %1030 = vmax.xlane.f32.xlu0 %v1029_v46  ;;  %v4326_v7 = vmul.f32 %v3221_v9, %v4215_v1  ;;  %v1470_v46 = vperm.slane %v4262_v17, %v4168_v12  ;;  %v4340_v9 = vmul.f32 %v3224_v50, %v4217_v47  ;;  %v1544_v22 = vsel %vm496_vm2, %v1465_v28, %v1462_v29 }
 0x27a   :  { %v1545_v57 = vsel %vm1533_vm0, %v1468_v40, %v1544_v22  ;;  %v4366_v29 = vmul.f32 %v3226_v56, %v4217_v47 }
 0x27b   :  { %5524 = vst [vmem:[#allocation34_spill] sm:$0xff] %v4326_v7  ;;  %v1001_v0 = vpop.xlane.xlu2 %1000  ;;  %v998_v44 = vpop.xlane.xlu1 %997  ;;  %v1032_v50 = vmax.f32 %v4326_v7, %v4329_v53  ;;  %v1471_v2 = vsel %vm1437_vm15, %v1470_v46, %v1469_v6  ;;  %v1038_v15 = vmax.f32 %v4332_v52, %v4340_v9  ;;  %v3225_v6 = vld [vmem:[#allocation3 + $0x2c0] sm:$0xff] }
 0x27c   :  { %5527 = vst [vmem:[#allocation82_spill] sm:$0xff] %v4340_v9  ;;  %v995_v38 = vpop.xlane.xlu0 %994  ;;  %v1478_v16 = vperm.slane %v998_v44, %v4165_v54  ;;  %v1546_v46 = vsel %vm505_vm1, %v1471_v2, %v1545_v57  ;;  %v4363_v40 = vmul.f32 %v3225_v6, %v4215_v1  ;;  %v3230_v2 = vld [vmem:[#allocation3 + $0x2d8] sm:$0xff] }
 0x27d   :  { %v1476_v17 = vperm.slane %v995_v38, %v4168_v12  ;;  %v1479_v38 = vperm.slane %v1001_v0, %v4168_v12  ;;  %5529 = vst [vmem:[#allocation84_spill] sm:$0xff] %v4366_v29  ;;  %v4369_v0 = vmul.f32 %v3227_v8, %v4215_v1  ;;  %v1547_v44 = vsel %vm1536_vm3, %v1474_v3, %v1546_v46 }
 0x27e   :  { %5528 = vst [vmem:[#allocation83_spill] sm:$0xff] %v4363_v40  ;;  %v4381_v57 = vmul.f32 %v3230_v2, %v4217_v47  ;;  %v1044_v8 = vmax.f32 %v4363_v40, %v4366_v29 }
 0x27f   :  { %v1477_v28 = vsel %vm1437_vm15, %v1476_v17, %v1475_v26  ;;  %v3228_v17 = vld [vmem:[#allocation3 + $0x2b8] sm:$0xff]  ;;  %v1480_v26 = vsel %vm1437_vm15, %v1479_v38, %v1478_v16 }
 0x280   :  { %1036 = vmax.xlane.f32.xlu2 %v1035_v35  ;;  %1033 = vmax.xlane.f32.xlu1 %v1032_v50  ;;  %v4375_v22 = vmul.f32 %v3228_v17, %v4217_v47  ;;  %v3229_v35 = vld [vmem:[#allocation3 + $0x2d0] sm:$0xff]  ;;  %5531 = vst [vmem:[#allocation86_spill] sm:$0xff] %v4381_v57 }
 0x281   :  { %1039 = vmax.xlane.f32.xlu0 %v1038_v15  ;;  %v4378_v50 = vmul.f32 %v3229_v35, %v4215_v1  ;;  %v1548_v15 = vsel %vm1538_vm5, %v1477_v28, %v1547_v44  ;;  %v3231_v28 = vld [vmem:[#allocation3 + $0x2f0] sm:$0xff] }
 0x282   :  { %v1549_v17 = vsel %vm1540_vm6, %v1480_v26, %v1548_v15  ;;  %v1041_v2 = vmax.f32 %v4369_v0, %v4375_v22  ;;  %v4398_v44 = vmul.f32 %v3231_v28, %v4215_v1  ;;  %v3232_v26 = vld [vmem:[#allocation3 + $0x2f8] sm:$0xff] }
 0x283   :  { %v4372_v34 = vpop.xlane.xlu2 %1108  ;;  %5530 = vst [vmem:[#allocation85_spill] sm:$0xff] %v4378_v50  ;;  %v1007_v6 = vpop.xlane.xlu1 %1006  ;;  %v1047_v38 = vmax.f32 %v4378_v50, %v4381_v57  ;;  %v4401_v15 = vmul.f32 %v3232_v26, %v4217_v47 }
 0x284   :  { %v1004_v3 = vpop.xlane.xlu0 %1003  ;;  %v1482_v46 = vperm.slane %v1007_v6, %v4168_v12  ;;  %5532 = vst [vmem:[#allocation87_spill] sm:$0xff] %v4398_v44 }
 0x285   :  { %v1481_v56 = vperm.slane %v1004_v3, %v4165_v54  ;;  %5533 = vst [vmem:[#allocation88_spill] sm:$0xff] %v4401_v15  ;;  %v3233_v3 = vld [vmem:[#allocation3 + $0x2e0] sm:$0xff]  ;;  %v1053_v26 = vmax.f32 %v4398_v44, %v4401_v15  ;;  %v3255_v15 = vld [vmem:[#allocation3 + $0x3b0] sm:$0xff] }
 0x287   :  { %v1483_v35 = vsel %vm1437_vm15, %v1482_v46, %v1481_v56  ;;  %v4406_v46 = vmul.f32 %v3233_v3, %v4215_v1  ;;  %v3234_v56 = vld [vmem:[#allocation3 + $0x2e8] sm:$0xff] }
 0x288   :  { %v1550_v16 = vsel %vm1542_vm7, %v1483_v35, %v1549_v17  ;;  %1045 = vmax.xlane.f32.xlu2 %v1044_v8  ;;  %1042 = vmax.xlane.f32.xlu1 %v1041_v2  ;;  %v4409_v8 = vmul.f32 %v3234_v56, %v4217_v47  ;;  %v3235_v17 = vld [vmem:[#allocation3 + $0x300] sm:$0xff]  ;;  %v3236_v2 = vld [vmem:[#allocation3 + $0x308] sm:$0xff] }
 0x289   :  { %1570 = vst.msk [vmem:[#allocation2 + $0xb] sm:$0xff] %vm693_vm4, %v1550_v16  ;;  %1048 = vmax.xlane.f32.xlu0 %v1047_v38  ;;  %v4412_v35 = vmul.f32 %v3235_v17, %v4215_v1  ;;  %v4415_v38 = vmul.f32 %v3236_v2, %v4217_v47  ;;  %v3237_v17 = vld [vmem:[#allocation3 + $0x320] sm:$0xff] }
 0x28a   :  { %5534 = vst [vmem:[#allocation89_spill] sm:$0xff] %v4406_v46  ;;  %v1050_v3 = vmax.f32 %v4406_v46, %v4409_v8  ;;  %v4428_v2 = vmul.f32 %v3237_v17, %v4215_v1 }
 0x28b   :  { %v4403_v6 = vpop.xlane.xlu2 %1117  ;;  %5535 = vst [vmem:[#allocation90_spill] sm:$0xff] %v4409_v8  ;;  %v4417_v16 = vpop.xlane.xlu1 %1105  ;;  %v1056_v56 = vmax.f32 %v4412_v35, %v4415_v38 }
 0x28c   :  { %5536 = vst [vmem:[#allocation91_spill] sm:$0xff] %v4412_v35  ;;  %v4419_v28 = vpop.xlane.xlu0 %1111  ;;  %v1062_v31 = vmax.f32 %v4428_v2, %v4431_v13  ;;  %v4511_v35 = vadd.s32 4294967272, %v4165_v54 }
 0x28d   :  { %5537 = vst [vmem:[#allocation92_spill] sm:$0xff] %v4415_v38 }
 0x28e   :  { %5538 = vst [vmem:[#allocation93_spill] sm:$0xff] %v4428_v2 }
 0x290   :  { %1054 = vmax.xlane.f32.xlu2 %v1053_v26  ;;  %1051 = vmax.xlane.f32.xlu1 %v1050_v3  ;;  %v3241_v26 = vld [vmem:[#allocation3 + $0x330] sm:$0xff] }
 0x291   :  { %1057 = vmax.xlane.f32.xlu0 %v1056_v56  ;;  %v4442_v3 = vmul.f32 %v3241_v26, %v4215_v1  ;;  %v3242_v56 = vld [vmem:[#allocation3 + $0x338] sm:$0xff]  ;;  %v3243_v26 = vld [vmem:[#allocation3 + $0x350] sm:$0xff] }
 0x292   :  { %v4445_v17 = vmul.f32 %v3242_v56, %v4217_v47  ;;  %v4454_v14 = vmul.f32 %v3243_v26, %v4215_v1  ;;  %v3244_v56 = vld [vmem:[#allocation3 + $0x358] sm:$0xff] }
 0x293   :  { %v4433_v41 = vpop.xlane.xlu2 %1126  ;;  %5542 = vst [vmem:[#allocation97_spill] sm:$0xff] %v4442_v3  ;;  %v1115_v36 = vpop.xlane.xlu1 %1114  ;;  %v4457_v43 = vmul.f32 %v3244_v56, %v4217_v47 }
 0x294   :  { %5543 = vst [vmem:[#allocation98_spill] sm:$0xff] %v4445_v17  ;;  %v1121_v30 = vpop.xlane.xlu0 %1120  ;;  %v1065_v62 = vmax.f32 %v4442_v3, %v4445_v17  ;;  %v3251_v17 = vld [vmem:[#allocation3 + $0x370] sm:$0xff]  ;;  %v1299_v23 = vmul.f32 %v1115_v36, %v5556_v24  ;;  %v4514_v36 = vadd.s32 4294967280, %v4165_v54 }
 0x295   :  { %5544 = vst [vmem:[#allocation99_spill] sm:$0xff] %v4454_v14  ;;  %v1071_v12 = vmax.f32 %v4454_v14, %v4457_v43  ;;  %v3252_v14 = vld [vmem:[#allocation3 + $0x378] sm:$0xff] }
 0x296   :  { %5545 = vst [vmem:[#allocation100_spill] sm:$0xff] %v4457_v43  ;;  %v4486_v43 = vmul.f32 %v3251_v17, %v4215_v1  ;;  %v4489_v3 = vmul.f32 %v3252_v14, %v4217_v47  ;;  %v4499_v17 = vmul.f32 %v3255_v15, %v4215_v1  ;;  %v1296_v15 = vmul.f32 %v4417_v16, %v5556_v24 }
 0x297   :  { %v1297_v16 = vmul.f32 %v4372_v34, %v5556_v24 }
 0x298   :  { %1063 = vmax.xlane.f32.xlu2 %v1062_v31  ;;  %1060 = vmax.xlane.f32.xlu1 %v1059_v63  ;;  %v3247_v31 = vld [vmem:[#allocation3 + $0x360] sm:$0xff]  ;;  %5552 = vst [vmem:[#allocation107_spill] sm:$0xff] %v4486_v43  ;;  %v1638_v34 = vperm.slane %v1296_v15, %v4514_v36  ;;  %v4554_v15 = vmul.f32 %v3262_v51, %v4217_v47 }
 0x299   :  { %1066 = vmax.xlane.f32.xlu0 %v1065_v62  ;;  %v4468_v63 = vmul.f32 %v3247_v31, %v4215_v1  ;;  %v3248_v62 = vld [vmem:[#allocation3 + $0x368] sm:$0xff]  ;;  %v3249_v31 = vld [vmem:[#allocation3 + $0x380] sm:$0xff]  ;;  %5553 = vst [vmem:[#allocation108_spill] sm:$0xff] %v4489_v3 }
 0x29a   :  { %v4471_v26 = vmul.f32 %v3248_v62, %v4217_v47  ;;  %v4480_v13 = vmul.f32 %v3249_v31, %v4215_v1  ;;  %v3250_v62 = vld [vmem:[#allocation3 + $0x388] sm:$0xff]  ;;  %5557 = vst [vmem:[#allocation33_spill] sm:$0xff] %v4499_v17 }
 0x29b   :  { %v4459_v61 = vpop.xlane.xlu2 %1135  ;;  %5548 = vst [vmem:[#allocation103_spill] sm:$0xff] %v4468_v63  ;;  %v1124_v56 = vpop.xlane.xlu1 %1123  ;;  %v4483_v2 = vmul.f32 %v3250_v62, %v4217_v47 }
 0x29c   :  { %5549 = vst [vmem:[#allocation104_spill] sm:$0xff] %v4471_v26  ;;  %v1130_v5 = vpop.xlane.xlu0 %1129  ;;  %v1074_v42 = vmax.f32 %v4468_v63, %v4471_v26  ;;  %v3253_v26 = vld [vmem:[#allocation3 + $0x390] sm:$0xff] }
 0x29d   :  { %5550 = vst [vmem:[#allocation105_spill] sm:$0xff] %v4480_v13  ;;  %v1080_v14 = vmax.f32 %v4480_v13, %v4483_v2  ;;  %v1301_v13 = vmul.f32 %v1121_v30, %v5556_v24  ;;  %v1302_v30 = vmul.f32 %v1124_v56, %v5556_v24  ;;  %v1303_v56 = vmul.f32 %v4433_v41, %v5556_v24 }
 0x29e   :  { %5551 = vst [vmem:[#allocation106_spill] sm:$0xff] %v4483_v2  ;;  %v1298_v2 = vmul.f32 %v4419_v28, %v5556_v24  ;;  %v1644_v28 = vperm.slane %v1299_v23, %v4511_v35 }
 0x29f   :  { %5562 = vst [vmem:[#allocation115_spill] sm:$0xff] %v4554_v15  ;;  %v1649_v29 = vperm.slane %v1302_v30, %v4514_v36  ;;  %v1650_v50 = vperm.slane %v1303_v56, %v4511_v35  ;;  %v3263_v56 = vld [vmem:[#allocation3 + $0x3d0] sm:$0xff] }
 0x2a0   :  { %1072 = vmax.xlane.f32.xlu2 %v1071_v12  ;;  %1069 = vmax.xlane.f32.xlu1 %v1068_v58  ;;  %v4492_v12 = vmul.f32 %v3253_v26, %v4215_v1  ;;  %v3254_v58 = vld [vmem:[#allocation3 + $0x398] sm:$0xff]  ;;  %v1077_v26 = vmax.f32 %v4486_v43, %v4489_v3  ;;  %v3259_v43 = vld [vmem:[#allocation3 + $0x3c0] sm:$0xff]  ;;  %v1643_v23 = vperm.slane %v1298_v2, %v4514_v36 }
 0x2a1   :  { %1075 = vmax.xlane.f32.xlu0 %v1074_v42  ;;  %v4495_v42 = vmul.f32 %v3254_v58, %v4217_v47  ;;  %v3256_v58 = vld [vmem:[#allocation3 + $0x3b8] sm:$0xff]  ;;  %v4528_v54 = vmul.f32 %v3259_v43, %v4215_v1  ;;  %v4540_v43 = vmul.f32 %v3260_v60, %v4217_v47  ;;  %v1640_v2 = vperm.slane %v1297_v16, %v4511_v35 }
 0x2a2   :  { %5554 = vst [vmem:[#allocation109_spill] sm:$0xff] %v4492_v12  ;;  %v4508_v38 = vmul.f32 %v3256_v58, %v4217_v47  ;;  %v3258_v58 = vld [vmem:[#allocation3 + $0x3a8] sm:$0xff]  ;;  %v1645_v41 = vsel %vm1641_vm9, %v1644_v28, %v1643_v23  ;;  %v1306_v16 = vmul.f32 %v4459_v61, %v5556_v24  ;;  %v1651_v23 = vsel %vm1641_vm9, %v1650_v50, %v1649_v29 }
 0x2a3   :  { %5555 = vst [vmem:[#allocation110_spill] sm:$0xff] %v4495_v42  ;;  %v1145_v31 = vpop.xlane.xlu2 %1144  ;;  %v1133_v63 = vpop.xlane.xlu1 %1132  ;;  %v1083_v44 = vmax.f32 %v4492_v12, %v4495_v42  ;;  %v3257_v42 = vld [vmem:[#allocation3 + $0x3a0] sm:$0xff]  ;;  %v4525_v3 = vmul.f32 %v3258_v58, %v4217_v47  ;;  %v1642_v51 = vsel %vm1641_vm9, %v1640_v2, %v1638_v34  ;;  %v1092_v28 = vmax.f32 %v4528_v54, %v4540_v43 }
 0x2a4   :  { %v1139_v62 = vpop.xlane.xlu0 %1138  ;;  %5558 = vst [vmem:[#allocation111_spill] sm:$0xff] %v4508_v38  ;;  %v4522_v12 = vmul.f32 %v3257_v42, %v4215_v1  ;;  %v1300_v42 = vmul.f32 %v4403_v6, %v5556_v24  ;;  %v1089_v58 = vmax.f32 %v4499_v17, %v4508_v38  ;;  %v1304_v38 = vmul.f32 %v1130_v5, %v5556_v24 }
 0x2a5   :  { %5559 = vst [vmem:[#allocation112_spill] sm:$0xff] %v4528_v54  ;;  %v4578_v61 = vmul.f32 %v3263_v56, %v4215_v1  ;;  %v1655_v50 = vperm.slane %v1306_v16, %v4514_v36 }
 0x2a6   :  { %5560 = vst [vmem:[#allocation113_spill] sm:$0xff] %v4540_v43  ;;  %v1646_v40 = vperm.slane %v1300_v42, %v4514_v36  ;;  %v1086_v57 = vmax.f32 %v4522_v12, %v4525_v3  ;;  %v1652_v42 = vperm.slane %v1304_v38, %v4514_v36 }
 0x2a7   :  { %5563 = vst [vmem:[#allocation116_spill] sm:$0xff] %v4578_v61 }
 0x2a8   :  { %1081 = vmax.xlane.f32.xlu2 %v1080_v14  ;;  %1078 = vmax.xlane.f32.xlu1 %v1077_v26  ;;  %v1305_v14 = vmul.f32 %v1133_v63, %v5556_v24  ;;  %v3261_v26 = vld [vmem:[#allocation3 + $0x3e0] sm:$0xff]  ;;  %v1647_v63 = vperm.slane %v1301_v13, %v4511_v35 }
 0x2a9   :  { %1084 = vmax.xlane.f32.xlu0 %v1083_v44  ;;  %v4549_v6 = vmul.f32 %v3261_v26, %v4215_v1  ;;  %v1307_v26 = vmul.f32 %v1139_v62, %v5556_v24  ;;  %v1736_v62 = vsel %vm496_vm2, %v1645_v41, %v1642_v51  ;;  %v3266_v41 = vld [vmem:[#allocation3 + $0x3f8] sm:$0xff] }
 0x2aa   :  { %v1653_v13 = vperm.slane %v1305_v14, %v4511_v35  ;;  %v1648_v30 = vsel %vm1641_vm9, %v1647_v63, %v1646_v40  ;;  %v1309_v14 = vmul.f32 %v1145_v31, %v5556_v24  ;;  %v3264_v40 = vld [vmem:[#allocation3 + $0x3d8] sm:$0xff]  ;;  %v3265_v31 = vld [vmem:[#allocation3 + $0x3f0] sm:$0xff] }
 0x2ab   :  { %v4546_v44 = vpop.xlane.xlu2 %1153  ;;  %5561 = vst [vmem:[#allocation114_spill] sm:$0xff] %v4549_v6  ;;  %v1142_v60 = vpop.xlane.xlu1 %1141  ;;  %v1656_v34 = vperm.slane %v1307_v26, %v4511_v35  ;;  %v4583_v38 = vmul.f32 %v3264_v40, %v4217_v47  ;;  %v1737_v29 = vsel %vm1533_vm0, %v1648_v30, %v1736_v62  ;;  %v4592_v26 = vmul.f32 %v3266_v41, %v4217_v47 }
 0x2ac   :  { %v1148_v17 = vpop.xlane.xlu0 %1147  ;;  %v1308_v5 = vmul.f32 %v1142_v60, %v5556_v24  ;;  %v1654_v60 = vsel %vm1641_vm9, %v1653_v13, %v1652_v42  ;;  %v1738_v13 = vsel %vm505_vm1, %v1651_v23, %v1737_v29  ;;  %v1200_v41 = vadd.f32 %v4234_v19, %v4231_v27 }
 0x2ad   :  { %5564 = vst [vmem:[#allocation117_spill] sm:$0xff] %v4583_v38  ;;  %v1657_v42 = vsel %vm1641_vm9, %v1656_v34, %v1655_v50  ;;  %v1206_v50 = vadd.f32 %v4268_v37, %v4265_v11 }
 0x2ae   :  { %v1658_v2 = vperm.slane %v1308_v5, %v4514_v36  ;;  %v1659_v5 = vperm.slane %v1309_v14, %v4511_v35  ;;  %v1095_v14 = vmax.f32 %v4578_v61, %v4583_v38 }
 0x2b0   :  { %1090 = vmax.xlane.f32.xlu2 %v1089_v58  ;;  %1087 = vmax.xlane.f32.xlu1 %v1086_v57  ;;  %v4586_v58 = vmul.f32 %v3265_v31, %v4215_v1  ;;  %v1310_v57 = vmul.f32 %v1148_v17, %v5556_v24  ;;  %v1739_v1 = vsel %vm1536_vm3, %v1654_v60, %v1738_v13 }
 0x2b1   :  { %1093 = vmax.xlane.f32.xlu0 %v1092_v28  ;;  %v1660_v16 = vsel %vm1641_vm9, %v1659_v5, %v1658_v2  ;;  %v1098_v17 = vmax.f32 %v4549_v6, %v4554_v15  ;;  %v1740_v56 = vsel %vm1538_vm5, %v1657_v42, %v1739_v1  ;;  %v1215_v1 = vadd.f32 %v4294_v32, %v4291_v48 }
 0x2b2   :  { %v1661_v47 = vperm.slane %v1310_v57, %v4514_v36  ;;  %v1101_v23 = vmax.f32 %v4586_v58, %v4592_v26  ;;  %v1741_v34 = vsel %vm1540_vm6, %v1660_v16, %v1740_v56  ;;  %v1203_v57 = vadd.f32 %v4242_v10, %v4239_v45  ;;  %v3102_v16 = vld [vmem:[%s5227_s5 + $0x28] sm:$0xff]  ;;  %v3103_v56 = vld [vmem:[%s5227_s5 + $0x30] sm:$0xff] }
 0x2b3   :  { %v1163_v63 = vpop.xlane.xlu2 %1162  ;;  %v1151_v51 = vpop.xlane.xlu1 %1150  ;;  %v1212_v42 = vadd.f32 %v4274_v20, %v4271_v55  ;;  %1829 = vmatpush.bf16.msrb.mxu2 %v3102_v16 }
 0x2b4   :  { %v1157_v28 = vpop.xlane.xlu0 %1156  ;;  %v1311_v62 = vmul.f32 %v1151_v51, %v5556_v24 }
 0x2b6   :  { %v1662_v30 = vperm.slane %v1311_v62, %v4511_v35  ;;  %v1209_v62 = vadd.f32 %v4260_v21, %v4257_v18 }
 0x2b8   :  { %1099 = vmax.xlane.f32.xlu2 %v1098_v17  ;;  %v1663_v60 = vsel %vm1641_vm9, %v1662_v30, %v1661_v47  ;;  %1096 = vmax.xlane.f32.xlu1 %v1095_v14  ;;  %v3098_v17 = vld [vmem:[%s5227_s5 + $0x8] sm:$0xff]  ;;  %v3104_v47 = vld [vmem:[%s5227_s5 + $0x38] sm:$0xff]  ;;  %v3101_v30 = vld [vmem:[%s5227_s5 + $0x20] sm:$0xff] }
 0x2b9   :  { %1102 = vmax.xlane.f32.xlu0 %v1101_v23  ;;  %v1742_v2 = vsel %vm1542_vm7, %v1663_v60, %v1741_v34  ;;  %1866 = vmatpush.bf16.msrb.mxu3 %v3098_v17  ;;  %v3097_v14 = vld [vmem:[%s5227_s5] sm:$0xff] }
 0x2ba   :  { %1769 = vst.msk [vmem:[#allocation2 + $0x3] sm:$0xff] %vm1768_vm10, %v1742_v2  ;;  %1914 = vmatpush.bf16.msrb.mxu0 %v3104_v47  ;;  %3111 = vmatpush.bf16.msrb.mxu1 %v3104_v47 }
 0x2bb   :  { %v1172_v40 = vpop.xlane.xlu2 %1171  ;;  %v1160_v31 = vpop.xlane.xlu1 %1159  ;;  %1830 = vmatpush.bf16.msrb.mxu2 %v3101_v30 }
 0x2bc   :  { %v1166_v29 = vpop.xlane.xlu0 %1165  ;;  %v1314_v2 = vmul.f32 %v1160_v31, %v5556_v24  ;;  %v1312_v31 = vmul.f32 %v4546_v44, %v5556_v24 }
 0x2bd   :  { %1867 = vmatpush.bf16.msrb.mxu3 %v3097_v14  ;;  %v1318_v14 = vmul.f32 %v1172_v40, %v5556_v24 }
 0x2be   :  { %1915 = vmatpush.bf16.msrb.mxu0 %v3103_v56  ;;  %3112 = vmatpush.bf16.msrb.mxu1 %v3103_v56  ;;  %v1667_v16 = vperm.slane %v1314_v2, %v4514_v36 }
 0x2c0   :  { %1207 = vadd.xlane.f32.xlu2 %v1206_v50  ;;  %1204 = vadd.xlane.f32.xlu1 %v1203_v57  ;;  %v1224_v57 = vadd.f32 %v4329_v53, %v4326_v7  ;;  %v1673_v53 = vperm.slane %v1318_v14, %v4514_v36 }
 0x2c1   :  { %1201 = vadd.xlane.f32.xlu0 %v1200_v41  ;;  %v1221_v41 = vadd.f32 %v4300_v39, %v4297_v49 }
 0x2c3   :  { %v1181_v13 = vpop.xlane.xlu2 %1180  ;;  %v1169_v5 = vpop.xlane.xlu1 %1168 }
 0x2c4   :  { %v1175_v51 = vpop.xlane.xlu0 %1174  ;;  %v1317_v50 = vmul.f32 %v1169_v5, %v5556_v24  ;;  %v1316_v5 = vmul.f32 %v1166_v29, %v5556_v24  ;;  %v1664_v29 = vperm.slane %v1312_v31, %v4514_v36  ;;  %v1321_v2 = vmul.f32 %v1181_v13, %v5556_v24 }
 0x2c5   :  { %v1319_v17 = vmul.f32 %v1175_v51, %v5556_v24  ;;  %v1230_v13 = vadd.f32 %v4340_v9, %v4332_v52 }
 0x2c6   :  { %v1670_v56 = vperm.slane %v1316_v5, %v4514_v36 }
 0x2c8   :  { %1216 = vadd.xlane.f32.xlu2 %v1215_v1  ;;  %1213 = vadd.xlane.f32.xlu1 %v1212_v42  ;;  %v1315_v1 = vmul.f32 %v1163_v63, %v5556_v24  ;;  %v1313_v42 = vmul.f32 %v1157_v28, %v5556_v24  ;;  %v1671_v63 = vperm.slane %v1317_v50, %v4511_v35 }
 0x2c9   :  { %1210 = vadd.xlane.f32.xlu0 %v1209_v62  ;;  %v1218_v62 = vadd.f32 %v4288_v25, %v4285_v59  ;;  %v1233_v50 = vadd.f32 %v4375_v22, %v4369_v0 }
 0x2ca   :  { %v1668_v47 = vperm.slane %v1315_v1, %v4511_v35  ;;  %v1665_v30 = vperm.slane %v1313_v42, %v4511_v35  ;;  %v1672_v42 = vsel %vm1641_vm9, %v1671_v63, %v1670_v56  ;;  %v1677_v63 = vperm.slane %v1321_v2, %v4511_v35 }
 0x2cb   :  { %v1190_v23 = vpop.xlane.xlu2 %1189  ;;  %v1178_v34 = vpop.xlane.xlu1 %1177 }
 0x2cc   :  { %v1184_v60 = vpop.xlane.xlu0 %1183  ;;  %v1320_v28 = vmul.f32 %v1178_v34, %v5556_v24  ;;  %v1669_v34 = vsel %vm1641_vm9, %v1668_v47, %v1667_v16  ;;  %v1666_v5 = vsel %vm1641_vm9, %v1665_v30, %v1664_v29  ;;  %v3110_v47 = vld [vmem:[%s5227_s5 + $0x68] sm:$0xff] }
 0x2cd   :  { %v1322_v1 = vmul.f32 %v1184_v60, %v5556_v24  ;;  %v1227_v60 = vadd.f32 %v4321_v4, %v4314_v33  ;;  %2103 = vmatpush.bf16.msra.mxu0 %v3110_v47 }
 0x2cf   :  { %v1679_v29 = vperm.slane %v1322_v1, %v4514_v36 }
 0x2d0   :  { %1225 = vadd.xlane.f32.xlu2 %v1224_v57  ;;  %1222 = vadd.xlane.f32.xlu1 %v1221_v41  ;;  %v1674_v41 = vperm.slane %v1319_v17, %v4511_v35  ;;  %v1743_v17 = vsel %vm496_vm2, %v1669_v34, %v1666_v5 }
 0x2d1   :  { %1219 = vadd.xlane.f32.xlu0 %v1218_v62  ;;  %v1676_v62 = vperm.slane %v1320_v28, %v4514_v36  ;;  %v1324_v28 = vmul.f32 %v1190_v23, %v5556_v24  ;;  %v1744_v30 = vsel %vm1533_vm0, %v1672_v42, %v1743_v17  ;;  %v3109_v23 = vld [vmem:[%s5227_s5 + $0x60] sm:$0xff] }
 0x2d2   :  { %v1675_v14 = vsel %vm1641_vm9, %v1674_v41, %v1673_v53  ;;  %2104 = vmatpush.bf16.msra.mxu0 %v3109_v23 }
 0x2d3   :  { %v1199_v44 = vpop.xlane.xlu2 %1198  ;;  %v1187_v51 = vpop.xlane.xlu1 %1186  ;;  %v1678_v56 = vsel %vm1641_vm9, %v1677_v63, %v1676_v62  ;;  %v1745_v53 = vsel %vm505_vm1, %v1675_v14, %v1744_v30  ;;  %v1682_v34 = vperm.slane %v1324_v28, %v4514_v36  ;;  %v5567_v63 = vld [vmem:[#allocation83_spill] sm:$0xff]  ;;  %v5568_v28 = vld [vmem:[#allocation84_spill] sm:$0xff] }
 0x2d4   :  { %v1193_v57 = vpop.xlane.xlu0 %1192  ;;  %v1323_v40 = vmul.f32 %v1187_v51, %v5556_v24  ;;  %v1327_v2 = vmul.f32 %v1199_v44, %v5556_v24  ;;  %v1242_v44 = vadd.f32 %v4409_v8, %v4406_v46  ;;  %v1236_v47 = vadd.f32 %v5568_v28, %v5567_v63  ;;  %v5579_v46 = vld [vmem:[#allocation93_spill] sm:$0xff]  ;;  %v5580_v28 = vld [vmem:[#allocation94_spill] sm:$0xff] }
 0x2d5   :  { %v1325_v31 = vmul.f32 %v1193_v57, %v5556_v24  ;;  %v1254_v63 = vadd.f32 %v5580_v28, %v5579_v46 }
 0x2d6   :  { %v1680_v16 = vperm.slane %v1323_v40, %v4511_v35  ;;  %v1746_v40 = vsel %vm1536_vm3, %v1678_v56, %v1745_v53 }
 0x2d7   :  { %v1683_v51 = vperm.slane %v1325_v31, %v4511_v35 }
 0x2d8   :  { %1234 = vadd.xlane.f32.xlu2 %v1233_v50  ;;  %1231 = vadd.xlane.f32.xlu1 %v1230_v13  ;;  %v1681_v57 = vsel %vm1641_vm9, %v1680_v16, %v1679_v29  ;;  %v1686_v13 = vperm.slane %v1327_v2, %v4511_v35  ;;  %v5565_v16 = vld [vmem:[#allocation85_spill] sm:$0xff]  ;;  %v5569_v2 = vld [vmem:[#allocation95_spill] sm:$0xff] }
 0x2d9   :  { %1228 = vadd.xlane.f32.xlu0 %v1227_v60  ;;  %v1747_v62 = vsel %vm1538_vm5, %v1681_v57, %v1746_v40  ;;  %v1684_v31 = vsel %vm1641_vm9, %v1683_v51, %v1682_v34  ;;  %v5566_v60 = vld [vmem:[#allocation86_spill] sm:$0xff]  ;;  %v5570_v57 = vld [vmem:[#allocation96_spill] sm:$0xff]  ;;  %v5571_v34 = vld [vmem:[#allocation91_spill] sm:$0xff] }
 0x2da   :  { %v1239_v17 = vadd.f32 %v5566_v60, %v5565_v16  ;;  %v1748_v30 = vsel %vm1540_vm6, %v1684_v31, %v1747_v62  ;;  %v1251_v53 = vadd.f32 %v5570_v57, %v5569_v2  ;;  %v1794_v31 = vld [vmem:[#allocation2 + $0x2] sm:$0xff] }
 0x2db   :  { %v4698_v50 = vpop.xlane.xlu2 %1009  ;;  %v1196_v41 = vpop.xlane.xlu1 %1195 }
 0x2dc   :  { %v4702_v1 = vpop.xlane.xlu0 %1012  ;;  %v1326_v42 = vmul.f32 %v1196_v41, %v5556_v24  ;;  %v5572_v41 = vld [vmem:[#allocation92_spill] sm:$0xff] }
 0x2dd   :  { %v1248_v40 = vadd.f32 %v5572_v41, %v5571_v34 }
 0x2de   :  { %v1685_v5 = vperm.slane %v1326_v42, %v4514_v36  ;;  %v5573_v42 = vld [vmem:[#allocation87_spill] sm:$0xff] }
 0x2e0   :  { %1243 = vadd.xlane.f32.xlu2 %v1242_v44  ;;  %v1687_v14 = vsel %vm1641_vm9, %v1686_v13, %v1685_v5  ;;  %1240 = vadd.xlane.f32.xlu1 %v1239_v17  ;;  %v5574_v44 = vld [vmem:[#allocation88_spill] sm:$0xff]  ;;  %v1773_v13 = vld [vmem:[#allocation2] sm:$0xff] }
 0x2e1   :  { %1237 = vadd.xlane.f32.xlu0 %v1236_v47  ;;  %v1749_v29 = vsel %vm1542_vm7, %v1687_v14, %v1748_v30  ;;  %v1245_v62 = vadd.f32 %v5574_v44, %v5573_v42  ;;  %v1879_v5 = vld [vmem:[#allocation2 + $0x3] sm:$0xff]  ;;  %v5577_v44 = vld [vmem:[#allocation97_spill] sm:$0xff] }
 0x2e2   :  { %1770 = vst.msk [vmem:[#allocation2 + $0xb] sm:$0xff] %vm1768_vm10, %v1749_v29  ;;  %v5578_v42 = vld [vmem:[#allocation98_spill] sm:$0xff] }
 0x2e3   :  { %v1019_v56 = vpop.xlane.xlu2 %1018  ;;  %v1016_v51 = vpop.xlane.xlu1 %1015  ;;  %v1257_v8 = vadd.f32 %v5578_v42, %v5577_v44  ;;  %v5587_v42 = vld [vmem:[#allocation99_spill] sm:$0xff]  ;;  %v5588_v44 = vld [vmem:[#allocation100_spill] sm:$0xff] }
 0x2e4   :  { %v1022_v23 = vpop.xlane.xlu0 %1021  ;;  %v1263_v7 = vadd.f32 %v5588_v44, %v5587_v42 }
 0x2e8   :  { %1252 = vadd.xlane.f32.xlu2 %v1251_v53  ;;  %1249 = vadd.xlane.f32.xlu1 %v1248_v40  ;;  %v5575_v53 = vld [vmem:[#allocation101_spill] sm:$0xff]  ;;  %v5576_v40 = vld [vmem:[#allocation102_spill] sm:$0xff] }
 0x2e9   :  { %1246 = vadd.xlane.f32.xlu0 %v1245_v62  ;;  %v1795_v17 = vld [vmem:[#allocation2 + $0xa] sm:$0xff]  ;;  %v1260_v62 = vadd.f32 %v5576_v40, %v5575_v53 }
 0x2ea   :  { %v1774_v47 = vld [vmem:[#allocation2 + $0x8] sm:$0xff]  ;;  %v1798_v29 = vpack.c.bf16 %v1795_v17, %v1794_v31  ;;  %v5586_v53 = vld [vmem:[#allocation104_spill] sm:$0xff] }
 0x2eb   :  { %v1880_v30 = vld [vmem:[#allocation2 + $0xb] sm:$0xff]  ;;  %v1028_v14 = vpop.xlane.xlu2 %1027  ;;  %v1777_v60 = vpack.c.bf16 %v1774_v47, %v1773_v13  ;;  %v1025_v57 = vpop.xlane.xlu1 %1024 }
 0x2ec   :  { %v1883_v16 = vpack.c.bf16 %v1880_v30, %v1879_v5  ;;  %v1031_v2 = vpop.xlane.xlu0 %1030  ;;  %2996 = vmatmul.msk.bf16.vlgmr.msrb.gmra.mxu2 %vm1360_vm14, %v1798_v29  ;;  %v5581_v17 = vld [vmem:[#allocation107_spill] sm:$0xff]  ;;  %v5582_v47 = vld [vmem:[#allocation108_spill] sm:$0xff]  ;;  %v5584_v29 = vld [vmem:[#allocation78_spill] sm:$0xff] }
 0x2ed   :  { %3006 = vmatmul.msk.bf16.vlgmr.msrb.gmra.mxu3 %vm1360_vm14, %v1777_v60  ;;  %v1269_v60 = vadd.f32 %v5582_v47, %v5581_v17  ;;  %v5583_v30 = vld [vmem:[#allocation79_spill] sm:$0xff]  ;;  %v1487_v9 = vperm.slane %v1016_v51, %v5584_v29  ;;  %v1490_v51 = vperm.slane %v1022_v23, %v5584_v29 }
 0x2ee   :  { %3020 = vmatmul.msk.bf16.vlgmr.msrb.gmra.mxu0 %vm1360_vm14, %v1883_v16  ;;  %v1488_v16 = vperm.slane %v1019_v56, %v5583_v30  ;;  %v5585_v40 = vld [vmem:[#allocation103_spill] sm:$0xff] }
 0x2ef   :  { %v1266_v52 = vadd.f32 %v5586_v53, %v5585_v40  ;;  %v2068_v56 = vld [vmem:[#allocation2 + $0x6] sm:$0xff]  ;;  %v2069_v47 = vld [vmem:[#allocation2 + $0xe] sm:$0xff]  ;;  %v1493_v53 = vperm.slane %v1028_v14, %v5584_v29  ;;  %v1494_v40 = vperm.slane %v1031_v2, %v5583_v30  ;;  %v1278_v2 = vadd.f32 %v4525_v3, %v4522_v12  ;;  %v5589_v14 = vld [vmem:[#allocation109_spill] sm:$0xff] }
 0x2f0   :  { %1261 = vadd.xlane.f32.xlu2 %v1260_v62  ;;  %1258 = vadd.xlane.f32.xlu1 %v1257_v8  ;;  %v1491_v62 = vperm.slane %v1025_v57, %v5583_v30  ;;  %v1484_v8 = vperm.slane %v4698_v50, %v5584_v29  ;;  %v1489_v17 = vsel %vm1437_vm15, %v1488_v16, %v1487_v9  ;;  %v5590_v16 = vld [vmem:[#allocation110_spill] sm:$0xff] }
 0x2f1   :  { %1255 = vadd.xlane.f32.xlu0 %v1254_v63  ;;  %v1485_v63 = vperm.slane %v4702_v1, %v5583_v30 }
 0x2f3   :  { %v1037_v31 = vpop.xlane.xlu2 %1036  ;;  %v1034_v13 = vpop.xlane.xlu1 %1033  ;;  %v1486_v46 = vsel %vm1437_vm15, %v1485_v63, %v1484_v8  ;;  %v5592_v8 = vld [vmem:[#allocation106_spill] sm:$0xff] }
 0x2f4   :  { %v1040_v5 = vpop.xlane.xlu0 %1039  ;;  %v1497_v50 = vperm.slane %v1037_v31, %v5583_v30  ;;  %v1496_v28 = vperm.slane %v1034_v13, %v5584_v29  ;;  %v1551_v9 = vsel %vm496_vm2, %v1489_v17, %v1486_v46  ;;  %v1495_v13 = vsel %vm1437_vm15, %v1494_v40, %v1493_v53 }
 0x2f8   :  { %1270 = vadd.xlane.f32.xlu2 %v1269_v60  ;;  %1267 = vadd.xlane.f32.xlu1 %v1266_v52  ;;  %v1492_v60 = vsel %vm1437_vm15, %v1491_v62, %v1490_v51  ;;  %v1275_v62 = vadd.f32 %v5590_v16, %v5589_v14  ;;  %v1498_v51 = vsel %vm1437_vm15, %v1497_v50, %v1496_v28 }
 0x2f9   :  { %1264 = vadd.xlane.f32.xlu0 %v1263_v7  ;;  %v2072_v7 = vpack.c.bf16 %v2069_v47, %v2068_v56  ;;  %v1552_v31 = vsel %vm1533_vm0, %v1492_v60, %v1551_v9  ;;  %v1499_v47 = vperm.slane %v1040_v5, %v5584_v29  ;;  %v5591_v56 = vld [vmem:[#allocation105_spill] sm:$0xff] }
 0x2fa   :  { %v1272_v63 = vadd.f32 %v5592_v8, %v5591_v56  ;;  %v1553_v60 = vsel %vm505_vm1, %v1495_v13, %v1552_v31  ;;  %v5593_v31 = vld [vmem:[#allocation33_spill] sm:$0xff]  ;;  %v5594_v13 = vld [vmem:[#allocation111_spill] sm:$0xff] }
 0x2fb   :  { %v1046_v57 = vpop.xlane.xlu2 %1045  ;;  %v1043_v1 = vpop.xlane.xlu1 %1042  ;;  %v1554_v53 = vsel %vm1536_vm3, %v1498_v51, %v1553_v60  ;;  %v1290_v60 = vadd.f32 %v4554_v15, %v4549_v6 }
 0x2fc   :  { %v1049_v52 = vpop.xlane.xlu0 %1048  ;;  %v1500_v23 = vperm.slane %v1043_v1, %v5583_v30  ;;  %v1502_v46 = vperm.slane %v1046_v57, %v5584_v29 }
 0x2fd   :  { %v1503_v17 = vperm.slane %v1049_v52, %v5583_v30 }
 0x2fe   :  { %3072 = vmatmul.msk.bf16.vlgmr.msra.gmra.mxu0 %vm1360_vm14, %v2072_v7  ;;  %v1501_v1 = vsel %vm1437_vm15, %v1500_v23, %v1499_v47  ;;  %v1287_v23 = vadd.f32 %v4583_v38, %v4578_v61  ;;  %v1281_v47 = vadd.f32 %v5594_v13, %v5593_v31 }
 0x2ff   :  { %v1555_v5 = vsel %vm1538_vm5, %v1501_v1, %v1554_v53  ;;  %v1504_v7 = vsel %vm1437_vm15, %v1503_v17, %v1502_v46  ;;  %v1293_v1 = vadd.f32 %v4592_v26, %v4586_v58 }
 0x300   :  { %1279 = vadd.xlane.f32.xlu2 %v1278_v2  ;;  %1276 = vadd.xlane.f32.xlu1 %v1275_v62  ;;  %v1556_v9 = vsel %vm1540_vm6, %v1504_v7, %v1555_v5  ;;  %v1284_v62 = vadd.f32 %v4540_v43, %v4528_v54 }
 0x301   :  { %1273 = vadd.xlane.f32.xlu0 %v1272_v63 }
 0x303   :  { %v1055_v40 = vpop.xlane.xlu2 %1054  ;;  %v1052_v50 = vpop.xlane.xlu1 %1051 }
 0x304   :  { %v1506_v28 = vperm.slane %v1055_v40, %v5583_v30  ;;  %v1058_v57 = vpop.xlane.xlu0 %1057  ;;  %v1505_v52 = vperm.slane %v1052_v50, %v5584_v29 }
 0x306   :  { %v1507_v2 = vsel %vm1437_vm15, %v1506_v28, %v1505_v52 }
 0x307   :  { %v1557_v63 = vsel %vm1542_vm7, %v1507_v2, %v1556_v9 }
 0x308   :  { %1288 = vadd.xlane.f32.xlu2 %v1287_v23  ;;  %1571 = vst.msk [vmem:[#allocation2 + $0x1b] sm:$0xff] %vm693_vm4, %v1557_v63  ;;  %1285 = vadd.xlane.f32.xlu1 %v1284_v62  ;;  %v1508_v63 = vperm.slane %v1058_v57, %v5584_v29 }
 0x309   :  { %1282 = vadd.xlane.f32.xlu0 %v1281_v47 }
 0x30b   :  { %v1064_v51 = vpop.xlane.xlu2 %1063  ;;  %v1061_v46 = vpop.xlane.xlu1 %1060 }
 0x30c   :  { %v1067_v17 = vpop.xlane.xlu0 %1066  ;;  %v1511_v52 = vperm.slane %v1064_v51, %v5584_v29  ;;  %v1509_v23 = vperm.slane %v1061_v46, %v5583_v30 }
 0x30d   :  { %v1512_v9 = vperm.slane %v1067_v17, %v5583_v30 }
 0x30e   :  { %v1510_v6 = vsel %vm1437_vm15, %v1509_v23, %v1508_v63 }
 0x30f   :  { %v1513_v43 = vsel %vm1437_vm15, %v1512_v9, %v1511_v52 }
 0x310   :  { %1294 = vadd.xlane.f32.xlu1 %v1293_v1  ;;  %v1558_v54 = vsel %vm496_vm2, %v1513_v43, %v1510_v6 }
 0x311   :  { %1291 = vadd.xlane.f32.xlu0 %v1290_v60 }
 0x313   :  { %v1073_v53 = vpop.xlane.xlu2 %1072  ;;  %v1070_v40 = vpop.xlane.xlu1 %1069 }
 0x314   :  { %v1076_v5 = vpop.xlane.xlu0 %1075  ;;  %v1515_v2 = vperm.slane %v1073_v53, %v5583_v30  ;;  %v1514_v62 = vperm.slane %v1070_v40, %v5584_v29 }
 0x315   :  { %v1517_v51 = vperm.slane %v1076_v5, %v5584_v29 }
 0x316   :  { %v1516_v46 = vsel %vm1437_vm15, %v1515_v2, %v1514_v62 }
 0x317   :  { %v1559_v23 = vsel %vm1533_vm0, %v1516_v46, %v1558_v54 }
 0x31b   :  { %v1082_v7 = vpop.xlane.xlu2 %1081  ;;  %v1079_v28 = vpop.xlane.xlu1 %1078 }
 0x31c   :  { %v1085_v50 = vpop.xlane.xlu0 %1084  ;;  %v1518_v1 = vperm.slane %v1079_v28, %v5583_v30  ;;  %v1520_v17 = vperm.slane %v1082_v7, %v5584_v29 }
 0x31d   :  { %v1521_v53 = vperm.slane %v1085_v50, %v5583_v30 }
 0x31e   :  { %v1519_v40 = vsel %vm1437_vm15, %v1518_v1, %v1517_v51 }
 0x31f   :  { %v1560_v52 = vsel %vm505_vm1, %v1519_v40, %v1559_v23  ;;  %v1522_v5 = vsel %vm1437_vm15, %v1521_v53, %v1520_v17 }
 0x320   :  { %v1561_v43 = vsel %vm1536_vm3, %v1522_v5, %v1560_v52 }
 0x323   :  { %v1091_v47 = vpop.xlane.xlu2 %1090  ;;  %v1088_v60 = vpop.xlane.xlu1 %1087 }
 0x324   :  { %v1094_v15 = vpop.xlane.xlu0 %1093  ;;  %v1524_v57 = vperm.slane %v1091_v47, %v5583_v30  ;;  %v1523_v28 = vperm.slane %v1088_v60, %v5584_v29 }
 0x325   :  { %v1526_v63 = vperm.slane %v1094_v15, %v5584_v29 }
 0x326   :  { %v1525_v2 = vsel %vm1437_vm15, %v1524_v57, %v1523_v28 }
 0x327   :  { %v1562_v54 = vsel %vm1538_vm5, %v1525_v2, %v1561_v43 }
 0x32b   :  { %v1100_v9 = vpop.xlane.xlu2 %1099  ;;  %v1097_v50 = vpop.xlane.xlu1 %1096 }
 0x32c   :  { %v1529_v7 = vperm.slane %v1100_v9, %v5584_v29  ;;  %v1103_v62 = vpop.xlane.xlu0 %1102  ;;  %v1527_v47 = vperm.slane %v1097_v50, %v5583_v30 }
 0x32d   :  { %v1530_v1 = vperm.slane %v1103_v62, %v5583_v30 }
 0x32e   :  { %v1528_v6 = vsel %vm1437_vm15, %v1527_v47, %v1526_v63 }
 0x32f   :  { %v1531_v60 = vsel %vm1437_vm15, %v1530_v1, %v1529_v7  ;;  %v1563_v51 = vsel %vm1540_vm6, %v1528_v6, %v1562_v54 }
 0x330   :  { %v1564_v46 = vsel %vm1542_vm7, %v1531_v60, %v1563_v51 }
 0x331   :  { %1572 = vst.msk [vmem:[#allocation2 + $0x23] sm:$0xff] %vm693_vm4, %v1564_v46 }
 0x333   :  { %v1208_v17 = vpop.xlane.xlu2 %1207  ;;  %v1205_v15 = vpop.xlane.xlu1 %1204 }
 0x334   :  { %v1202_v29 = vpop.xlane.xlu0 %1201  ;;  %v1330_v7 = vmul.f32 %v1208_v17, %v5556_v24  ;;  %v1329_v50 = vmul.f32 %v1205_v15, %v5556_v24 }
 0x335   :  { %v1328_v62 = vmul.f32 %v1202_v29, %v5556_v24 }
 0x336   :  { %v1691_v6 = vperm.slane %v1330_v7, %v4514_v36  ;;  %v1689_v51 = vperm.slane %v1329_v50, %v4511_v35 }
 0x337   :  { %v1688_v46 = vperm.slane %v1328_v62, %v4514_v36 }
 0x33b   :  { %v1217_v53 = vpop.xlane.xlu2 %1216  ;;  %v1214_v40 = vpop.xlane.xlu1 %1213 }
 0x33c   :  { %v1211_v30 = vpop.xlane.xlu0 %1210  ;;  %v1333_v63 = vmul.f32 %v1217_v53, %v5556_v24  ;;  %v1332_v47 = vmul.f32 %v1214_v40, %v5556_v24 }
 0x33d   :  { %v1331_v5 = vmul.f32 %v1211_v30, %v5556_v24 }
 0x33e   :  { %v1695_v15 = vperm.slane %v1333_v63, %v4511_v35  ;;  %v1694_v29 = vperm.slane %v1332_v47, %v4514_v36  ;;  %v1690_v47 = vsel %vm1641_vm9, %v1689_v51, %v1688_v46 }
 0x33f   :  { %v1692_v1 = vperm.slane %v1331_v5, %v4511_v35 }
 0x341   :  { %v1693_v53 = vsel %vm1641_vm9, %v1692_v1, %v1691_v6 }
 0x342   :  { %v1750_v1 = vsel %vm496_vm2, %v1693_v53, %v1690_v47 }
 0x343   :  { %v1226_v57 = vpop.xlane.xlu2 %1225  ;;  %v1223_v28 = vpop.xlane.xlu1 %1222 }
 0x344   :  { %v1220_v23 = vpop.xlane.xlu0 %1219  ;;  %v1335_v43 = vmul.f32 %v1223_v28, %v5556_v24  ;;  %v1336_v40 = vmul.f32 %v1226_v57, %v5556_v24  ;;  %v1696_v57 = vsel %vm1641_vm9, %v1695_v15, %v1694_v29 }
 0x345   :  { %v1334_v54 = vmul.f32 %v1220_v23, %v5556_v24  ;;  %v1751_v51 = vsel %vm1533_vm0, %v1696_v57, %v1750_v1 }
 0x346   :  { %v1698_v23 = vperm.slane %v1335_v43, %v4511_v35  ;;  %v1700_v43 = vperm.slane %v1336_v40, %v4514_v36 }
 0x347   :  { %v1697_v5 = vperm.slane %v1334_v54, %v4514_v36 }
 0x349   :  { %v1699_v54 = vsel %vm1641_vm9, %v1698_v23, %v1697_v5 }
 0x34a   :  { %v1752_v29 = vsel %vm505_vm1, %v1699_v54, %v1751_v51 }
 0x34b   :  { %v1235_v52 = vpop.xlane.xlu2 %1234  ;;  %v1232_v9 = vpop.xlane.xlu1 %1231 }
 0x34c   :  { %v1229_v2 = vpop.xlane.xlu0 %1228  ;;  %v1338_v7 = vmul.f32 %v1232_v9, %v5556_v24 }
 0x34d   :  { %v1337_v60 = vmul.f32 %v1229_v2, %v5556_v24  ;;  %v1339_v2 = vmul.f32 %v1235_v52, %v5556_v24 }
 0x34e   :  { %v1703_v9 = vperm.slane %v1338_v7, %v4514_v36 }
 0x34f   :  { %v1701_v50 = vperm.slane %v1337_v60, %v4511_v35  ;;  %v1704_v52 = vperm.slane %v1339_v2, %v4511_v35 }
 0x351   :  { %v1702_v6 = vsel %vm1641_vm9, %v1701_v50, %v1700_v43 }
 0x352   :  { %v1753_v23 = vsel %vm1536_vm3, %v1702_v6, %v1752_v29 }
 0x353   :  { %v1244_v17 = vpop.xlane.xlu2 %1243  ;;  %v1241_v30 = vpop.xlane.xlu1 %1240 }
 0x354   :  { %v1238_v28 = vpop.xlane.xlu0 %1237  ;;  %v1341_v62 = vmul.f32 %v1241_v30, %v5556_v24  ;;  %v1342_v46 = vmul.f32 %v1244_v17, %v5556_v24 }
 0x355   :  { %v1340_v63 = vmul.f32 %v1238_v28, %v5556_v24  ;;  %v1705_v28 = vsel %vm1641_vm9, %v1704_v52, %v1703_v9  ;;  %v3106_v52 = vld [vmem:[%s5227_s5 + $0x48] sm:$0xff]  ;;  %v3108_v9 = vld [vmem:[%s5227_s5 + $0x58] sm:$0xff] }
 0x356   :  { %v1707_v60 = vperm.slane %v1341_v62, %v4511_v35  ;;  %v1709_v7 = vperm.slane %v1342_v46, %v4514_v36  ;;  %v1754_v62 = vsel %vm1538_vm5, %v1705_v28, %v1753_v23  ;;  %1999 = vmatpush.bf16.msra.mxu2 %v3106_v52  ;;  %2051 = vmatpush.bf16.msra.mxu3 %v3108_v9 }
 0x357   :  { %v1706_v30 = vperm.slane %v1340_v63, %v4514_v36 }
 0x359   :  { %v1708_v2 = vsel %vm1641_vm9, %v1707_v60, %v1706_v30 }
 0x35a   :  { %v1755_v17 = vsel %vm1540_vm6, %v1708_v2, %v1754_v62  ;;  %v3105_v2 = vld [vmem:[%s5227_s5 + $0x40] sm:$0xff] }
 0x35b   :  { %v1253_v15 = vpop.xlane.xlu2 %1252  ;;  %v1250_v53 = vpop.xlane.xlu1 %1249  ;;  %2000 = vmatpush.bf16.msra.mxu2 %v3105_v2 }
 0x35c   :  { %v1247_v40 = vpop.xlane.xlu0 %1246  ;;  %v1345_v62 = vmul.f32 %v1253_v15, %v5556_v24  ;;  %v3099_v15 = vld [vmem:[%s5227_s5 + $0x10] sm:$0xff] }
 0x35d   :  { %v1343_v5 = vmul.f32 %v1247_v40, %v5556_v24 }
 0x35f   :  { %v1710_v50 = vperm.slane %v1343_v5, %v4511_v35 }
 0x361   :  { %v1711_v63 = vsel %vm1641_vm9, %v1710_v50, %v1709_v7  ;;  %v3107_v7 = vld [vmem:[%s5227_s5 + $0x50] sm:$0xff]  ;;  %v3100_v50 = vld [vmem:[%s5227_s5 + $0x18] sm:$0xff]  ;;  %s2124_s5 = sld [smem:[#allocation7]] }
 0x362   :  { %v1756_v47 = vsel %vm1542_vm7, %v1711_v63, %v1755_v17  ;;  %v1344_v17 = vmul.f32 %v1250_v53, %v5556_v24  ;;  %2052 = vmatpush.bf16.msra.mxu3 %v3107_v7  ;;  %1951 = vmatpush.bf16.msra.mxu1 %v3100_v50 }
 0x363   :  { %1771 = vst.msk [vmem:[#allocation2 + $0x1b] sm:$0xff] %vm1768_vm10, %v1756_v47  ;;  %v1262_v57 = vpop.xlane.xlu2 %1261  ;;  %v1259_v1 = vpop.xlane.xlu1 %1258 }
 0x364   :  { %v1256_v43 = vpop.xlane.xlu0 %1255  ;;  %v1347_v29 = vmul.f32 %v1259_v1, %v5556_v24  ;;  %v1348_v63 = vmul.f32 %v1262_v57, %v5556_v24 }
 0x365   :  { %v1346_v40 = vmul.f32 %v1256_v43, %v5556_v24 }
 0x366   :  { %v1716_v47 = vperm.slane %v1347_v29, %v4511_v35  ;;  %v1712_v29 = vperm.slane %v1344_v17, %v4514_v36  ;;  %1952 = vmatpush.bf16.msra.mxu1 %v3099_v15 }
 0x367   :  { %v1715_v1 = vperm.slane %v1346_v40, %v4514_v36  ;;  %v1718_v40 = vperm.slane %v1348_v63, %v4514_v36 }
 0x36b   :  { %v1271_v54 = vpop.xlane.xlu2 %1270  ;;  %v1268_v6 = vpop.xlane.xlu1 %1267 }
 0x36c   :  { %v1265_v60 = vpop.xlane.xlu0 %1264  ;;  %v1351_v43 = vmul.f32 %v1271_v54, %v5556_v24  ;;  %v1713_v54 = vperm.slane %v1345_v62, %v4511_v35 }
 0x36d   :  { %v1349_v5 = vmul.f32 %v1265_v60, %v5556_v24  ;;  %v1350_v60 = vmul.f32 %v1268_v6, %v5556_v24 }
 0x36e   :  { %v1722_v2 = vperm.slane %v1351_v43, %v4511_v35 }
 0x36f   :  { %v4878_v30 = vpop.f32.mrf.mxu2  ;;  %v1719_v38 = vperm.slane %v1349_v5, %v4511_v35  ;;  %v1717_v5 = vsel %vm1641_vm9, %v1716_v47, %v1715_v1  ;;  %v1714_v1 = vsel %vm1641_vm9, %v1713_v54, %v1712_v29 }
 0x370   :  { %v4880_v51 = vpop.f32.mrf.mxu3 }
 0x373   :  { %v1280_v46 = vpop.xlane.xlu2 %1279  ;;  %v1277_v28 = vpop.xlane.xlu1 %1276 }
 0x374   :  { %v1274_v23 = vpop.xlane.xlu0 %1273  ;;  %v1353_v53 = vmul.f32 %v1277_v28, %v5556_v24  ;;  %v1354_v28 = vmul.f32 %v1280_v46, %v5556_v24 }
 0x375   :  { %v1352_v57 = vmul.f32 %v1274_v23, %v5556_v24 }
 0x376   :  { %v1725_v62 = vperm.slane %v1353_v53, %v4511_v35  ;;  %v1727_v15 = vperm.slane %v1354_v28, %v4514_v36 }
 0x377   :  { %v1834_v52 = vpop.f32.mrf.mxu2  ;;  %v1724_v17 = vperm.slane %v1352_v57, %v4514_v36 }
 0x378   :  { %v1871_v9 = vpop.f32.mrf.mxu3 }
 0x379   :  { %v4902_v61 = vadd.f32 %v1871_v9, %v1834_v52  ;;  %v1721_v52 = vperm.slane %v1350_v60, %v4514_v36  ;;  %v1720_v9 = vsel %vm1641_vm9, %v1719_v38, %v1718_v40  ;;  %v1757_v60 = vsel %vm496_vm2, %v1717_v5, %v1714_v1  ;;  %v1775_v1 = vld [vmem:[#allocation2 + $0x18] sm:$0xff] }
 0x37a   :  { %v1758_v46 = vsel %vm1533_vm0, %v1720_v9, %v1757_v60  ;;  %v1726_v53 = vsel %vm1641_vm9, %v1725_v62, %v1724_v17 }
 0x37b   :  { %v1289_v6 = vpop.xlane.xlu2 %1288  ;;  %v1286_v7 = vpop.xlane.xlu1 %1285  ;;  %v1723_v38 = vsel %vm1641_vm9, %v1722_v2, %v1721_v52 }
 0x37c   :  { %v1283_v50 = vpop.xlane.xlu0 %1282  ;;  %v1357_v63 = vmul.f32 %v1289_v6, %v5556_v24  ;;  %v1356_v47 = vmul.f32 %v1286_v7, %v5556_v24  ;;  %v1759_v54 = vsel %vm505_vm1, %v1723_v38, %v1758_v46 }
 0x37d   :  { %v1355_v23 = vmul.f32 %v1283_v50, %v5556_v24  ;;  %v1760_v5 = vsel %vm1536_vm3, %v1726_v53, %v1759_v54  ;;  %v2016_v54 = vld [vmem:[#allocation2 + $0x5] sm:$0xff] }
 0x37e   :  { %v1731_v57 = vperm.slane %v1357_v63, %v4511_v35  ;;  %v1730_v40 = vperm.slane %v1356_v47, %v4514_v36  ;;  %v1796_v47 = vld [vmem:[#allocation2 + $0x1a] sm:$0xff] }
 0x37f   :  { %v1728_v43 = vperm.slane %v1355_v23, %v4511_v35 }
 0x380   :  { %v1732_v52 = vsel %vm1641_vm9, %v1731_v57, %v1730_v40  ;;  %v1964_v40 = vld [vmem:[#allocation2 + $0x4] sm:$0xff] }
 0x381   :  { %v1729_v6 = vsel %vm1641_vm9, %v1728_v43, %v1727_v15  ;;  %v1881_v43 = vld [vmem:[#allocation2 + $0x1b] sm:$0xff] }
 0x382   :  { %v1761_v9 = vsel %vm1538_vm5, %v1729_v6, %v1760_v5  ;;  %v1965_v6 = vld [vmem:[#allocation2 + $0xc] sm:$0xff]  ;;  %v1783_v5 = vld [vmem:[#allocation2 + $0x1] sm:$0xff] }
 0x383   :  { %v1295_v29 = vpop.xlane.xlu1 %1294  ;;  %v1762_v62 = vsel %vm1540_vm6, %v1732_v52, %v1761_v9 }
 0x384   :  { %v1292_v7 = vpop.xlane.xlu0 %1291  ;;  %v1359_v2 = vmul.f32 %v1295_v29, %v5556_v24  ;;  %v2017_v29 = vld [vmem:[#allocation2 + $0xd] sm:$0xff] }
 0x385   :  { %v1358_v50 = vmul.f32 %v1292_v7, %v5556_v24  ;;  %v1784_v7 = vld [vmem:[#allocation2 + $0x9] sm:$0xff] }
 0x386   :  { %v1734_v28 = vperm.slane %v1359_v2, %v4511_v35  ;;  %v1968_v2 = vpack.c.bf16 %v1965_v6, %v1964_v40  ;;  %v1787_v52 = vpack.c.bf16 %v1784_v7, %v1783_v5 }
 0x387   :  { %v1733_v23 = vperm.slane %v1358_v50, %v4514_v36  ;;  %v2020_v50 = vpack.c.bf16 %v2017_v29, %v2016_v54  ;;  %v1870_v29 = vadd.f32 %v4880_v51, %v4878_v30 }
 0x389   :  { %v1735_v17 = vsel %vm1641_vm9, %v1734_v28, %v1733_v23 }
 0x38a   :  { %v1763_v63 = vsel %vm1542_vm7, %v1735_v17, %v1762_v62 }
 0x38b   :  { %1772 = vst.msk [vmem:[#allocation2 + $0x23] sm:$0xff] %vm1768_vm10, %v1763_v63  ;;  %v1785_v63 = vld [vmem:[#allocation2 + $0x19] sm:$0xff] }
 0x392   :  { %v1797_v24 = vld [vmem:[#allocation2 + $0x22] sm:$0xff] }
 0x393   :  { %v1776_v60 = vld [vmem:[#allocation2 + $0x20] sm:$0xff]  ;;  %v1799_v46 = vpack.c.bf16 %v1797_v24, %v1796_v47  ;;  %v1917_v24 = vpop.f32.mrf.mxu0 }
 0x394   :  { %v1882_v38 = vld [vmem:[#allocation2 + $0x23] sm:$0xff]  ;;  %v1778_v15 = vpack.c.bf16 %v1776_v60, %v1775_v1 }
 0x395   :  { %v1884_v53 = vpack.c.bf16 %v1882_v38, %v1881_v43  ;;  %v2070_v35 = vld [vmem:[#allocation2 + $0x1e] sm:$0xff]  ;;  %v2071_v57 = vld [vmem:[#allocation2 + $0x26] sm:$0xff]  ;;  %2997 = vmatmul.msk.bf16.gmra.mxu2 %vm1360_vm14, %v1799_v46 }
 0x396   :  { %v2073_v36 = vpack.c.bf16 %v2071_v57, %v2070_v35  ;;  %3007 = vmatmul.msk.bf16.gmra.mxu3 %vm1360_vm14, %v1778_v15  ;;  %v1966_v9 = vld [vmem:[#allocation2 + $0x1c] sm:$0xff]  ;;  %v1967_v28 = vld [vmem:[#allocation2 + $0x24] sm:$0xff] }
 0x397   :  { %3021 = vmatmul.msk.bf16.vlgmr.msrb.gmra.mxu1 %vm1360_vm14, %v1884_v53  ;;  %v2018_v23 = vld [vmem:[#allocation2 + $0x1d] sm:$0xff]  ;;  %v2019_v62 = vld [vmem:[#allocation2 + $0x25] sm:$0xff]  ;;  %v1969_v47 = vpack.c.bf16 %v1967_v28, %v1966_v9 }
 0x398   :  { %3073 = vmatmul.msk.bf16.gmra.mxu0 %vm1360_vm14, %v2073_v36  ;;  %v1786_v17 = vld [vmem:[#allocation2 + $0x21] sm:$0xff]  ;;  %v2021_v1 = vpack.c.bf16 %v2019_v62, %v2018_v23  ;;  %v2125_v23 = vstv %s2124_s5 }
 0x399   :  { %v1788_v43 = vpack.c.bf16 %v1786_v17, %v1785_v63  ;;  %v2131_v17 = vstv %s3074_s4 }
 0x39b   :  { %v1919_v53 = vpop.f32.mrf.mxu0 }
 0x3a3   :  { %v2106_v54 = vpop.f32.mrf.mxu0 }
 0x3a5   :  { %3044 = vmatmul.msk.bf16.vlgmr.msra.gmra.mxu2 %vm1360_vm14, %v1968_v2 }
 0x3a6   :  { %3058 = vmatmul.msk.bf16.vlgmr.msra.gmra.mxu3 %vm1360_vm14, %v2020_v50 }
 0x3a7   :  { %3030 = vmatmul.msk.bf16.vlgmr.msra.gmra.mxu1 %vm1360_vm14, %v1787_v52 }
 0x3ab   :  { %v2108_v63 = vpop.f32.mrf.mxu0 }
 0x3b5   :  { %3045 = vmatmul.msk.bf16.gmra.mxu2 %vm1360_vm14, %v1969_v47 }
 0x3b6   :  { %3059 = vmatmul.msk.bf16.gmra.mxu3 %vm1360_vm14, %v2021_v1 }
 0x3b7   :  { %3031 = vmatmul.msk.bf16.gmra.mxu1 %vm1360_vm14, %v1788_v43 }
 0x414   :  { %v1922_v60 = vpop.f32.mrf.mxu1 }
 0x418   :  { %v1837_v38 = vpop.f32.mrf.mxu2 }
 0x419   :  { %v1874_v46 = vpop.f32.mrf.mxu3 }
 0x41a   :  { %v1875_v15 = vadd.f32 %v1874_v46, %v1837_v38 }
 0x41c   :  { %v1924_v35 = vpop.f32.mrf.mxu1 }
 0x420   :  { %v1839_v57 = vpop.f32.mrf.mxu2 }
 0x421   :  { %v1876_v36 = vpop.f32.mrf.mxu3 }
 0x422   :  { %v1877_v40 = vadd.f32 %v1876_v36, %v1839_v57  ;;  %v2111_v36 = vpop.f32.mrf.mxu0 }
 0x424   :  { %v1954_v6 = vpop.f32.mrf.mxu1 }
 0x425   :  { %v1955_v2 = vadd.f32 %v1954_v6, %v1917_v24 }
 0x428   :  { %v2002_v7 = vpop.f32.mrf.mxu2 }
 0x429   :  { %v2054_v5 = vpop.f32.mrf.mxu3  ;;  %v2012_v50 = vadd.f32 %v2002_v7, %v1870_v29 }
 0x42a   :  { %v2064_v9 = vadd.f32 %v2054_v5, %v1955_v2 }
 0x42b   :  { %v2116_v52 = vadd.f32 %v2106_v54, %v2012_v50 }
 0x42c   :  { %v1956_v28 = vpop.f32.mrf.mxu1 }
 0x42d   :  { %v2120_v62 = vadd.f32 %v2116_v52, %v2064_v9  ;;  %v1957_v9 = vadd.f32 %v1956_v28, %v1919_v53 }
 0x42f   :  { %v2126_v47 = vmul.f32 %v2125_v23, %v2120_v62 }
 0x430   :  { %v2004_v1 = vpop.f32.mrf.mxu2 }
 0x431   :  { %v2056_v43 = vpop.f32.mrf.mxu3  ;;  %v2132_v38 = vadd.f32 %v2131_v17, %v2126_v47  ;;  %v2013_v5 = vadd.f32 %v2004_v1, %v4902_v61 }
 0x433   :  { %v3075_v46 = vmul.f32 -1.442695, %v2132_v38  ;;  %v2117_v62 = vadd.f32 %v2108_v63, %v2013_v5 }
 0x434   :  { %v1959_v57 = vpop.f32.mrf.mxu1 }
 0x435   :  { %3171 = vpow2.f32 %v3075_v46  ;;  %v1960_v13 = vadd.f32 %v1959_v57, %v1922_v60  ;;  %v2113_v60 = vpop.f32.mrf.mxu0 }
 0x438   :  { %v2007_v30 = vpop.f32.mrf.mxu2 }
 0x439   :  { %v2059_v51 = vpop.f32.mrf.mxu3  ;;  %v2014_v24 = vadd.f32 %v2007_v30, %v1875_v15  ;;  %v2065_v15 = vadd.f32 %v2056_v43, %v1957_v9 }
 0x43a   :  { %v2066_v29 = vadd.f32 %v2059_v51, %v1960_v13 }
 0x43b   :  { %v3172_v6 = vpop.eup %3171  ;;  %v2118_v54 = vadd.f32 %v2111_v36, %v2014_v24  ;;  %v2121_v30 = vadd.f32 %v2117_v62, %v2065_v15 }
 0x43c   :  { %v2148_v7 = vadd.f32 1.0, %v3172_v6  ;;  %v1961_v50 = vpop.f32.mrf.mxu1  ;;  %v5595_v6 = vlaneseq }
 0x43d   :  { %v2122_v2 = vadd.f32 %v2118_v54, %v2066_v29  ;;  %v1962_v31 = vadd.f32 %v1961_v50, %v1924_v35  ;;  %v2127_v28 = vmul.f32 %v2125_v23, %v2121_v30 }
 0x43e   :  { %3173 = vrcp.f32 %v2148_v7  ;;  %v4960_v54 = vshrl.u32 %v5595_v6, 7  ;;  %v2163_v53 = vand.u32 2147483648, %v2148_v7  ;;  %vm2157_vm2 = vweird.f32 %v2148_v7 }
 0x43f   :  { %v2128_v52 = vmul.f32 %v2125_v23, %v2122_v2  ;;  %v2133_v43 = vadd.f32 %v2131_v17, %v2127_v28 }
 0x440   :  { %v2009_v47 = vpop.f32.mrf.mxu2  ;;  %3122 = vset.pattern.permute.xlu1 %v4960_v54  ;;  %3120 = vset.pattern.permute.xlu2 %v4960_v54 }
 0x441   :  { %v2061_v38 = vpop.f32.mrf.mxu3  ;;  %v4957_v46 = vadd.f32 %v2131_v17, %v2128_v52  ;;  %v2015_v16 = vadd.f32 %v2009_v47, %v1877_v40  ;;  %v2164_v40 = vor.u32 1.1754944e-38, %v2163_v53  ;;  %v3076_v52 = vmul.f32 -1.442695, %v2133_v43 }
 0x442   :  { %v2067_v36 = vadd.f32 %v2061_v38, %v1962_v31  ;;  %v2161_v31 = vand.u32 2147483647, %v2148_v7 }
 0x443   :  { %v2119_v57 = vadd.f32 %v2113_v60, %v2015_v16  ;;  %v4967_v16 = vadd.s32 8, %v4960_v54  ;;  %3175 = vpow2.f32 %v3076_v52  ;;  %v3077_v53 = vmul.f32 -1.442695, %v4957_v46 }
 0x444   :  { %v3174_v13 = vpop.eup %3173  ;;  %vm2162_vm11 = vcmp.eq.f32.partialorder %v2161_v31, 8.507059e+37 }
 0x445   :  { %v2153_v51 = vmul.f32 %v3174_v13, %v2148_v7  ;;  %v2123_v61 = vadd.f32 %v2119_v57, %v2067_v36  ;;  %vm2158_vm1 = vweird.f32 %v3174_v13  ;;  %3121 = vset.pattern.permute.xlu0 %v4967_v16 }
 0x446   :  { %vm2159_vm4 = vmor %vm2157_vm2, %vm2158_vm1 }
 0x447   :  { %v2154_v1 = vsub.f32 1.0, %v2153_v51  ;;  %v2129_v24 = vmul.f32 %v2125_v23, %v2123_v61 }
 0x449   :  { %v2155_v63 = vmul.f32 %v3174_v13, %v2154_v1  ;;  %v4962_v29 = vadd.f32 %v2131_v17, %v2129_v24  ;;  %v3176_v7 = vpop.eup %3175 }
 0x44a   :  { %v2149_v17 = vadd.f32 1.0, %v3176_v7 }
 0x44b   :  { %v2156_v35 = vadd.f32 %v3174_v13, %v2155_v63 }
 0x44c   :  { %3177 = vrcp.f32 %v2149_v17  ;;  %v2178_v30 = vand.u32 2147483648, %v2149_v17  ;;  %vm2172_vm13 = vweird.f32 %v2149_v17  ;;  %v2176_v61 = vand.u32 2147483647, %v2149_v17 }
 0x44d   :  { %v2160_v23 = vsel %vm2159_vm4, %v3174_v13, %v2156_v35  ;;  %3179 = vpow2.f32 %v3077_v53 }
 0x44e   :  { %v4970_v5 = vsel %vm2162_vm11, %v2164_v40, %v2160_v23  ;;  %v2179_v24 = vor.u32 1.1754944e-38, %v2178_v30  ;;  %vm2177_vm15 = vcmp.eq.f32.partialorder %v2176_v61, 8.507059e+37  ;;  %v3078_v30 = vmul.f32 -1.442695, %v4962_v29 }
 0x44f   :  { %v2225_v2 = vperm.slane %v4970_v5, 1  ;;  %v2212_v50 = vperm.slane %v4970_v5, 0  ;;  %v2238_v9 = vperm.slane %v4970_v5, 2  ;;  %v2264_v62 = vperm.slane %v4970_v5, 4 }
 0x450   :  { %v2251_v38 = vperm.slane %v4970_v5, 3  ;;  %v2290_v57 = vperm.slane %v4970_v5, 6  ;;  %v2277_v51 = vperm.slane %v4970_v5, 5  ;;  %v2303_v35 = vperm.slane %v4970_v5, 7 }
 0x451   :  { %2230 = vperm.xlu1 %3122, %v2225_v2   ;;  %2217 = vperm.xlu2 %3120, %v2212_v50  }
 0x452   :  { %2223 = vperm.xlu0 %3121, %v2212_v50   ;;  %v3178_v47 = vpop.eup %3177 }
 0x453   :  { %v2168_v60 = vmul.f32 %v3178_v47, %v2149_v17  ;;  %vm2173_vm12 = vweird.f32 %v3178_v47  ;;  %v3180_v63 = vpop.eup %3179 }
 0x454   :  { %vm2174_vm14 = vmor %vm2172_vm13, %vm2173_vm12  ;;  %v2150_v31 = vadd.f32 1.0, %v3180_v63  ;;  %v5599_v63 = vld [vmem:[#allocation44_spill] sm:$0xff] }
 0x455   :  { %v2169_v15 = vsub.f32 1.0, %v2168_v60  ;;  %v5596_v60 = vld [vmem:[#allocation39_spill] sm:$0xff] }
 0x456   :  { %3181 = vrcp.f32 %v2150_v31  ;;  %v2193_v7 = vand.u32 2147483648, %v2150_v31  ;;  %vm2187_vm3 = vweird.f32 %v2150_v31 }
 0x457   :  { %v2170_v36 = vmul.f32 %v3178_v47, %v2169_v15  ;;  %3183 = vpow2.f32 %v3078_v30 }
 0x459   :  { %3125 = vset.pattern.permute.xlu1 %v4967_v16  ;;  %3123 = vset.pattern.permute.xlu2 %v4967_v16  ;;  %v2171_v13 = vadd.f32 %v3178_v47, %v2170_v36 }
 0x45a   :  { %3126 = vset.pattern.permute.xlu0 %v4960_v54 }
 0x45b   :  { %v2175_v1 = vsel %vm2174_vm14, %v3178_v47, %v2171_v13  ;;  %v2194_v47 = vor.u32 1.1754944e-38, %v2193_v7 }
 0x45c   :  { %v4986_v6 = vsel %vm2177_vm15, %v2179_v24, %v2175_v1  ;;  %v3182_v46 = vpop.eup %3181  ;;  %v5598_v24 = vld [vmem:[#allocation43_spill] sm:$0xff] }
 0x45d   :  { %v2329_v28 = vperm.slane %v4986_v6, 1  ;;  %v2355_v40 = vperm.slane %v4986_v6, 3  ;;  %v2316_v43 = vperm.slane %v4986_v6, 0  ;;  %v2183_v23 = vmul.f32 %v3182_v46, %v2150_v31  ;;  %v3184_v61 = vpop.eup %3183 }
 0x45e   :  { %v2394_v50 = vperm.slane %v4986_v6, 6  ;;  %vm2188_vm0 = vweird.f32 %v3182_v46  ;;  %v2342_v17 = vperm.slane %v4986_v6, 2 }
 0x45f   :  { %vm2189_vm5 = vmor %vm2187_vm3, %vm2188_vm0 }
 0x461   :  { %2249 = vperm.xlu1 %3125, %v2238_v9   ;;  %2236 = vperm.xlu2 %3123, %v2225_v2   ;;  %v2184_v2 = vsub.f32 1.0, %v2183_v23  ;;  %v5601_v23 = vld [vmem:[#allocation38_spill] sm:$0xff] }
 0x462   :  { %2269 = vperm.xlu0 %3126, %v2264_v62  }
 0x463   :  { %v2185_v5 = vmul.f32 %v3182_v46, %v2184_v2 }
 0x465   :  { %v2186_v52 = vadd.f32 %v3182_v46, %v2185_v5 }
 0x469   :  { %2262 = vperm.xlu1 %3125, %v2251_v38   ;;  %3124 = vset.pattern.permute.xlu2 %v4960_v54 }
 0x46a   :  { %3129 = vset.pattern.permute.xlu0 %v4967_v16 }
 0x471   :  { %3128 = vset.pattern.permute.xlu1 %v4960_v54  ;;  %2243 = vperm.xlu2 %3124, %v2238_v9   ;;  %v2191_v9 = vand.u32 2147483647, %v2150_v31  ;;  %v5017_v31 = vadd.f32 1.0, %v3184_v61 }
 0x472   :  { %2301 = vperm.xlu0 %3129, %v2290_v57  }
 0x473   :  { %vm2192_vm6 = vcmp.eq.f32.partialorder %v2191_v9, 8.507059e+37  ;;  %3185 = vrcp.f32 %v5017_v31  ;;  %v5603_v9 = vld [vmem:[#allocation46_spill] sm:$0xff]  ;;  %vm2202_vm8 = vweird.f32 %v5017_v31 }
 0x479   :  { %2282 = vperm.xlu1 %3128, %v2277_v51   ;;  %2256 = vperm.xlu2 %3124, %v2251_v38  }
 0x47a   :  { %3132 = vset.pattern.permute.xlu0 %v4960_v54 }
 0x481   :  { %2295 = vperm.xlu1 %3128, %v2290_v57   ;;  %3127 = vset.pattern.permute.xlu2 %v4967_v16  ;;  %v5597_v57 = vld [vmem:[#allocation40_spill] sm:$0xff] }
 0x482   :  { %2334 = vperm.xlu0 %3132, %v2329_v28  }
 0x489   :  { %3131 = vset.pattern.permute.xlu1 %v4967_v16  ;;  %2275 = vperm.xlu2 %3127, %v2264_v62   ;;  %v2190_v62 = vsel %vm2189_vm5, %v3182_v46, %v2186_v52  ;;  %v5600_v46 = vld [vmem:[#allocation37_spill] sm:$0xff] }
 0x48a   :  { %3135 = vset.pattern.permute.xlu0 %v4967_v16  ;;  %v5006_v13 = vsel %vm2192_vm6, %v2194_v47, %v2190_v62  ;;  %v5602_v52 = vld [vmem:[#allocation45_spill] sm:$0xff]  ;;  %v3186_v47 = vpop.eup %3185 }
 0x48b   :  { %vm2203_vm7 = vweird.f32 %v3186_v47 }
 0x48c   :  { %vm2204_vm9 = vmor %vm2202_vm8, %vm2203_vm7 }
 0x491   :  { %2314 = vperm.xlu1 %3131, %v2303_v35   ;;  %2288 = vperm.xlu2 %3127, %v2277_v51   ;;  %v2420_v51 = vperm.slane %v5006_v13, 0 }
 0x492   :  { %2366 = vperm.xlu0 %3135, %v2355_v40  }
 0x499   :  { %3130 = vset.pattern.permute.xlu2 %v4960_v54  ;;  %2327 = vperm.xlu1 %3131, %v2316_v43  }
 0x49a   :  { %3138 = vset.pattern.permute.xlu0 %v4960_v54 }
 0x4a1   :  { %2308 = vperm.xlu2 %3130, %v2303_v35   ;;  %3134 = vset.pattern.permute.xlu1 %v4960_v54  ;;  %v2368_v35 = vperm.slane %v4986_v6, 4 }
 0x4a2   :  { %2399 = vperm.xlu0 %3138, %v2394_v50  }
 0x4a9   :  { %2347 = vperm.xlu1 %3134, %v2342_v17   ;;  %2321 = vperm.xlu2 %3130, %v2316_v43  }
 0x4aa   :  { %3141 = vset.pattern.permute.xlu0 %v4967_v16 }
 0x4ab   :  { %v2218_v38 = vpop.permute.xlu2 %2217 }
 0x4ac   :  { %v2628_v15 = vmul.f32 %v2218_v38, %v5596_v60  ;;  %v2629_v36 = vmul.f32 %v2218_v38, %v5597_v57  ;;  %v2381_v38 = vperm.slane %v4986_v6, 5 }
 0x4ae   :  { %2756 = vst [vmem:[#allocation8] sm:$0xff] %v2628_v15  ;;  %v5604_v15 = vld [vmem:[#allocation35_spill] sm:$0xff] }
 0x4af   :  { %2757 = vst [vmem:[#allocation8 + $0x8] sm:$0xff] %v2629_v36  ;;  %v5605_v36 = vld [vmem:[#allocation36_spill] sm:$0xff] }
 0x4b1   :  { %2360 = vperm.xlu1 %3134, %v2355_v40   ;;  %3133 = vset.pattern.permute.xlu2 %v4967_v16  ;;  %v2459_v40 = vperm.slane %v5006_v13, 3 }
 0x4b2   :  { %2431 = vperm.xlu0 %3141, %v2420_v51  }
 0x4b9   :  { %3137 = vset.pattern.permute.xlu1 %v4967_v16  ;;  %2340 = vperm.xlu2 %3133, %v2329_v28  }
 0x4ba   :  { %3144 = vset.pattern.permute.xlu0 %v4960_v54 }
 0x4bb   :  { %v2237_v1 = vpop.permute.xlu2 %2236 }
 0x4bc   :  { %v2634_v53 = vmul.f32 %v2237_v1, %v5598_v24  ;;  %v2635_v29 = vmul.f32 %v2237_v1, %v5599_v63  ;;  %v2485_v1 = vperm.slane %v5006_v13, 5 }
 0x4be   :  { %2762 = vst [vmem:[#allocation8 + $0x30] sm:$0xff] %v2634_v53 }
 0x4bf   :  { %2763 = vst [vmem:[#allocation8 + $0x38] sm:$0xff] %v2635_v29  ;;  %v5606_v29 = vld [vmem:[#allocation41_spill] sm:$0xff] }
 0x4c1   :  { %2379 = vperm.xlu1 %3137, %v2368_v35   ;;  %2353 = vperm.xlu2 %3133, %v2342_v17   ;;  %v2198_v17 = vmul.f32 %v3186_v47, %v5017_v31 }
 0x4c2   :  { %2464 = vperm.xlu0 %3144, %v2459_v40  }
 0x4c3   :  { %v2231_v28 = vpop.permute.xlu1 %2230  ;;  %v2199_v61 = vsub.f32 1.0, %v2198_v17  ;;  %v2208_v17 = vand.u32 2147483648, %v5017_v31 }
 0x4c4   :  { %v2632_v43 = vmul.f32 %v2231_v28, %v5600_v46  ;;  %v2633_v2 = vmul.f32 %v2231_v28, %v5601_v23  ;;  %v2224_v5 = vpop.permute.xlu0 %2223  ;;  %v5607_v46 = vld [vmem:[#allocation42_spill] sm:$0xff] }
 0x4c5   :  { %v2630_v7 = vmul.f32 %v2224_v5, %v5602_v52  ;;  %v2631_v62 = vmul.f32 %v2224_v5, %v5603_v9  ;;  %v2200_v24 = vmul.f32 %v3186_v47, %v2199_v61  ;;  %v5609_v52 = vld [vmem:[#allocation48_spill] sm:$0xff]  ;;  %v2209_v61 = vor.u32 1.1754944e-38, %v2208_v17  ;;  %v5618_v17 = vld [vmem:[#allocation55_spill] sm:$0xff] }
 0x4c6   :  { %2760 = vst [vmem:[#allocation8 + $0x20] sm:$0xff] %v2632_v43 }
 0x4c7   :  { %2761 = vst [vmem:[#allocation8 + $0x28] sm:$0xff] %v2633_v2  ;;  %v5608_v2 = vld [vmem:[#allocation47_spill] sm:$0xff]  ;;  %v2201_v9 = vadd.f32 %v3186_v47, %v2200_v24 }
 0x4c8   :  { %2758 = vst [vmem:[#allocation8 + $0x10] sm:$0xff] %v2630_v7 }
 0x4c9   :  { %2759 = vst [vmem:[#allocation8 + $0x18] sm:$0xff] %v2631_v62  ;;  %2392 = vperm.xlu1 %3137, %v2381_v38   ;;  %3136 = vset.pattern.permute.xlu2 %v4960_v54  ;;  %v5610_v62 = vld [vmem:[#allocation51_spill] sm:$0xff] }
 0x4ca   :  { %3147 = vset.pattern.permute.xlu0 %v4967_v16 }
 0x4cb   :  { %v2244_v60 = vpop.permute.xlu2 %2243 }
 0x4cc   :  { %v2636_v57 = vmul.f32 %v2244_v60, %v5604_v15  ;;  %v2637_v30 = vmul.f32 %v2244_v60, %v5605_v36  ;;  %v5611_v60 = vld [vmem:[#allocation52_spill] sm:$0xff]  ;;  %v2206_v36 = vand.u32 2147483647, %v5017_v31 }
 0x4ce   :  { %2764 = vst [vmem:[#allocation8 + $0x40] sm:$0xff] %v2636_v57  ;;  %v2407_v57 = vperm.slane %v4986_v6, 7  ;;  %vm2207_vm10 = vcmp.eq.f32.partialorder %v2206_v36, 8.507059e+37 }
 0x4cf   :  { %2765 = vst [vmem:[#allocation8 + $0x48] sm:$0xff] %v2637_v30  ;;  %v2205_v30 = vsel %vm2204_vm9, %v3186_v47, %v2201_v9  ;;  %v5617_v9 = vld [vmem:[#allocation58_spill] sm:$0xff] }
 0x4d1   :  { %3140 = vset.pattern.permute.xlu1 %v4960_v54  ;;  %2373 = vperm.xlu2 %3136, %v2368_v35  }
 0x4d2   :  { %2496 = vperm.xlu0 %3147, %v2485_v1  }
 0x4d3   :  { %v2250_v53 = vpop.permute.xlu1 %2249  ;;  %v2257_v63 = vpop.permute.xlu2 %2256 }
 0x4d4   :  { %v2638_v28 = vmul.f32 %v2250_v53, %v5606_v29  ;;  %v2639_v43 = vmul.f32 %v2250_v53, %v5607_v46  ;;  %v2270_v23 = vpop.permute.xlu0 %2269  ;;  %v2640_v35 = vmul.f32 %v2257_v63, %v5610_v62  ;;  %v2641_v15 = vmul.f32 %v2257_v63, %v5611_v60  ;;  %v5612_v53 = vld [vmem:[#allocation49_spill] sm:$0xff]  ;;  %v5613_v29 = vld [vmem:[#allocation50_spill] sm:$0xff] }
 0x4d5   :  { %v2644_v5 = vmul.f32 %v2270_v23, %v5608_v2  ;;  %v2645_v7 = vmul.f32 %v2270_v23, %v5609_v52  ;;  %v5051_v46 = vsel %vm2207_vm10, %v2209_v61, %v2205_v30  ;;  %v5615_v2 = vld [vmem:[#allocation60_spill] sm:$0xff]  ;;  %v5620_v30 = vld [vmem:[#allocation53_spill] sm:$0xff] }
 0x4d6   :  { %2766 = vst [vmem:[#allocation8 + $0x50] sm:$0xff] %v2638_v28  ;;  %v2524_v31 = vperm.slane %v5051_v46, 0  ;;  %v5616_v52 = vld [vmem:[#allocation20_spill] sm:$0xff]  ;;  %v2550_v6 = vperm.slane %v5051_v46, 2 }
 0x4d7   :  { %2767 = vst [vmem:[#allocation8 + $0x58] sm:$0xff] %v2639_v43  ;;  %v5614_v43 = vld [vmem:[#allocation57_spill] sm:$0xff] }
 0x4d8   :  { %2772 = vst [vmem:[#allocation8 + $0x80] sm:$0xff] %v2644_v5 }
 0x4d9   :  { %2773 = vst [vmem:[#allocation8 + $0x88] sm:$0xff] %v2645_v7  ;;  %2412 = vperm.xlu1 %3140, %v2407_v57   ;;  %2386 = vperm.xlu2 %3136, %v2381_v38  }
 0x4da   :  { %2768 = vst [vmem:[#allocation8 + $0x60] sm:$0xff] %v2640_v35  ;;  %3150 = vset.pattern.permute.xlu0 %v4960_v54 }
 0x4db   :  { %2769 = vst [vmem:[#allocation8 + $0x68] sm:$0xff] %v2641_v15  ;;  %v2263_v24 = vpop.permute.xlu1 %2262  ;;  %v5619_v15 = vld [vmem:[#allocation56_spill] sm:$0xff] }
 0x4dc   :  { %v2642_v63 = vmul.f32 %v2263_v24, %v5612_v53  ;;  %v2643_v28 = vmul.f32 %v2263_v24, %v5613_v29  ;;  %v5621_v24 = vld [vmem:[#allocation54_spill] sm:$0xff]  ;;  %v5622_v29 = vld [vmem:[#allocation61_spill] sm:$0xff] }
 0x4de   :  { %2770 = vst [vmem:[#allocation8 + $0x70] sm:$0xff] %v2642_v63  ;;  %v2433_v63 = vperm.slane %v5006_v13, 1 }
 0x4df   :  { %2771 = vst [vmem:[#allocation8 + $0x78] sm:$0xff] %v2643_v28 }
 0x4e1   :  { %3139 = vset.pattern.permute.xlu2 %v4967_v16  ;;  %2425 = vperm.xlu1 %3140, %v2420_v51  }
 0x4e2   :  { %2529 = vperm.xlu0 %3150, %v2524_v31  }
 0x4e3   :  { %v2276_v47 = vpop.permute.xlu2 %2275 }
 0x4e4   :  { %v2302_v38 = vpop.permute.xlu0 %2301  ;;  %v2646_v23 = vmul.f32 %v2276_v47, %v5614_v43  ;;  %v2647_v62 = vmul.f32 %v2276_v47, %v5617_v9  ;;  %v5623_v47 = vld [vmem:[#allocation18_spill] sm:$0xff]  ;;  %v5626_v9 = vld [vmem:[#allocation59_spill] sm:$0xff] }
 0x4e5   :  { %v2654_v5 = vmul.f32 %v2302_v38, %v5615_v2  ;;  %v2655_v7 = vmul.f32 %v2302_v38, %v5616_v52 }
 0x4e6   :  { %2774 = vst [vmem:[#allocation8 + $0x90] sm:$0xff] %v2646_v23  ;;  %v5624_v23 = vld [vmem:[#allocation14_spill] sm:$0xff] }
 0x4e7   :  { %2782 = vst [vmem:[#allocation8 + $0xd0] sm:$0xff] %v2654_v5  ;;  %v5625_v5 = vld [vmem:[#allocation66_spill] sm:$0xff] }
 0x4e8   :  { %2783 = vst [vmem:[#allocation8 + $0xd8] sm:$0xff] %v2655_v7  ;;  %v2446_v7 = vperm.slane %v5006_v13, 2 }
 0x4e9   :  { %2775 = vst [vmem:[#allocation8 + $0x98] sm:$0xff] %v2647_v62  ;;  %2405 = vperm.xlu2 %3139, %v2394_v50   ;;  %3143 = vset.pattern.permute.xlu1 %v4967_v16 }
 0x4ea   :  { %3153 = vset.pattern.permute.xlu0 %v4967_v16 }
 0x4eb   :  { %v2283_v51 = vpop.permute.xlu1 %2282  ;;  %v2289_v35 = vpop.permute.xlu2 %2288 }
 0x4ec   :  { %v2648_v60 = vmul.f32 %v2283_v51, %v5618_v17  ;;  %v2649_v36 = vmul.f32 %v2283_v51, %v5619_v15  ;;  %v2650_v61 = vmul.f32 %v2289_v35, %v5620_v30  ;;  %v2651_v53 = vmul.f32 %v2289_v35, %v5621_v24  ;;  %v5627_v51 = vld [vmem:[#allocation22_spill] sm:$0xff] }
 0x4ed   :  { %v2589_v17 = vperm.slane %v5051_v46, 5 }
 0x4ee   :  { %2776 = vst [vmem:[#allocation8 + $0xa0] sm:$0xff] %v2648_v60 }
 0x4ef   :  { %2777 = vst [vmem:[#allocation8 + $0xa8] sm:$0xff] %v2649_v36  ;;  %v5628_v36 = vld [vmem:[#allocation63_spill] sm:$0xff] }
 0x4f0   :  { %2778 = vst [vmem:[#allocation8 + $0xb0] sm:$0xff] %v2650_v61  ;;  %v5629_v61 = vld [vmem:[#allocation24_spill] sm:$0xff] }
 0x4f1   :  { %2779 = vst [vmem:[#allocation8 + $0xb8] sm:$0xff] %v2651_v53  ;;  %2418 = vperm.xlu2 %3139, %v2407_v57   ;;  %2444 = vperm.xlu1 %3143, %v2433_v63  }
 0x4f2   :  { %2561 = vperm.xlu0 %3153, %v2550_v6  }
 0x4f3   :  { %v2296_v50 = vpop.permute.xlu1 %2295 }
 0x4f4   :  { %v2652_v28 = vmul.f32 %v2296_v50, %v5622_v29  ;;  %v2653_v38 = vmul.f32 %v2296_v50, %v5623_v47  ;;  %v2335_v43 = vpop.permute.xlu0 %2334  ;;  %v5630_v50 = vld [vmem:[#allocation21_spill] sm:$0xff] }
 0x4f5   :  { %v2664_v2 = vmul.f32 %v2335_v43, %v5624_v23  ;;  %v2665_v52 = vmul.f32 %v2335_v43, %v5625_v5 }
 0x4f6   :  { %2780 = vst [vmem:[#allocation8 + $0xc0] sm:$0xff] %v2652_v28  ;;  %v5631_v28 = vld [vmem:[#allocation67_spill] sm:$0xff] }
 0x4f7   :  { %2781 = vst [vmem:[#allocation8 + $0xc8] sm:$0xff] %v2653_v38  ;;  %v5632_v38 = vld [vmem:[#allocation12_spill] sm:$0xff] }
 0x4f8   :  { %2792 = vst [vmem:[#allocation8 + $0x120] sm:$0xff] %v2664_v2  ;;  %v2472_v2 = vperm.slane %v5006_v13, 4 }
 0x4f9   :  { %2793 = vst [vmem:[#allocation8 + $0x128] sm:$0xff] %v2665_v52  ;;  %3142 = vset.pattern.permute.xlu2 %v4960_v54  ;;  %2457 = vperm.xlu1 %3143, %v2446_v7   ;;  %v5634_v52 = vld [vmem:[#allocation13_spill] sm:$0xff] }
 0x4fa   :  { %3156 = vset.pattern.permute.xlu0 %v4960_v54 }
 0x4fb   :  { %v2309_v57 = vpop.permute.xlu2 %2308 }
 0x4fc   :  { %v2656_v62 = vmul.f32 %v2309_v57, %v5626_v9  ;;  %v2657_v35 = vmul.f32 %v2309_v57, %v5627_v51  ;;  %v5635_v9 = vld [vmem:[#allocation62_spill] sm:$0xff]  ;;  %v2615_v51 = vperm.slane %v5051_v46, 7 }
 0x4fe   :  { %2784 = vst [vmem:[#allocation8 + $0xe0] sm:$0xff] %v2656_v62 }
 0x4ff   :  { %2785 = vst [vmem:[#allocation8 + $0xe8] sm:$0xff] %v2657_v35 }
 0x501   :  { %2438 = vperm.xlu2 %3142, %v2433_v63   ;;  %3146 = vset.pattern.permute.xlu1 %v4960_v54  ;;  %v5633_v63 = vld [vmem:[#allocation26_spill] sm:$0xff] }
 0x502   :  { %2594 = vperm.xlu0 %3156, %v2589_v17  }
 0x503   :  { %v2315_v60 = vpop.permute.xlu1 %2314  ;;  %v2322_v15 = vpop.permute.xlu2 %2321 }
 0x504   :  { %v2658_v30 = vmul.f32 %v2315_v60, %v5628_v36  ;;  %v2659_v24 = vmul.f32 %v2315_v60, %v5629_v61  ;;  %v2367_v53 = vpop.permute.xlu0 %2366  ;;  %v2660_v43 = vmul.f32 %v2322_v15, %v5632_v38  ;;  %v2661_v23 = vmul.f32 %v2322_v15, %v5633_v63  ;;  %v5636_v60 = vld [vmem:[#allocation15_spill] sm:$0xff]  ;;  %v5637_v36 = vld [vmem:[#allocation29_spill] sm:$0xff]  ;;  %v5638_v61 = vld [vmem:[#allocation74_spill] sm:$0xff] }
 0x505   :  { %v2674_v29 = vmul.f32 %v2367_v53, %v5630_v50  ;;  %v2675_v47 = vmul.f32 %v2367_v53, %v5631_v28  ;;  %v5639_v53 = vld [vmem:[#allocation65_spill] sm:$0xff]  ;;  %v5640_v28 = vld [vmem:[#allocation16_spill] sm:$0xff] }
 0x506   :  { %2786 = vst [vmem:[#allocation8 + $0xf0] sm:$0xff] %v2658_v30  ;;  %v5641_v38 = vld [vmem:[#allocation64_spill] sm:$0xff]  ;;  %v5642_v63 = vld [vmem:[#allocation17_spill] sm:$0xff] }
 0x507   :  { %2787 = vst [vmem:[#allocation8 + $0xf8] sm:$0xff] %v2659_v24 }
 0x508   :  { %2802 = vst [vmem:[#allocation8 + $0x170] sm:$0xff] %v2674_v29 }
 0x509   :  { %2803 = vst [vmem:[#allocation8 + $0x178] sm:$0xff] %v2675_v47  ;;  %2451 = vperm.xlu2 %3142, %v2446_v7   ;;  %2477 = vperm.xlu1 %3146, %v2472_v2  }
 0x50a   :  { %2788 = vst [vmem:[#allocation8 + $0x100] sm:$0xff] %v2660_v43  ;;  %3159 = vset.pattern.permute.xlu0 %v4967_v16 }
 0x50b   :  { %2789 = vst [vmem:[#allocation8 + $0x108] sm:$0xff] %v2661_v23  ;;  %v2328_v5 = vpop.permute.xlu1 %2327 }
 0x50c   :  { %v2662_v57 = vmul.f32 %v2328_v5, %v5634_v52  ;;  %v2663_v62 = vmul.f32 %v2328_v5, %v5635_v9  ;;  %v5643_v5 = vld [vmem:[#allocation69_spill] sm:$0xff]  ;;  %v5644_v9 = vld [vmem:[#allocation19_spill] sm:$0xff] }
 0x50e   :  { %2790 = vst [vmem:[#allocation8 + $0x110] sm:$0xff] %v2662_v57  ;;  %v2498_v57 = vperm.slane %v5006_v13, 6 }
 0x50f   :  { %2791 = vst [vmem:[#allocation8 + $0x118] sm:$0xff] %v2663_v62 }
 0x511   :  { %3145 = vset.pattern.permute.xlu2 %v4967_v16  ;;  %2490 = vperm.xlu1 %3146, %v2485_v1  }
 0x512   :  { %2626 = vperm.xlu0 %3159, %v2615_v51  }
 0x513   :  { %v2341_v7 = vpop.permute.xlu2 %2340 }
 0x514   :  { %v2400_v35 = vpop.permute.xlu0 %2399  ;;  %v2666_v15 = vmul.f32 %v2341_v7, %v5636_v60  ;;  %v2667_v50 = vmul.f32 %v2341_v7, %v5639_v53  ;;  %v5645_v7 = vld [vmem:[#allocation68_spill] sm:$0xff] }
 0x515   :  { %v2684_v30 = vmul.f32 %v2400_v35, %v5637_v36  ;;  %v2685_v24 = vmul.f32 %v2400_v35, %v5638_v61  ;;  %v5646_v61 = vld [vmem:[#allocation23_spill] sm:$0xff]  ;;  %v5647_v53 = vld [vmem:[#allocation72_spill] sm:$0xff] }
 0x516   :  { %2794 = vst [vmem:[#allocation8 + $0x130] sm:$0xff] %v2666_v15 }
 0x517   :  { %2812 = vst [vmem:[#allocation8 + $0x1c0] sm:$0xff] %v2684_v30  ;;  %v2511_v30 = vperm.slane %v5006_v13, 7  ;;  %v5649_v13 = vld [vmem:[#allocation71_spill] sm:$0xff] }
 0x518   :  { %2813 = vst [vmem:[#allocation8 + $0x1c8] sm:$0xff] %v2685_v24 }
 0x519   :  { %2795 = vst [vmem:[#allocation8 + $0x138] sm:$0xff] %v2667_v50  ;;  %2470 = vperm.xlu2 %3145, %v2459_v40   ;;  %3149 = vset.pattern.permute.xlu1 %v4967_v16 }
 0x51b   :  { %v2348_v1 = vpop.permute.xlu1 %2347  ;;  %v2354_v29 = vpop.permute.xlu2 %2353 }
 0x51c   :  { %v2668_v47 = vmul.f32 %v2348_v1, %v5640_v28  ;;  %v2669_v43 = vmul.f32 %v2348_v1, %v5641_v38  ;;  %v2670_v23 = vmul.f32 %v2354_v29, %v5642_v63  ;;  %v2671_v52 = vmul.f32 %v2354_v29, %v5643_v5  ;;  %v5648_v1 = vld [vmem:[#allocation25_spill] sm:$0xff]  ;;  %v5651_v63 = vld [vmem:[#allocation70_spill] sm:$0xff] }
 0x51e   :  { %2796 = vst [vmem:[#allocation8 + $0x140] sm:$0xff] %v2668_v47  ;;  %v5650_v47 = vld [vmem:[#allocation27_spill] sm:$0xff] }
 0x51f   :  { %2797 = vst [vmem:[#allocation8 + $0x148] sm:$0xff] %v2669_v43 }
 0x520   :  { %2798 = vst [vmem:[#allocation8 + $0x150] sm:$0xff] %v2670_v23 }
 0x521   :  { %2799 = vst [vmem:[#allocation8 + $0x158] sm:$0xff] %v2671_v52  ;;  %2483 = vperm.xlu2 %3145, %v2472_v2   ;;  %2509 = vperm.xlu1 %3149, %v2498_v57  }
 0x523   :  { %v2361_v40 = vpop.permute.xlu1 %2360 }
 0x524   :  { %v2672_v62 = vmul.f32 %v2361_v40, %v5644_v9  ;;  %v2673_v35 = vmul.f32 %v2361_v40, %v5645_v7  ;;  %v2432_v60 = vpop.permute.xlu0 %2431  ;;  %v5652_v9 = vld [vmem:[#allocation28_spill] sm:$0xff]  ;;  %v5653_v7 = vld [vmem:[#allocation75_spill] sm:$0xff] }
 0x525   :  { %v2694_v15 = vmul.f32 %v2432_v60, %v4239_v45  ;;  %v2695_v36 = vmul.f32 %v2432_v60, %v4242_v10 }
 0x526   :  { %2800 = vst [vmem:[#allocation8 + $0x160] sm:$0xff] %v2672_v62 }
 0x527   :  { %2801 = vst [vmem:[#allocation8 + $0x168] sm:$0xff] %v2673_v35 }
 0x528   :  { %2822 = vst [vmem:[#allocation8 + $0x210] sm:$0xff] %v2694_v15  ;;  %v5655_v15 = vld [vmem:[#allocation73_spill] sm:$0xff] }
 0x529   :  { %2823 = vst [vmem:[#allocation8 + $0x218] sm:$0xff] %v2695_v36  ;;  %3148 = vset.pattern.permute.xlu2 %v4960_v54  ;;  %2522 = vperm.xlu1 %3149, %v2511_v30  }
 0x52b   :  { %v2374_v2 = vpop.permute.xlu2 %2373 }
 0x52c   :  { %v2676_v24 = vmul.f32 %v2374_v2, %v5646_v61  ;;  %v2677_v50 = vmul.f32 %v2374_v2, %v5647_v53  ;;  %v5656_v53 = vld [vmem:[#allocation31_spill] sm:$0xff] }
 0x52e   :  { %2804 = vst [vmem:[#allocation8 + $0x180] sm:$0xff] %v2676_v24 }
 0x52f   :  { %2805 = vst [vmem:[#allocation8 + $0x188] sm:$0xff] %v2677_v50 }
 0x531   :  { %2503 = vperm.xlu2 %3148, %v2498_v57   ;;  %3152 = vset.pattern.permute.xlu1 %v4960_v54  ;;  %v2537_v57 = vperm.slane %v5051_v46, 1 }
 0x533   :  { %v2380_v45 = vpop.permute.xlu1 %2379  ;;  %v2387_v10 = vpop.permute.xlu2 %2386 }
 0x534   :  { %v2678_v29 = vmul.f32 %v2380_v45, %v5648_v1  ;;  %v2679_v28 = vmul.f32 %v2380_v45, %v5649_v13  ;;  %v2680_v38 = vmul.f32 %v2387_v10, %v5650_v47  ;;  %v2465_v43 = vpop.permute.xlu0 %2464  ;;  %v2681_v23 = vmul.f32 %v2387_v10, %v5651_v63  ;;  %v5657_v45 = vld [vmem:[#allocation77_spill] sm:$0xff]  ;;  %v5658_v1 = vld [vmem:[#allocation32_spill] sm:$0xff] }
 0x535   :  { %v2704_v5 = vmul.f32 %v2465_v43, %v4285_v59  ;;  %v2705_v52 = vmul.f32 %v2465_v43, %v4288_v25  ;;  %v5654_v25 = vld [vmem:[#allocation30_spill] sm:$0xff] }
 0x536   :  { %2806 = vst [vmem:[#allocation8 + $0x190] sm:$0xff] %v2678_v29 }
 0x537   :  { %2807 = vst [vmem:[#allocation8 + $0x198] sm:$0xff] %v2679_v28 }
 0x538   :  { %2808 = vst [vmem:[#allocation8 + $0x1a0] sm:$0xff] %v2680_v38 }
 0x539   :  { %2809 = vst [vmem:[#allocation8 + $0x1a8] sm:$0xff] %v2681_v23  ;;  %2516 = vperm.xlu2 %3148, %v2511_v30   ;;  %2542 = vperm.xlu1 %3152, %v2537_v57   ;;  %v2576_v23 = vperm.slane %v5051_v46, 4 }
 0x53a   :  { %2832 = vst [vmem:[#allocation8 + $0x260] sm:$0xff] %v2704_v5 }
 0x53b   :  { %2833 = vst [vmem:[#allocation8 + $0x268] sm:$0xff] %v2705_v52  ;;  %v2393_v40 = vpop.permute.xlu1 %2392 }
 0x53c   :  { %v2682_v62 = vmul.f32 %v2393_v40, %v5652_v9  ;;  %v2683_v35 = vmul.f32 %v2393_v40, %v5653_v7  ;;  %v2602_v7 = vperm.slane %v5051_v46, 6 }
 0x53e   :  { %2810 = vst [vmem:[#allocation8 + $0x1b0] sm:$0xff] %v2682_v62 }
 0x53f   :  { %2811 = vst [vmem:[#allocation8 + $0x1b8] sm:$0xff] %v2683_v35 }
 0x541   :  { %3151 = vset.pattern.permute.xlu2 %v4967_v16  ;;  %2555 = vperm.xlu1 %3152, %v2550_v6  }
 0x543   :  { %v2406_v59 = vpop.permute.xlu2 %2405 }
 0x544   :  { %v2686_v60 = vmul.f32 %v2406_v59, %v5654_v25  ;;  %v2687_v36 = vmul.f32 %v2406_v59, %v5655_v15  ;;  %v2497_v30 = vpop.permute.xlu0 %2496  ;;  %v5661_v25 = vld [vmem:[#allocation80_spill] sm:$0xff]  ;;  %v5662_v15 = vld [vmem:[#allocation81_spill] sm:$0xff] }
 0x545   :  { %v2714_v2 = vmul.f32 %v2497_v30, %v4369_v0  ;;  %v2715_v61 = vmul.f32 %v2497_v30, %v4375_v22  ;;  %v5659_v0 = vld [vmem:[#allocation76_spill] sm:$0xff]  ;;  %v2563_v22 = vperm.slane %v5051_v46, 3 }
 0x546   :  { %2814 = vst [vmem:[#allocation8 + $0x1d0] sm:$0xff] %v2686_v60 }
 0x547   :  { %2815 = vst [vmem:[#allocation8 + $0x1d8] sm:$0xff] %v2687_v36 }
 0x548   :  { %2842 = vst [vmem:[#allocation8 + $0x2b0] sm:$0xff] %v2714_v2  ;;  %v5664_v2 = vld [vmem:[#allocation83_spill] sm:$0xff] }
 0x549   :  { %2843 = vst [vmem:[#allocation8 + $0x2b8] sm:$0xff] %v2715_v61  ;;  %2535 = vperm.xlu2 %3151, %v2524_v31   ;;  %3155 = vset.pattern.permute.xlu1 %v4967_v16 }
 0x54b   :  { %v2413_v6 = vpop.permute.xlu1 %2412  ;;  %v2419_v24 = vpop.permute.xlu2 %2418 }
 0x54c   :  { %v2688_v50 = vmul.f32 %v2413_v6, %v5656_v53  ;;  %v2689_v10 = vmul.f32 %v2413_v6, %v5657_v45  ;;  %v2690_v29 = vmul.f32 %v2419_v24, %v5658_v1  ;;  %v2691_v13 = vmul.f32 %v2419_v24, %v5659_v0  ;;  %v5665_v6 = vld [vmem:[#allocation84_spill] sm:$0xff]  ;;  %v5666_v45 = vld [vmem:[#allocation89_spill] sm:$0xff]  ;;  %v5669_v0 = vld [vmem:[#allocation86_spill] sm:$0xff] }
 0x54e   :  { %2816 = vst [vmem:[#allocation8 + $0x1e0] sm:$0xff] %v2688_v50 }
 0x54f   :  { %2817 = vst [vmem:[#allocation8 + $0x1e8] sm:$0xff] %v2689_v10 }
 0x550   :  { %2818 = vst [vmem:[#allocation8 + $0x1f0] sm:$0xff] %v2690_v29 }
 0x551   :  { %2819 = vst [vmem:[#allocation8 + $0x1f8] sm:$0xff] %v2691_v13  ;;  %2548 = vperm.xlu2 %3151, %v2537_v57   ;;  %2574 = vperm.xlu1 %3155, %v2563_v22  }
 0x553   :  { %v2426_v31 = vpop.permute.xlu1 %2425 }
 0x554   :  { %v2530_v28 = vpop.permute.xlu0 %2529  ;;  %v2692_v47 = vmul.f32 %v2426_v31, %v4231_v27  ;;  %v2693_v63 = vmul.f32 %v2426_v31, %v4234_v19  ;;  %v5670_v31 = vld [vmem:[#allocation87_spill] sm:$0xff] }
 0x555   :  { %v2724_v38 = vmul.f32 %v2530_v28, %v5571_v34  ;;  %v2725_v43 = vmul.f32 %v2530_v28, %v5572_v41 }
 0x556   :  { %2820 = vst [vmem:[#allocation8 + $0x200] sm:$0xff] %v2692_v47  ;;  %v5671_v47 = vld [vmem:[#allocation88_spill] sm:$0xff] }
 0x557   :  { %2852 = vst [vmem:[#allocation8 + $0x300] sm:$0xff] %v2724_v38 }
 0x558   :  { %2853 = vst [vmem:[#allocation8 + $0x308] sm:$0xff] %v2725_v43 }
 0x559   :  { %2821 = vst [vmem:[#allocation8 + $0x208] sm:$0xff] %v2693_v63  ;;  %3154 = vset.pattern.permute.xlu2 %v4960_v54  ;;  %2587 = vperm.xlu1 %3155, %v2576_v23   ;;  %v5672_v63 = vld [vmem:[#allocation95_spill] sm:$0xff] }
 0x55b   :  { %v2439_v5 = vpop.permute.xlu2 %2438 }
 0x55c   :  { %v2696_v52 = vmul.f32 %v2439_v5, %v4265_v11  ;;  %v2697_v27 = vmul.f32 %v2439_v5, %v4268_v37  ;;  %v5673_v5 = vld [vmem:[#allocation96_spill] sm:$0xff] }
 0x55e   :  { %2824 = vst [vmem:[#allocation8 + $0x220] sm:$0xff] %v2696_v52 }
 0x55f   :  { %2825 = vst [vmem:[#allocation8 + $0x228] sm:$0xff] %v2697_v27 }
 0x561   :  { %2568 = vperm.xlu2 %3154, %v2563_v22   ;;  %3158 = vset.pattern.permute.xlu1 %v4960_v54 }
 0x563   :  { %v2452_v19 = vpop.permute.xlu2 %2451  ;;  %v2445_v34 = vpop.permute.xlu1 %2444 }
 0x564   :  { %v2700_v41 = vmul.f32 %v2452_v19, %v4271_v55  ;;  %v2701_v57 = vmul.f32 %v2452_v19, %v4274_v20  ;;  %v2562_v40 = vpop.permute.xlu0 %2561  ;;  %v2698_v11 = vmul.f32 %v2445_v34, %v4257_v18  ;;  %v2699_v37 = vmul.f32 %v2445_v34, %v4260_v21  ;;  %v5674_v34 = vld [vmem:[#allocation97_spill] sm:$0xff] }
 0x565   :  { %v2734_v9 = vmul.f32 %v2562_v40, %v5587_v42  ;;  %v2735_v62 = vmul.f32 %v2562_v40, %v5588_v44 }
 0x566   :  { %2828 = vst [vmem:[#allocation8 + $0x240] sm:$0xff] %v2700_v41 }
 0x567   :  { %2829 = vst [vmem:[#allocation8 + $0x248] sm:$0xff] %v2701_v57  ;;  %v5675_v57 = vld [vmem:[#allocation98_spill] sm:$0xff] }
 0x568   :  { %2862 = vst [vmem:[#allocation8 + $0x350] sm:$0xff] %v2734_v9  ;;  %v5676_v9 = vld [vmem:[#allocation93_spill] sm:$0xff] }
 0x569   :  { %2863 = vst [vmem:[#allocation8 + $0x358] sm:$0xff] %v2735_v62  ;;  %2581 = vperm.xlu2 %3154, %v2576_v23   ;;  %2607 = vperm.xlu1 %3158, %v2602_v7  }
 0x56a   :  { %2826 = vst [vmem:[#allocation8 + $0x230] sm:$0xff] %v2698_v11  ;;  %v5677_v11 = vld [vmem:[#allocation94_spill] sm:$0xff] }
 0x56b   :  { %2827 = vst [vmem:[#allocation8 + $0x238] sm:$0xff] %v2699_v37  ;;  %v2458_v55 = vpop.permute.xlu1 %2457 }
 0x56c   :  { %v2702_v20 = vmul.f32 %v2458_v55, %v4291_v48  ;;  %v2703_v42 = vmul.f32 %v2458_v55, %v4294_v32  ;;  %v5678_v55 = vld [vmem:[#allocation101_spill] sm:$0xff] }
 0x56e   :  { %2830 = vst [vmem:[#allocation8 + $0x250] sm:$0xff] %v2702_v20 }
 0x56f   :  { %2831 = vst [vmem:[#allocation8 + $0x258] sm:$0xff] %v2703_v42  ;;  %v5679_v42 = vld [vmem:[#allocation102_spill] sm:$0xff] }
 0x571   :  { %3157 = vset.pattern.permute.xlu2 %v4967_v16  ;;  %2620 = vperm.xlu1 %3158, %v2615_v51   ;;  %v5660_v51 = vld [vmem:[#allocation34_spill] sm:$0xff] }
 0x573   :  { %v2471_v18 = vpop.permute.xlu2 %2470 }
 0x574   :  { %v2706_v21 = vmul.f32 %v2471_v18, %v4297_v49  ;;  %v2707_v44 = vmul.f32 %v2471_v18, %v4300_v39  ;;  %v2595_v54 = vpop.permute.xlu0 %2594 }
 0x575   :  { %v2744_v35 = vmul.f32 %v2595_v54, %v4522_v12  ;;  %v2745_v59 = vmul.f32 %v2595_v54, %v4525_v3 }
 0x576   :  { %2834 = vst [vmem:[#allocation8 + $0x270] sm:$0xff] %v2706_v21 }
 0x577   :  { %2835 = vst [vmem:[#allocation8 + $0x278] sm:$0xff] %v2707_v44  ;;  %v5680_v44 = vld [vmem:[#allocation103_spill] sm:$0xff] }
 0x578   :  { %2872 = vst [vmem:[#allocation8 + $0x3a0] sm:$0xff] %v2744_v35  ;;  %v5681_v35 = vld [vmem:[#allocation104_spill] sm:$0xff] }
 0x579   :  { %2873 = vst [vmem:[#allocation8 + $0x3a8] sm:$0xff] %v2745_v59  ;;  %2600 = vperm.xlu2 %3157, %v2589_v17  }
 0x57b   :  { %v2484_v48 = vpop.permute.xlu2 %2483  ;;  %v2478_v32 = vpop.permute.xlu1 %2477 }
 0x57c   :  { %v2710_v16 = vmul.f32 %v2484_v48, %v4314_v33  ;;  %v2711_v49 = vmul.f32 %v2484_v48, %v4321_v4  ;;  %v2708_v39 = vmul.f32 %v2478_v32, %v5660_v51  ;;  %v2709_v60 = vmul.f32 %v2478_v32, %v5661_v25  ;;  %v5663_v33 = vld [vmem:[#allocation82_spill] sm:$0xff]  ;;  %v5682_v51 = vld [vmem:[#allocation107_spill] sm:$0xff]  ;;  %v5683_v25 = vld [vmem:[#allocation108_spill] sm:$0xff] }
 0x57e   :  { %2838 = vst [vmem:[#allocation8 + $0x290] sm:$0xff] %v2710_v16 }
 0x57f   :  { %2839 = vst [vmem:[#allocation8 + $0x298] sm:$0xff] %v2711_v49 }
 0x580   :  { %2836 = vst [vmem:[#allocation8 + $0x280] sm:$0xff] %v2708_v39 }
 0x581   :  { %2837 = vst [vmem:[#allocation8 + $0x288] sm:$0xff] %v2709_v60  ;;  %2613 = vperm.xlu2 %3157, %v2602_v7  }
 0x583   :  { %v2491_v3 = vpop.permute.xlu1 %2490 }
 0x584   :  { %v2627_v12 = vpop.permute.xlu0 %2626  ;;  %v2712_v46 = vmul.f32 %v2491_v3, %v5662_v15  ;;  %v2713_v30 = vmul.f32 %v2491_v3, %v5663_v33  ;;  %v5684_v15 = vld [vmem:[#allocation110_spill] sm:$0xff]  ;;  %v5686_v33 = vld [vmem:[#allocation111_spill] sm:$0xff] }
 0x585   :  { %v2754_v17 = vmul.f32 %v2627_v12, %v4586_v58  ;;  %v2755_v36 = vmul.f32 %v2627_v12, %v4592_v26  ;;  %v5667_v58 = vld [vmem:[#allocation90_spill] sm:$0xff]  ;;  %v5668_v26 = vld [vmem:[#allocation85_spill] sm:$0xff] }
 0x586   :  { %2840 = vst [vmem:[#allocation8 + $0x2a0] sm:$0xff] %v2712_v46 }
 0x587   :  { %2882 = vst [vmem:[#allocation8 + $0x3f0] sm:$0xff] %v2754_v17 }
 0x588   :  { %2883 = vst [vmem:[#allocation8 + $0x3f8] sm:$0xff] %v2755_v36  ;;  %v5685_v36 = vld [vmem:[#allocation33_spill] sm:$0xff] }
 0x589   :  { %2841 = vst [vmem:[#allocation8 + $0x2a8] sm:$0xff] %v2713_v30 }
 0x58b   :  { %v2504_v4 = vpop.permute.xlu2 %2503 }
 0x58c   :  { %v2716_v61 = vmul.f32 %v2504_v4, %v5664_v2  ;;  %v2717_v24 = vmul.f32 %v2504_v4, %v5665_v6  ;;  %v5687_v2 = vld [vmem:[#allocation116_spill] sm:$0xff]  ;;  %v5688_v6 = vld [vmem:[#allocation117_spill] sm:$0xff] }
 0x58e   :  { %2844 = vst [vmem:[#allocation8 + $0x2c0] sm:$0xff] %v2716_v61 }
 0x58f   :  { %2845 = vst [vmem:[#allocation8 + $0x2c8] sm:$0xff] %v2717_v24 }
 0x593   :  { %v2517_v53 = vpop.permute.xlu2 %2516  ;;  %v2510_v50 = vpop.permute.xlu1 %2509 }
 0x594   :  { %v2720_v10 = vmul.f32 %v2517_v53, %v5666_v45  ;;  %v2721_v1 = vmul.f32 %v2517_v53, %v5667_v58  ;;  %v2718_v29 = vmul.f32 %v2510_v50, %v5668_v26  ;;  %v2719_v13 = vmul.f32 %v2510_v50, %v5669_v0  ;;  %v5689_v53 = vld [vmem:[#allocation112_spill] sm:$0xff]  ;;  %v5691_v58 = vld [vmem:[#allocation114_spill] sm:$0xff]  ;;  %v5692_v26 = vld [vmem:[#allocation115_spill] sm:$0xff] }
 0x596   :  { %2848 = vst [vmem:[#allocation8 + $0x2e0] sm:$0xff] %v2720_v10 }
 0x597   :  { %2849 = vst [vmem:[#allocation8 + $0x2e8] sm:$0xff] %v2721_v1 }
 0x598   :  { %2846 = vst [vmem:[#allocation8 + $0x2d0] sm:$0xff] %v2718_v29 }
 0x599   :  { %2847 = vst [vmem:[#allocation8 + $0x2d8] sm:$0xff] %v2719_v13 }
 0x59b   :  { %v2523_v22 = vpop.permute.xlu1 %2522 }
 0x59c   :  { %v2722_v28 = vmul.f32 %v2523_v22, %v5670_v31  ;;  %v2723_v38 = vmul.f32 %v2523_v22, %v5671_v47 }
 0x59e   :  { %2850 = vst [vmem:[#allocation8 + $0x2f0] sm:$0xff] %v2722_v28 }
 0x59f   :  { %2851 = vst [vmem:[#allocation8 + $0x2f8] sm:$0xff] %v2723_v38 }
 0x5a3   :  { %v2536_v43 = vpop.permute.xlu2 %2535 }
 0x5a4   :  { %v2726_v23 = vmul.f32 %v2536_v43, %v5672_v63  ;;  %v2727_v52 = vmul.f32 %v2536_v43, %v5673_v5 }
 0x5a6   :  { %2854 = vst [vmem:[#allocation8 + $0x310] sm:$0xff] %v2726_v23 }
 0x5a7   :  { %2855 = vst [vmem:[#allocation8 + $0x318] sm:$0xff] %v2727_v52 }
 0x5ab   :  { %v2549_v27 = vpop.permute.xlu2 %2548  ;;  %v2543_v19 = vpop.permute.xlu1 %2542 }
 0x5ac   :  { %v2730_v41 = vmul.f32 %v2549_v27, %v5674_v34  ;;  %v2731_v40 = vmul.f32 %v2549_v27, %v5675_v57  ;;  %v2728_v62 = vmul.f32 %v2543_v19, %v5676_v9  ;;  %v2729_v37 = vmul.f32 %v2543_v19, %v5677_v11 }
 0x5ae   :  { %2858 = vst [vmem:[#allocation8 + $0x330] sm:$0xff] %v2730_v41 }
 0x5af   :  { %2859 = vst [vmem:[#allocation8 + $0x338] sm:$0xff] %v2731_v40 }
 0x5b0   :  { %2856 = vst [vmem:[#allocation8 + $0x320] sm:$0xff] %v2728_v62 }
 0x5b1   :  { %2857 = vst [vmem:[#allocation8 + $0x328] sm:$0xff] %v2729_v37 }
 0x5b3   :  { %v2556_v7 = vpop.permute.xlu1 %2555 }
 0x5b4   :  { %v2732_v20 = vmul.f32 %v2556_v7, %v5678_v55  ;;  %v2733_v18 = vmul.f32 %v2556_v7, %v5679_v42 }
 0x5b6   :  { %2860 = vst [vmem:[#allocation8 + $0x340] sm:$0xff] %v2732_v20 }
 0x5b7   :  { %2861 = vst [vmem:[#allocation8 + $0x348] sm:$0xff] %v2733_v18 }
 0x5bb   :  { %v2569_v21 = vpop.permute.xlu2 %2568 }
 0x5bc   :  { %v2736_v54 = vmul.f32 %v2569_v21, %v5680_v44  ;;  %v2737_v59 = vmul.f32 %v2569_v21, %v5681_v35 }
 0x5be   :  { %2864 = vst [vmem:[#allocation8 + $0x360] sm:$0xff] %v2736_v54 }
 0x5bf   :  { %2865 = vst [vmem:[#allocation8 + $0x368] sm:$0xff] %v2737_v59 }
 0x5c3   :  { %v2582_v48 = vpop.permute.xlu2 %2581  ;;  %v2575_v32 = vpop.permute.xlu1 %2574 }
 0x5c4   :  { %v2740_v16 = vmul.f32 %v2582_v48, %v5591_v56  ;;  %v2741_v49 = vmul.f32 %v2582_v48, %v5592_v8  ;;  %v2738_v39 = vmul.f32 %v2575_v32, %v5682_v51  ;;  %v2739_v60 = vmul.f32 %v2575_v32, %v5683_v25 }
 0x5c6   :  { %2868 = vst [vmem:[#allocation8 + $0x380] sm:$0xff] %v2740_v16 }
 0x5c7   :  { %2869 = vst [vmem:[#allocation8 + $0x388] sm:$0xff] %v2741_v49 }
 0x5c8   :  { %2866 = vst [vmem:[#allocation8 + $0x370] sm:$0xff] %v2738_v39 }
 0x5c9   :  { %2867 = vst [vmem:[#allocation8 + $0x378] sm:$0xff] %v2739_v60 }
 0x5cb   :  { %v2588_v3 = vpop.permute.xlu1 %2587 }
 0x5cc   :  { %v2742_v12 = vmul.f32 %v2588_v3, %v5589_v14  ;;  %v2743_v46 = vmul.f32 %v2588_v3, %v5684_v15  ;;  %v5690_v14 = vld [vmem:[#allocation113_spill] sm:$0xff] }
 0x5ce   :  { %2870 = vst [vmem:[#allocation8 + $0x390] sm:$0xff] %v2742_v12 }
 0x5cf   :  { %2871 = vst [vmem:[#allocation8 + $0x398] sm:$0xff] %v2743_v46 }
 0x5d3   :  { %v2601_v17 = vpop.permute.xlu2 %2600 }
 0x5d4   :  { %v2746_v56 = vmul.f32 %v2601_v17, %v5685_v36  ;;  %v2747_v8 = vmul.f32 %v2601_v17, %v5686_v33 }
 0x5d6   :  { %2874 = vst [vmem:[#allocation8 + $0x3b0] sm:$0xff] %v2746_v56 }
 0x5d7   :  { %2875 = vst [vmem:[#allocation8 + $0x3b8] sm:$0xff] %v2747_v8 }
 0x5db   :  { %v2614_v30 = vpop.permute.xlu2 %2613  ;;  %v2608_v4 = vpop.permute.xlu1 %2607 }
 0x5dc   :  { %v2750_v61 = vmul.f32 %v2614_v30, %v5687_v2  ;;  %v2751_v24 = vmul.f32 %v2614_v30, %v5688_v6  ;;  %v2748_v50 = vmul.f32 %v2608_v4, %v5689_v53  ;;  %v2749_v45 = vmul.f32 %v2608_v4, %v5690_v14 }
 0x5de   :  { %2878 = vst [vmem:[#allocation8 + $0x3d0] sm:$0xff] %v2750_v61 }
 0x5df   :  { %2879 = vst [vmem:[#allocation8 + $0x3d8] sm:$0xff] %v2751_v24 }
 0x5e0   :  { %2876 = vst [vmem:[#allocation8 + $0x3c0] sm:$0xff] %v2748_v50 }
 0x5e1   :  { %2877 = vst [vmem:[#allocation8 + $0x3c8] sm:$0xff] %v2749_v45 }
 0x5e3   :  { %v2621_v10 = vpop.permute.xlu1 %2620 }
 0x5e4   :  { %v2752_v1 = vmul.f32 %v2621_v10, %v5691_v58  ;;  %v2753_v29 = vmul.f32 %v2621_v10, %v5692_v26 }
 0x5e6   :  { %2880 = vst [vmem:[#allocation8 + $0x3e0] sm:$0xff] %v2752_v1 }
 0x5e7   :  { %2881 = vst [vmem:[#allocation8 + $0x3e8] sm:$0xff] %v2753_v29 }
 0x5e8   :  { %2896 = dma.vmem_to_hbm [thread:$0]  %s2889_s30, 16384, %s2891_s0, [#allocation5], %s3334_s9, %s3334_s9, %s3335_s10  }
 0x5e9   :  { %3331 = dma.done.wait [#allocation5], 16384  }
 0x5ea   :  { %3332 = vsyncadd [#allocation5], 4294950912 }
 0x5eb   :  { %2901 = vsyncpa [#allocation4], 1 }
 0x5ec   :  { %2902 = vsyncpa [#allocation5], 1 }
 0x5ed   :  { %2903 = vsyncpa [#allocation6], 1 }

</bundles_post_ra>
